<compile_context>
chip_gen: v5e
topology: v5e:2x2
jax: 0.10.0
libtpu: 0.0.40
codegen_flags: <defaults>
</compile_context>

<pallas_src>
import functools
import math

import jax
import jax.numpy as jnp
from jax.experimental import pallas as pl
from jax.experimental.pallas import tpu as pltpu

# Keep the f32 multi-pass MXU path so the harness can assert tight tolerances against the
# f32 reference.  For production, cast activations/weights to bf16 with f32 accumulation
# (preferred_element_type) and keep BN statistics + softmax in f32.
jax.config.update("jax_default_matmul_precision", "highest")

NUM_SUBSET = 3
BN_EPS = 1e-5


@functools.lru_cache(maxsize=1)
def _vmem_limit_bytes():
    # Generation-aware VMEM budget: ~75% of physical capacity, capped at 100 MB.
    # v5e/v6e (128 MiB) -> 96 MB; v7x (64 MiB) -> 48 MB.
    cap = 128 * 1024 * 1024
    try:
        info = pltpu.get_tpu_info()
        cap = int(getattr(info, "vmem_capacity_bytes", cap)) or cap
    except Exception:
        pass
    return min(cap * 3 // 4, 100 * 1024 * 1024)


def _pick_lane_tile(total, cap):
    """Largest multiple-of-128 divisor of `total` that is <= cap (else the full extent)."""
    if total <= cap or total % 128 != 0:
        return total
    t = (cap // 128) * 128
    while t >= 128:
        if total % t == 0:
            return t
        t -= 128
    return total


def _pick_row_tile(total, cap):
    """Largest multiple-of-8 divisor of `total` that is <= cap (else the full extent)."""
    if total <= cap:
        return total
    t = (cap // 8) * 8
    while t >= 8:
        if total % t == 0:
            return t
        t -= 8
    return total


# ------------------- K1: one stacked matmul for every 1x1 conv -------------------

def _proj_kernel(x_ref, w_ref, b_ref, proj_ref):
    proj_ref[0] = (jnp.dot(w_ref[...], x_ref[0], preferred_element_type=jnp.float32)
                   + b_ref[...])


def _proj_kernel_down(x_ref, w_ref, b_ref, proj_ref, dsum_ref, dsq_ref, *, cout):
    p = jnp.dot(w_ref[...], x_ref[0], preferred_element_type=jnp.float32) + b_ref[...]
    proj_ref[0] = p
    d = p[:cout, :]                                    # down-branch rows, fused BN stats
    dsum_ref[0, 0] = jnp.sum(d, axis=1, keepdims=True)
    dsq_ref[0, 0] = jnp.sum(d * d, axis=1, keepdims=True)


def fused_projections(x2d, w_all, b_all, cout, has_down, l_tile):
    N, Cin, L = x2d.shape
    Rtot = w_all.shape[0]
    n_lt = L // l_tile

    in_specs = [
        pl.BlockSpec((1, Cin, l_tile), lambda n, l: (n, 0, l)),
        pl.BlockSpec((Rtot, Cin), lambda n, l: (0, 0)),
        pl.BlockSpec((Rtot, 1), lambda n, l: (0, 0)),
    ]
    out_shape = [jax.ShapeDtypeStruct((N, Rtot, L), jnp.float32)]
    out_specs = [pl.BlockSpec((1, Rtot, l_tile), lambda n, l: (n, 0, l))]
    if has_down:
        kernel = functools.partial(_proj_kernel_down, cout=cout)
        out_shape += [jax.ShapeDtypeStruct((N, n_lt, cout, 1), jnp.float32)] * 2
        out_specs += [pl.BlockSpec((1, 1, cout, 1), lambda n, l: (n, l, 0, 0))] * 2
    else:
        kernel = _proj_kernel

    flops = 2 * N * Rtot * Cin * L
    bytes_accessed = 4 * (N * Cin * L + N * Rtot * L + Rtot * (Cin + 1))
    return pl.pallas_call(
        kernel,
        out_shape=tuple(out_shape),
        grid=(N, n_lt),
        in_specs=in_specs,
        out_specs=tuple(out_specs),
        compiler_params=pltpu.CompilerParams(
            dimension_semantics=("parallel", "parallel"),
            vmem_limit_bytes=_vmem_limit_bytes()),
        cost_estimate=pl.CostEstimate(flops=flops, transcendentals=0,
                                      bytes_accessed=bytes_accessed),
    )(x2d, w_all, b_all)


# ---- K2: attention + graph matmul + conv_d accumulation (zp never hits HBM) ----

def _graph_convd_kernel(fa_ref, fb_ref, g_ref, a_ref, bd_ref,
                        y_ref, ysum_ref, ysq_ref, *, inv_scale):
    i = pl.program_id(2)
    fa = fa_ref[0]                                     # (Ci*T, V)
    fb = fb_ref[0]                                     # (Ci*T, V)
    # M[v, u] = sum_k fa[k, v] * fb[k, u]; contracting dim 0 of both operands requests the
    # MXU transposed-LHS load path (no explicit XLU transpose of the tall operand).
    m = jax.lax.dot_general(fa, fb, (((0,), (0,)), ((), ())),
                            preferred_element_type=jnp.float32) * inv_scale
    # softmax over dim -2 (rows of the VxV matrix), numerically stabilized
    m = m - jnp.max(m, axis=0, keepdims=True)
    e = jnp.exp(m)
    s = e * pl.reciprocal(jnp.sum(e, axis=0, keepdims=True), approx=False)  # EUP, not VPU div
    s = s + a_ref[0]                                   # + (A + PA)[i]

    # conv_d commuted in front of the graph matmul: z_i = (wd_i @ x) @ S_i.
    z = jnp.dot(g_ref[0], s, preferred_element_type=jnp.float32)

    @pl.when(i == 0)
    def _init():
        y_ref[0] = jnp.broadcast_to(bd_ref[...], z.shape)   # sum_i bd_i, repeated over T

    y_ref[0] += z

    @pl.when(i == pl.num_programs(2) - 1)
    def _stats():
        y = y_ref[0]
        ysum_ref[0] = jnp.sum(y, axis=1, keepdims=True)      # fused per-(sample,row) BN stats
        ysq_ref[0] = jnp.sum(y * y, axis=1, keepdims=True)


def graph_conv_d(proj_rows, a_eff, bd_rep, *, Ci, Cout, T, V,
                 g_row0, a_row0, b_row0, r_tile):
    N = proj_rows.shape[0]
    CT = Cout * T
    KT = Ci * T
    n_rt = CT // r_tile
    g_blk0 = (g_row0 * T) // r_tile
    g_stride = CT // r_tile
    a_blk0 = a_row0 // Ci
    b_blk0 = b_row0 // Ci
    inv_scale = 1.0 / float(KT)

    flops = (2 * N * NUM_SUBSET * (KT * V * V * n_rt + CT * V * V)
             + 8 * N * n_rt * NUM_SUBSET * V * V)
    bytes_accessed = 4 * (N * NUM_SUBSET * (2 * KT * V * n_rt + CT * V)
                          + N * CT * (V + 2) + NUM_SUBSET * V * V + CT)
    return pl.pallas_call(
        functools.partial(_graph_convd_kernel, inv_scale=inv_scale),
        out_shape=(jax.ShapeDtypeStruct((N, CT, V), jnp.float32),
                   jax.ShapeDtypeStruct((N, CT, 1), jnp.float32),
                   jax.ShapeDtypeStruct((N, CT, 1), jnp.float32)),
        grid=(N, n_rt, NUM_SUBSET),
        in_specs=[
            pl.BlockSpec((1, KT, V), lambda n, rt, i: (n, a_blk0 + i, 0)),        # fa_i
            pl.BlockSpec((1, KT, V), lambda n, rt, i: (n, b_blk0 + i, 0)),        # fb_i
            pl.BlockSpec((1, r_tile, V),
                         lambda n, rt, i: (n, g_blk0 + i * g_stride + rt, 0)),    # (wd_i @ x)
            pl.BlockSpec((1, V, V), lambda n, rt, i: (i, 0, 0)),                  # (A+PA)[i]
            pl.BlockSpec((r_tile, 1), lambda n, rt, i: (rt, 0)),                  # bias rows
        ],
        out_specs=(pl.BlockSpec((1, r_tile, V), lambda n, rt, i: (n, rt, 0)),
                   pl.BlockSpec((1, r_tile, 1), lambda n, rt, i: (n, rt, 0)),
                   pl.BlockSpec((1, r_tile, 1), lambda n, rt, i: (n, rt, 0))),
        compiler_params=pltpu.CompilerParams(
            dimension_semantics=("parallel", "parallel", "arbitrary"),
            vmem_limit_bytes=_vmem_limit_bytes()),
        cost_estimate=pl.CostEstimate(flops=flops,
                                      transcendentals=N * n_rt * NUM_SUBSET * V * V,
                                      bytes_accessed=bytes_accessed),
    )(proj_rows, proj_rows, proj_rows, a_eff, bd_rep)


# ------------------- K3: fused BN apply + residual + ReLU -------------------

def _bn_add_relu_kernel(y_ref, d_ref, sy_ref, ty_ref, sd_ref, td_ref, o_ref):
    out = (y_ref[0] * sy_ref[...] + ty_ref[...]
           + d_ref[0] * sd_ref[...] + td_ref[...])
    o_ref[0] = jnp.maximum(out, 0.0)


def bn_add_relu(y2d, d_src, sy, ty, sd, td, l_tile):
    N, Cout, L = y2d.shape
    n_lt = L // l_tile
    flops = 6 * N * Cout * L
    bytes_accessed = 4 * (3 * N * Cout * L + 4 * Cout)
    return pl.pallas_call(
        _bn_add_relu_kernel,
        out_shape=jax.ShapeDtypeStruct((N, Cout, L), jnp.float32),
        grid=(N, n_lt),
        in_specs=[
            pl.BlockSpec((1, Cout, l_tile), lambda n, l: (n, 0, l)),
            pl.BlockSpec((1, Cout, l_tile), lambda n, l: (n, 0, l)),  # skip rows (channels 0:Cout)
            pl.BlockSpec((Cout, 1), lambda n, l: (0, 0)),
            pl.BlockSpec((Cout, 1), lambda n, l: (0, 0)),
            pl.BlockSpec((Cout, 1), lambda n, l: (0, 0)),
            pl.BlockSpec((Cout, 1), lambda n, l: (0, 0)),
        ],
        out_specs=pl.BlockSpec((1, Cout, l_tile), lambda n, l: (n, 0, l)),
        compiler_params=pltpu.CompilerParams(
            dimension_semantics=("parallel", "parallel"),
            vmem_limit_bytes=_vmem_limit_bytes()),
        cost_estimate=pl.CostEstimate(flops=flops, transcendentals=0,
                                      bytes_accessed=bytes_accessed),
    )(y2d, d_src, sy, ty, sd, td)


# ------------------------------ forward glue ------------------------------

def _affine_from_stats(ssum, ssq, count, gamma, beta, eps=BN_EPS):
    # Training-mode BatchNorm2d: biased batch stats from fused per-sample sum / sumsq.
    mean = ssum / count
    var = ssq / count - mean * mean
    scale = gamma / jnp.sqrt(var + eps)
    shift = beta - mean * scale
    return scale[:, None], shift[:, None]


def unit_gcn_forward(x, p, *, l_tile_cap=2048, r_tile_cap=4096):
    """Pallas implementation of unit_gcn.forward (training-mode BN).  Returns (out, y_pre_bn)."""
    N, C, T, V = x.shape
    NS = NUM_SUBSET
    Ci = p["wa"].shape[1]
    Cout = p["wd"].shape[1]
    L = T * V
    has_down = p["wdown"] is not None

    assert Cout % 8 == 0 and Cout % Ci == 0, "out_channels must be a multiple of 8 and of inter_c"
    assert (Ci * T) % 8 == 0, "inter_c * T must be a multiple of 8"
    if not has_down:
        assert C == Cout, "identity skip requires in_channels == out_channels"

    x2d = x.reshape(N, C, L)                       # free row-major reshape of x

    # Stacked 1x1-conv weights: rows = [down?, conv_d (3 subsets, bias deferred), conv_a, conv_b].
    parts_w, parts_b = [], []
    if has_down:
        parts_w.append(p["wdown"]);                    parts_b.append(p["bdown"])
    parts_w.append(p["wd"].reshape(NS * Cout, C));     parts_b.append(jnp.zeros((NS * Cout,), jnp.float32))
    parts_w.append(p["wa"].reshape(NS * Ci, C));       parts_b.append(p["ba"].reshape(-1))
    parts_w.append(p["wb"].reshape(NS * Ci, C));       parts_b.append(p["bb"].reshape(-1))
    w_all = jnp.concatenate(parts_w, axis=0)
    b_all = jnp.concatenate(parts_b, axis=0)[:, None]
    Rtot = w_all.shape[0]

    g_row0 = Cout if has_down else 0               # channel-row offsets inside the stacked output
    a_row0 = g_row0 + NS * Cout
    b_row0 = a_row0 + NS * Ci

    l_tile = _pick_lane_tile(L, l_tile_cap)
    r_tile = _pick_row_tile(Cout * T, r_tile_cap)

    # ---- K1: one matmul covers conv_a, conv_b, conv_d (no bias) and down; down BN stats fused.
    proj_outs = fused_projections(x2d, w_all, b_all, Cout, has_down, l_tile)
    if has_down:
        proj, dsum, dsq = proj_outs
    else:
        (proj,) = proj_outs

    # ---- K2: attention + graph matmul + conv_d accumulation, subset-resident VMEM accumulator.
    proj_rows = proj.reshape(N, Rtot * T, V)       # free row-major reshape (channel-major -> (rows*T, V))
    a_eff = p["A"] + p["PA"]                       # (3, V, V)
    bd_rep = jnp.repeat(jnp.sum(p["bd"], axis=0), T)[:, None]   # (Cout*T, 1) deferred conv_d bias
    y_rows, ysum, ysq = graph_conv_d(
        proj_rows, a_eff, bd_rep, Ci=Ci, Cout=Cout, T=T, V=V,
        g_row0=g_row0, a_row0=a_row0, b_row0=b_row0, r_tile=r_tile)

    # ---- tiny cross-sample BN reductions + affine coefficients in plain JAX.
    count = float(N * L)
    # TODO(synk): E[x^2]-E[x]^2 variance can lose precision vs a centered two-pass variance
    # when |mean| >> std at very large N*T*V; fine at these scales.
    sy, ty = _affine_from_stats(jnp.sum(ysum.reshape(N, Cout, T), axis=(0, 2)),
                                jnp.sum(ysq.reshape(N, Cout, T), axis=(0, 2)),
                                count, p["gamma_bn"], p["beta_bn"])
    if has_down:
        sd, td = _affine_from_stats(jnp.sum(dsum[..., 0], axis=(0, 1)),
                                    jnp.sum(dsq[..., 0], axis=(0, 1)),
                                    count, p["gamma_down"], p["beta_down"])
        d_src = proj                               # skip rows are channels [0:Cout] of proj
    else:
        sd = jnp.ones((Cout, 1), jnp.float32)
        td = jnp.zeros((Cout, 1), jnp.float32)
        d_src = x2d                                # identity skip (C == Cout)

    # ---- K3: fused BN apply + residual + ReLU.
    y2d = y_rows.reshape(N, Cout, L)               # free row-major reshape
    out2d = bn_add_relu(y2d, d_src, sy, ty, sd, td, l_tile)
    return out2d.reshape(N, Cout, T, V), y2d.reshape(N, Cout, T, V)


# --------------------------- pure-JAX reference ----------------------------

def reference_forward(x, p):
    N, C, T, V = x.shape
    Ci = p["wa"].shape[1]
    a_eff = p["A"] + p["PA"]
    y = None
    for i in range(NUM_SUBSET):
        fa = jnp.einsum("oc,nctv->notv", p["wa"][i], x) + p["ba"][i][None, :, None, None]
        fb = jnp.einsum("oc,nctv->notv", p["wb"][i], x) + p["bb"][i][None, :, None, None]
        A1 = jnp.transpose(fa, (0, 3, 1, 2)).reshape(N, V, Ci * T)
        A2 = fb.reshape(N, Ci * T, V)
        M = jnp.matmul(A1, A2) / (Ci * T)
        S = jax.nn.softmax(M, axis=-2) + a_eff[i]
        zp = jnp.matmul(x.reshape(N, C * T, V), S).reshape(N, C, T, V)
        z = jnp.einsum("oc,nctv->notv", p["wd"][i], zp) + p["bd"][i][None, :, None, None]
        y = z if y is None else y + z

    def bn_train(u, g, b):
        mean = jnp.mean(u, axis=(0, 2, 3), keepdims=True)
        var = jnp.mean(jnp.square(u - mean), axis=(0, 2, 3), keepdims=True)
        return (u - mean) / jnp.sqrt(var + BN_EPS) * g[None, :, None, None] + b[None, :, None, None]

    y_bn = bn_train(y, p["gamma_bn"], p["beta_bn"])
    if p["wdown"] is not None:
        d = jnp.einsum("oc,nctv->notv", p["wdown"], x) + p["bdown"][None, :, None, None]
        d = bn_train(d, p["gamma_down"], p["beta_down"])
    else:
        d = x
    return jnp.maximum(y_bn + d, 0.0), y


# --------------------------- deterministic params --------------------------

def init_params(key, in_channels, out_channels, V, coff_embedding=4):
    Ci = out_channels // coff_embedding
    ks = jax.random.split(key, 9)
    std_ab = math.sqrt(2.0 / Ci)                            # kaiming fan_out, 1x1 conv
    std_d = math.sqrt(2.0 / (out_channels * NUM_SUBSET))    # conv_branch_init
    std_down = math.sqrt(2.0 / out_channels)
    p = {
        "A": 0.1 * jax.random.uniform(ks[0], (NUM_SUBSET, V, V), jnp.float32),  # synthetic adjacency
        "PA": jnp.full((NUM_SUBSET, V, V), 1e-6, jnp.float32),                  # nn.init.constant_(PA, 1e-6)
        "wa": std_ab * jax.random.normal(ks[1], (NUM_SUBSET, Ci, in_channels), jnp.float32),
        "ba": 0.01 * jax.random.normal(ks[2], (NUM_SUBSET, Ci), jnp.float32),
        "wb": std_ab * jax.random.normal(ks[3], (NUM_SUBSET, Ci, in_channels), jnp.float32),
        "bb": 0.01 * jax.random.normal(ks[4], (NUM_SUBSET, Ci), jnp.float32),
        "wd": std_d * jax.random.normal(ks[5], (NUM_SUBSET, out_channels, in_channels), jnp.float32),
        "bd": 0.01 * jax.random.normal(ks[6], (NUM_SUBSET, out_channels), jnp.float32),
        "gamma_bn": jnp.full((out_channels,), 1e-6, jnp.float32),               # bn_init(self.bn, 1e-6)
        "beta_bn": jnp.zeros((out_channels,), jnp.float32),
    }
    if in_channels != out_channels:
        p["wdown"] = std_down * jax.random.normal(ks[7], (out_channels, in_channels), jnp.float32)
        p["bdown"] = 0.01 * jax.random.normal(ks[8], (out_channels,), jnp.float32)
        p["gamma_down"] = jnp.ones((out_channels,), jnp.float32)                # bn_init(m, 1)
        p["beta_down"] = jnp.zeros((out_channels,), jnp.float32)
    else:
        p["wdown"] = None
        p["bdown"] = None
        p["gamma_down"] = None
        p["beta_down"] = None
    return p


def _check(name, x, params, l_cap, r_cap):
    fwd = jax.jit(functools.partial(unit_gcn_forward, l_tile_cap=l_cap, r_tile_cap=r_cap))
    out, y_pre = fwd(x, params)
    out = jax.block_until_ready(out)
    y_pre = jax.block_until_ready(y_pre)
    out_ref, y_pre_ref = reference_forward(x, params)
    assert out.shape == out_ref.shape
    assert jnp.allclose(y_pre, y_pre_ref, rtol=1e-3, atol=1e-5), f"{name}: pre-BN branch mismatch"
    assert jnp.allclose(out, out_ref, rtol=1e-3, atol=1e-5), f"{name}: final output mismatch"


if __name__ == "__main__":
    key = jax.random.PRNGKey(0)
    k1, k2, k3, k4 = jax.random.split(key, 4)

    # Case A: down-projection branch (Cin != Cout), whole-slab tiles.
    pA = init_params(k1, 4, 16, 16)
    xA = jax.random.normal(k2, (2, 4, 16, 16), jnp.float32)
    _check("down", xA, pA, 2048, 4096)

    # Case B: identity skip (Cin == Cout), small tile caps to exercise the L / row tiling paths.
    pB = init_params(k3, 16, 16, 16)
    xB = jax.random.normal(k4, (2, 16, 16, 16), jnp.float32)
    _check("identity", xB, pB, 128, 128)

    print("KERNEL_OK")
</pallas_src>

<mosaic_0001>
module attributes {stable_mosaic.version = 11 : i64} {
  func.func @_proj_kernel_down(%arg0: i32, %arg1: i32, %arg2: memref<1x4x256xf32, #tpu.memory_space<vmem>>, %arg3: memref<88x4xf32, #tpu.memory_space<vmem>>, %arg4: memref<88x1xf32, #tpu.memory_space<vmem>>, %arg5: memref<1x88x256xf32, #tpu.memory_space<vmem>>, %arg6: memref<1x1x16x1xf32, #tpu.memory_space<vmem>>, %arg7: memref<1x1x16x1xf32, #tpu.memory_space<vmem>>) attributes {dimension_semantics = [#tpu.dimension_semantics<parallel>, #tpu.dimension_semantics<parallel>], iteration_bounds = array<i64: 2, 1>, scalar_prefetch = 0 : i64, scratch_operands = 0 : i64, tpu.core_type = #tpu.core_type<tc>, window_params = [{transform_indices = @transform_0, window_bounds = array<i64: 1, 4, 256>}, {pipeline_mode = #tpu.pipeline_mode<synchronous>, transform_indices = @transform_1, window_bounds = array<i64: 88, 4>}, {pipeline_mode = #tpu.pipeline_mode<synchronous>, transform_indices = @transform_2, window_bounds = array<i64: 88, 1>}, {transform_indices = @transform_3, window_bounds = array<i64: 1, 88, 256>}, {transform_indices = @transform_4, window_bounds = array<i64: 1, 1, 16, 1>}, {transform_indices = @transform_5, window_bounds = array<i64: 1, 1, 16, 1>}]} {
    %c0 = arith.constant 0 : index
    %c0_0 = arith.constant 0 : index
    %0 = vector.load %arg3[%c0, %c0_0] : memref<88x4xf32, #tpu.memory_space<vmem>>, vector<88x4xf32>
    %c0_1 = arith.constant 0 : index
    %c0_2 = arith.constant 0 : index
    %c0_3 = arith.constant 0 : index
    %1 = vector.load %arg2[%c0_1, %c0_2, %c0_3] : memref<1x4x256xf32, #tpu.memory_space<vmem>>, vector<1x4x256xf32>
    %2 = vector.shape_cast %1 : vector<1x4x256xf32> to vector<4x256xf32>
    %cst = arith.constant dense<0.000000e+00> : vector<88x256xf32>
    %3 = tpu.matmul %0, %2, %cst {dimension_numbers = #tpu.dot_dimension_numbers<[1], [0], [0], [1], [0, 0, 1, 1], [], []>, precision = #tpu.contract_precision<fp32>} : vector<88x4xf32>, vector<4x256xf32>, vector<88x256xf32> -> vector<88x256xf32>
    %c0_4 = arith.constant 0 : index
    %c0_5 = arith.constant 0 : index
    %4 = vector.load %arg4[%c0_4, %c0_5] : memref<88x1xf32, #tpu.memory_space<vmem>>, vector<88x1xf32>
    %5 = vector.broadcast %4 : vector<88x1xf32> to vector<88x256xf32>
    %6 = arith.addf %3, %5 : vector<88x256xf32>
    %c0_6 = arith.constant 0 : index
    %c0_7 = arith.constant 0 : index
    %c0_8 = arith.constant 0 : index
    %7 = vector.load %arg5[%c0_6, %c0_7, %c0_8] : memref<1x88x256xf32, #tpu.memory_space<vmem>>, vector<1x88x256xf32>
    %8 = vector.shape_cast %7 : vector<1x88x256xf32> to vector<88x256xf32>
    %9 = vector.shape_cast %6 : vector<88x256xf32> to vector<1x88x256xf32>
    tpu.vector_store %arg5[%c0_6, %c0_7, %c0_8], %9 {strides = array<i32>} : memref<1x88x256xf32, #tpu.memory_space<vmem>>, vector<1x88x256xf32>,
    %10 = vector.extract_strided_slice %6 {offsets = [0, 0], sizes = [16, 256], strides = [1, 1]} : vector<88x256xf32> to vector<16x256xf32>
    %cst_9 = arith.constant dense<0.000000e+00> : vector<16xf32>
    %11 = vector.multi_reduction <add>, %10, %cst_9 [1] : vector<16x256xf32> to vector<16xf32>
    %12 = vector.shape_cast %11 : vector<16xf32> to vector<16x1xf32>
    %c0_10 = arith.constant 0 : index
    %c0_11 = arith.constant 0 : index
    %c0_12 = arith.constant 0 : index
    %c0_13 = arith.constant 0 : index
    %13 = vector.load %arg6[%c0_10, %c0_11, %c0_12, %c0_13] : memref<1x1x16x1xf32, #tpu.memory_space<vmem>>, vector<1x1x16x1xf32>
    %14 = vector.shape_cast %13 : vector<1x1x16x1xf32> to vector<16x1xf32>
    %15 = vector.shape_cast %12 : vector<16x1xf32> to vector<1x1x16x1xf32>
    tpu.vector_store %arg6[%c0_10, %c0_11, %c0_12, %c0_13], %15 {strides = array<i32>} : memref<1x1x16x1xf32, #tpu.memory_space<vmem>>, vector<1x1x16x1xf32>,
    %16 = arith.mulf %10, %10 : vector<16x256xf32>
    %cst_14 = arith.constant dense<0.000000e+00> : vector<16xf32>
    %17 = vector.multi_reduction <add>, %16, %cst_14 [1] : vector<16x256xf32> to vector<16xf32>
    %18 = vector.shape_cast %17 : vector<16xf32> to vector<16x1xf32>
    %c0_15 = arith.constant 0 : index
    %c0_16 = arith.constant 0 : index
    %c0_17 = arith.constant 0 : index
    %c0_18 = arith.constant 0 : index
    %19 = vector.load %arg7[%c0_15, %c0_16, %c0_17, %c0_18] : memref<1x1x16x1xf32, #tpu.memory_space<vmem>>, vector<1x1x16x1xf32>
    %20 = vector.shape_cast %19 : vector<1x1x16x1xf32> to vector<16x1xf32>
    %21 = vector.shape_cast %18 : vector<16x1xf32> to vector<1x1x16x1xf32>
    tpu.vector_store %arg7[%c0_15, %c0_16, %c0_17, %c0_18], %21 {strides = array<i32>} : memref<1x1x16x1xf32, #tpu.memory_space<vmem>>, vector<1x1x16x1xf32>,
    return
  }
  func.func @transform_0(%arg0: i32, %arg1: i32) -> (i32, i32, i32) {
    %c0_i32 = arith.constant 0 : i32
    %c0_i32_0 = arith.constant 0 : i32
    return %arg0, %c0_i32, %arg1 : i32, i32, i32
  }
  func.func @transform_1(%arg0: i32, %arg1: i32) -> (i32, i32) {
    %c0_i32 = arith.constant 0 : i32
    %c0_i32_0 = arith.constant 0 : i32
    %c0_i32_1 = arith.constant 0 : i32
    return %c0_i32, %c0_i32_0 : i32, i32
  }
  func.func @transform_2(%arg0: i32, %arg1: i32) -> (i32, i32) {
    %c0_i32 = arith.constant 0 : i32
    %c0_i32_0 = arith.constant 0 : i32
    %c0_i32_1 = arith.constant 0 : i32
    return %c0_i32, %c0_i32_0 : i32, i32
  }
  func.func @transform_3(%arg0: i32, %arg1: i32) -> (i32, i32, i32) {
    %c0_i32 = arith.constant 0 : i32
    %c0_i32_0 = arith.constant 0 : i32
    return %arg0, %c0_i32, %arg1 : i32, i32, i32
  }
  func.func @transform_4(%arg0: i32, %arg1: i32) -> (i32, i32, i32, i32) {
    %c0_i32 = arith.constant 0 : i32
    %c0_i32_0 = arith.constant 0 : i32
    %c0_i32_1 = arith.constant 0 : i32
    return %arg0, %arg1, %c0_i32, %c0_i32_0 : i32, i32, i32, i32
  }
  func.func @transform_5(%arg0: i32, %arg1: i32) -> (i32, i32, i32, i32) {
    %c0_i32 = arith.constant 0 : i32
    %c0_i32_0 = arith.constant 0 : i32
    %c0_i32_1 = arith.constant 0 : i32
    return %arg0, %arg1, %c0_i32, %c0_i32_0 : i32, i32, i32, i32
  }
}

module attributes {stable_mosaic.version = 11 : i64} {
  func.func @_graph_convd_kernel(%arg0: i32, %arg1: i32, %arg2: i32, %arg3: memref<1x64x16xf32, #tpu.memory_space<vmem>>, %arg4: memref<1x64x16xf32, #tpu.memory_space<vmem>>, %arg5: memref<1x256x16xf32, #tpu.memory_space<vmem>>, %arg6: memref<1x16x16xf32, #tpu.memory_space<vmem>>, %arg7: memref<256x1xf32, #tpu.memory_space<vmem>>, %arg8: memref<1x256x16xf32, #tpu.memory_space<vmem>>, %arg9: memref<1x256x1xf32, #tpu.memory_space<vmem>>, %arg10: memref<1x256x1xf32, #tpu.memory_space<vmem>>) attributes {dimension_semantics = [#tpu.dimension_semantics<parallel>, #tpu.dimension_semantics<parallel>, #tpu.dimension_semantics<arbitrary>], iteration_bounds = array<i64: 2, 1, 3>, scalar_prefetch = 0 : i64, scratch_operands = 0 : i64, tpu.core_type = #tpu.core_type<tc>, window_params = [{transform_indices = @transform_0, window_bounds = array<i64: 1, 64, 16>}, {transform_indices = @transform_1, window_bounds = array<i64: 1, 64, 16>}, {transform_indices = @transform_2, window_bounds = array<i64: 1, 256, 16>}, {transform_indices = @transform_3, window_bounds = array<i64: 1, 16, 16>}, {transform_indices = @transform_4, window_bounds = array<i64: 256, 1>}, {transform_indices = @transform_5, window_bounds = array<i64: 1, 256, 16>}, {transform_indices = @transform_6, window_bounds = array<i64: 1, 256, 1>}, {transform_indices = @transform_7, window_bounds = array<i64: 1, 256, 1>}]} {
    %c0 = arith.constant 0 : index
    %c0_0 = arith.constant 0 : index
    %c0_1 = arith.constant 0 : index
    %0 = vector.load %arg3[%c0, %c0_0, %c0_1] : memref<1x64x16xf32, #tpu.memory_space<vmem>>, vector<1x64x16xf32>
    %1 = vector.shape_cast %0 : vector<1x64x16xf32> to vector<64x16xf32>
    %c0_2 = arith.constant 0 : index
    %c0_3 = arith.constant 0 : index
    %c0_4 = arith.constant 0 : index
    %2 = vector.load %arg4[%c0_2, %c0_3, %c0_4] : memref<1x64x16xf32, #tpu.memory_space<vmem>>, vector<1x64x16xf32>
    %3 = vector.shape_cast %2 : vector<1x64x16xf32> to vector<64x16xf32>
    %cst = arith.constant dense<0.000000e+00> : vector<16x16xf32>
    %4 = tpu.matmul %1, %3, %cst {dimension_numbers = #tpu.dot_dimension_numbers<[0], [0], [1], [1], [0, 1, 1, 1], [], []>, precision = #tpu.contract_precision<fp32>} : vector<64x16xf32>, vector<64x16xf32>, vector<16x16xf32> -> vector<16x16xf32>
    %cst_5 = arith.constant 1.562500e-02 : f32
    %5 = vector.broadcast %cst_5 : f32 to vector<16x16xf32>
    %6 = arith.mulf %4, %5 : vector<16x16xf32>
    %cst_6 = arith.constant dense<0xFF800000> : vector<16xf32>
    %7 = vector.multi_reduction <maximumf>, %6, %cst_6 [0] : vector<16x16xf32> to vector<16xf32>
    %8 = vector.shape_cast %7 : vector<16xf32> to vector<1x16xf32>
    %9 = vector.broadcast %8 : vector<1x16xf32> to vector<16x16xf32>
    %10 = arith.subf %6, %9 : vector<16x16xf32>
    %11 = math.exp %10 : vector<16x16xf32>
    %cst_7 = arith.constant dense<0.000000e+00> : vector<16xf32>
    %12 = vector.multi_reduction <add>, %11, %cst_7 [0] : vector<16x16xf32> to vector<16xf32>
    %13 = vector.shape_cast %12 : vector<16xf32> to vector<1x16xf32>
    %14 = tpu.reciprocal %13 : vector<1x16xf32> -> vector<1x16xf32>
    %15 = vector.broadcast %14 : vector<1x16xf32> to vector<16x16xf32>
    %16 = arith.mulf %11, %15 : vector<16x16xf32>
    %c0_8 = arith.constant 0 : index
    %c0_9 = arith.constant 0 : index
    %c0_10 = arith.constant 0 : index
    %17 = vector.load %arg6[%c0_8, %c0_9, %c0_10] : memref<1x16x16xf32, #tpu.memory_space<vmem>>, vector<1x16x16xf32>
    %18 = vector.shape_cast %17 : vector<1x16x16xf32> to vector<16x16xf32>
    %19 = arith.addf %16, %18 : vector<16x16xf32>
    %c0_11 = arith.constant 0 : index
    %c0_12 = arith.constant 0 : index
    %c0_13 = arith.constant 0 : index
    %20 = vector.load %arg5[%c0_11, %c0_12, %c0_13] : memref<1x256x16xf32, #tpu.memory_space<vmem>>, vector<1x256x16xf32>
    %21 = vector.shape_cast %20 : vector<1x256x16xf32> to vector<256x16xf32>
    %cst_14 = arith.constant dense<0.000000e+00> : vector<256x16xf32>
    %22 = tpu.matmul %21, %19, %cst_14 {dimension_numbers = #tpu.dot_dimension_numbers<[1], [0], [0], [1], [0, 0, 1, 1], [], []>, precision = #tpu.contract_precision<fp32>} : vector<256x16xf32>, vector<16x16xf32>, vector<256x16xf32> -> vector<256x16xf32>
    %c0_i32 = arith.constant 0 : i32
    %23 = arith.cmpi eq, %arg2, %c0_i32 : i32
    %24 = arith.extui %23 : i1 to i32
    %c0_i32_15 = arith.constant 0 : i32
    %25 = arith.cmpi ne, %24, %c0_i32_15 : i32
    scf.if %25 {
      %c0_23 = arith.constant 0 : index
      %c0_24 = arith.constant 0 : index
      %35 = vector.load %arg7[%c0_23, %c0_24] : memref<256x1xf32, #tpu.memory_space<vmem>>, vector<256x1xf32>
      %36 = vector.shape_cast %35 : vector<256x1xf32> to vector<256x1xf32>
      %37 = vector.broadcast %36 : vector<256x1xf32> to vector<256x16xf32>
      %c0_25 = arith.constant 0 : index
      %c0_26 = arith.constant 0 : index
      %c0_27 = arith.constant 0 : index
      %38 = vector.load %arg8[%c0_25, %c0_26, %c0_27] : memref<1x256x16xf32, #tpu.memory_space<vmem>>, vector<1x256x16xf32>
      %39 = vector.shape_cast %38 : vector<1x256x16xf32> to vector<256x16xf32>
      %40 = vector.shape_cast %37 : vector<256x16xf32> to vector<1x256x16xf32>
      tpu.vector_store %arg8[%c0_25, %c0_26, %c0_27], %40 {strides = array<i32>} : memref<1x256x16xf32, #tpu.memory_space<vmem>>, vector<1x256x16xf32>,
    } else {
    }
    %c0_16 = arith.constant 0 : index
    %c0_17 = arith.constant 0 : index
    %c0_18 = arith.constant 0 : index
    %26 = vector.load %arg8[%c0_16, %c0_17, %c0_18] : memref<1x256x16xf32, #tpu.memory_space<vmem>>, vector<1x256x16xf32>
    %27 = vector.shape_cast %26 : vector<1x256x16xf32> to vector<256x16xf32>
    %28 = arith.addf %27, %22 : vector<256x16xf32>
    %c0_19 = arith.constant 0 : index
    %c0_20 = arith.constant 0 : index
    %c0_21 = arith.constant 0 : index
    %29 = vector.load %arg8[%c0_19, %c0_20, %c0_21] : memref<1x256x16xf32, #tpu.memory_space<vmem>>, vector<1x256x16xf32>
    %30 = vector.shape_cast %29 : vector<1x256x16xf32> to vector<256x16xf32>
    %31 = vector.shape_cast %28 : vector<256x16xf32> to vector<1x256x16xf32>
    tpu.vector_store %arg8[%c0_19, %c0_20, %c0_21], %31 {strides = array<i32>} : memref<1x256x16xf32, #tpu.memory_space<vmem>>, vector<1x256x16xf32>,
    %c2_i32 = arith.constant 2 : i32
    %32 = arith.cmpi eq, %arg2, %c2_i32 : i32
    %33 = arith.extui %32 : i1 to i32
    %c0_i32_22 = arith.constant 0 : i32
    %34 = arith.cmpi ne, %33, %c0_i32_22 : i32
    scf.if %34 {
      %c0_23 = arith.constant 0 : index
      %c0_24 = arith.constant 0 : index
      %c0_25 = arith.constant 0 : index
      %35 = vector.load %arg8[%c0_23, %c0_24, %c0_25] : memref<1x256x16xf32, #tpu.memory_space<vmem>>, vector<1x256x16xf32>
      %36 = vector.shape_cast %35 : vector<1x256x16xf32> to vector<256x16xf32>
      %cst_26 = arith.constant dense<0.000000e+00> : vector<256xf32>
      %37 = vector.multi_reduction <add>, %36, %cst_26 [1] : vector<256x16xf32> to vector<256xf32>
      %38 = vector.shape_cast %37 : vector<256xf32> to vector<256x1xf32>
      %c0_27 = arith.constant 0 : index
      %c0_28 = arith.constant 0 : index
      %c0_29 = arith.constant 0 : index
      %39 = vector.load %arg9[%c0_27, %c0_28, %c0_29] : memref<1x256x1xf32, #tpu.memory_space<vmem>>, vector<1x256x1xf32>
      %40 = vector.shape_cast %39 : vector<1x256x1xf32> to vector<256x1xf32>
      %41 = vector.shape_cast %38 : vector<256x1xf32> to vector<1x256x1xf32>
      tpu.vector_store %arg9[%c0_27, %c0_28, %c0_29], %41 {strides = array<i32>} : memref<1x256x1xf32, #tpu.memory_space<vmem>>, vector<1x256x1xf32>,
      %42 = arith.mulf %36, %36 : vector<256x16xf32>
      %cst_30 = arith.constant dense<0.000000e+00> : vector<256xf32>
      %43 = vector.multi_reduction <add>, %42, %cst_30 [1] : vector<256x16xf32> to vector<256xf32>
      %44 = vector.shape_cast %43 : vector<256xf32> to vector<256x1xf32>
      %c0_31 = arith.constant 0 : index
      %c0_32 = arith.constant 0 : index
      %c0_33 = arith.constant 0 : index
      %45 = vector.load %arg10[%c0_31, %c0_32, %c0_33] : memref<1x256x1xf32, #tpu.memory_space<vmem>>, vector<1x256x1xf32>
      %46 = vector.shape_cast %45 : vector<1x256x1xf32> to vector<256x1xf32>
      %47 = vector.shape_cast %44 : vector<256x1xf32> to vector<1x256x1xf32>
      tpu.vector_store %arg10[%c0_31, %c0_32, %c0_33], %47 {strides = array<i32>} : memref<1x256x1xf32, #tpu.memory_space<vmem>>, vector<1x256x1xf32>,
    } else {
    }
    return
  }
  func.func @transform_0(%arg0: i32, %arg1: i32, %arg2: i32) -> (i32, i32, i32) {
    %c16_i32 = arith.constant 16 : i32
    %0 = arith.addi %c16_i32, %arg2 : i32
    %c0_i32 = arith.constant 0 : i32
    %c0_i32_0 = arith.constant 0 : i32
    return %arg0, %0, %c0_i32 : i32, i32, i32
  }
  func.func @transform_1(%arg0: i32, %arg1: i32, %arg2: i32) -> (i32, i32, i32) {
    %c19_i32 = arith.constant 19 : i32
    %0 = arith.addi %c19_i32, %arg2 : i32
    %c0_i32 = arith.constant 0 : i32
    %c0_i32_0 = arith.constant 0 : i32
    return %arg0, %0, %c0_i32 : i32, i32, i32
  }
  func.func @transform_2(%arg0: i32, %arg1: i32, %arg2: i32) -> (i32, i32, i32) {
    %c1_i32 = arith.constant 1 : i32
    %0 = arith.muli %arg2, %c1_i32 : i32
    %c1_i32_0 = arith.constant 1 : i32
    %1 = arith.addi %c1_i32_0, %0 : i32
    %2 = arith.addi %1, %arg1 : i32
    %c0_i32 = arith.constant 0 : i32
    %c0_i32_1 = arith.constant 0 : i32
    return %arg0, %2, %c0_i32 : i32, i32, i32
  }
  func.func @transform_3(%arg0: i32, %arg1: i32, %arg2: i32) -> (i32, i32, i32) {
    %c0_i32 = arith.constant 0 : i32
    %c0_i32_0 = arith.constant 0 : i32
    %c0_i32_1 = arith.constant 0 : i32
    return %arg2, %c0_i32, %c0_i32_0 : i32, i32, i32
  }
  func.func @transform_4(%arg0: i32, %arg1: i32, %arg2: i32) -> (i32, i32) {
    %c0_i32 = arith.constant 0 : i32
    %c0_i32_0 = arith.constant 0 : i32
    return %arg1, %c0_i32 : i32, i32
  }
  func.func @transform_5(%arg0: i32, %arg1: i32, %arg2: i32) -> (i32, i32, i32) {
    %c0_i32 = arith.constant 0 : i32
    %c0_i32_0 = arith.constant 0 : i32
    return %arg0, %arg1, %c0_i32 : i32, i32, i32
  }
  func.func @transform_6(%arg0: i32, %arg1: i32, %arg2: i32) -> (i32, i32, i32) {
    %c0_i32 = arith.constant 0 : i32
    %c0_i32_0 = arith.constant 0 : i32
    return %arg0, %arg1, %c0_i32 : i32, i32, i32
  }
  func.func @transform_7(%arg0: i32, %arg1: i32, %arg2: i32) -> (i32, i32, i32) {
    %c0_i32 = arith.constant 0 : i32
    %c0_i32_0 = arith.constant 0 : i32
    return %arg0, %arg1, %c0_i32 : i32, i32, i32
  }
}

module attributes {stable_mosaic.version = 11 : i64} {
  func.func @_bn_add_relu_kernel(%arg0: i32, %arg1: i32, %arg2: memref<1x16x256xf32, #tpu.memory_space<vmem>>, %arg3: memref<1x16x256xf32, #tpu.memory_space<vmem>>, %arg4: memref<16x1xf32, #tpu.memory_space<vmem>>, %arg5: memref<16x1xf32, #tpu.memory_space<vmem>>, %arg6: memref<16x1xf32, #tpu.memory_space<vmem>>, %arg7: memref<16x1xf32, #tpu.memory_space<vmem>>, %arg8: memref<1x16x256xf32, #tpu.memory_space<vmem>>) attributes {dimension_semantics = [#tpu.dimension_semantics<parallel>, #tpu.dimension_semantics<parallel>], iteration_bounds = array<i64: 2, 1>, scalar_prefetch = 0 : i64, scratch_operands = 0 : i64, tpu.core_type = #tpu.core_type<tc>, window_params = [{transform_indices = @transform_0, window_bounds = array<i64: 1, 16, 256>}, {transform_indices = @transform_1, window_bounds = array<i64: 1, 16, 256>}, {pipeline_mode = #tpu.pipeline_mode<synchronous>, transform_indices = @transform_2, window_bounds = array<i64: 16, 1>}, {pipeline_mode = #tpu.pipeline_mode<synchronous>, transform_indices = @transform_3, window_bounds = array<i64: 16, 1>}, {pipeline_mode = #tpu.pipeline_mode<synchronous>, transform_indices = @transform_4, window_bounds = array<i64: 16, 1>}, {pipeline_mode = #tpu.pipeline_mode<synchronous>, transform_indices = @transform_5, window_bounds = array<i64: 16, 1>}, {transform_indices = @transform_6, window_bounds = array<i64: 1, 16, 256>}]} {
    %c0 = arith.constant 0 : index
    %c0_0 = arith.constant 0 : index
    %c0_1 = arith.constant 0 : index
    %0 = vector.load %arg2[%c0, %c0_0, %c0_1] : memref<1x16x256xf32, #tpu.memory_space<vmem>>, vector<1x16x256xf32>
    %1 = vector.shape_cast %0 : vector<1x16x256xf32> to vector<16x256xf32>
    %c0_2 = arith.constant 0 : index
    %c0_3 = arith.constant 0 : index
    %2 = vector.load %arg4[%c0_2, %c0_3] : memref<16x1xf32, #tpu.memory_space<vmem>>, vector<16x1xf32>
    %3 = vector.broadcast %2 : vector<16x1xf32> to vector<16x256xf32>
    %4 = arith.mulf %1, %3 : vector<16x256xf32>
    %c0_4 = arith.constant 0 : index
    %c0_5 = arith.constant 0 : index
    %5 = vector.load %arg5[%c0_4, %c0_5] : memref<16x1xf32, #tpu.memory_space<vmem>>, vector<16x1xf32>
    %6 = vector.broadcast %5 : vector<16x1xf32> to vector<16x256xf32>
    %7 = arith.addf %4, %6 : vector<16x256xf32>
    %c0_6 = arith.constant 0 : index
    %c0_7 = arith.constant 0 : index
    %c0_8 = arith.constant 0 : index
    %8 = vector.load %arg3[%c0_6, %c0_7, %c0_8] : memref<1x16x256xf32, #tpu.memory_space<vmem>>, vector<1x16x256xf32>
    %9 = vector.shape_cast %8 : vector<1x16x256xf32> to vector<16x256xf32>
    %c0_9 = arith.constant 0 : index
    %c0_10 = arith.constant 0 : index
    %10 = vector.load %arg6[%c0_9, %c0_10] : memref<16x1xf32, #tpu.memory_space<vmem>>, vector<16x1xf32>
    %11 = vector.broadcast %10 : vector<16x1xf32> to vector<16x256xf32>
    %12 = arith.mulf %9, %11 : vector<16x256xf32>
    %13 = arith.addf %7, %12 : vector<16x256xf32>
    %c0_11 = arith.constant 0 : index
    %c0_12 = arith.constant 0 : index
    %14 = vector.load %arg7[%c0_11, %c0_12] : memref<16x1xf32, #tpu.memory_space<vmem>>, vector<16x1xf32>
    %15 = vector.broadcast %14 : vector<16x1xf32> to vector<16x256xf32>
    %16 = arith.addf %13, %15 : vector<16x256xf32>
    %cst = arith.constant 0.000000e+00 : f32
    %17 = vector.broadcast %cst : f32 to vector<16x256xf32>
    %18 = arith.maximumf %16, %17 : vector<16x256xf32>
    %c0_13 = arith.constant 0 : index
    %c0_14 = arith.constant 0 : index
    %c0_15 = arith.constant 0 : index
    %19 = vector.load %arg8[%c0_13, %c0_14, %c0_15] : memref<1x16x256xf32, #tpu.memory_space<vmem>>, vector<1x16x256xf32>
    %20 = vector.shape_cast %19 : vector<1x16x256xf32> to vector<16x256xf32>
    %21 = vector.shape_cast %18 : vector<16x256xf32> to vector<1x16x256xf32>
    tpu.vector_store %arg8[%c0_13, %c0_14, %c0_15], %21 {strides = array<i32>} : memref<1x16x256xf32, #tpu.memory_space<vmem>>, vector<1x16x256xf32>,
    return
  }
  func.func @transform_0(%arg0: i32, %arg1: i32) -> (i32, i32, i32) {
    %c0_i32 = arith.constant 0 : i32
    %c0_i32_0 = arith.constant 0 : i32
    return %arg0, %c0_i32, %arg1 : i32, i32, i32
  }
  func.func @transform_1(%arg0: i32, %arg1: i32) -> (i32, i32, i32) {
    %c0_i32 = arith.constant 0 : i32
    %c0_i32_0 = arith.constant 0 : i32
    return %arg0, %c0_i32, %arg1 : i32, i32, i32
  }
  func.func @transform_2(%arg0: i32, %arg1: i32) -> (i32, i32) {
    %c0_i32 = arith.constant 0 : i32
    %c0_i32_0 = arith.constant 0 : i32
    %c0_i32_1 = arith.constant 0 : i32
    return %c0_i32, %c0_i32_0 : i32, i32
  }
  func.func @transform_3(%arg0: i32, %arg1: i32) -> (i32, i32) {
    %c0_i32 = arith.constant 0 : i32
    %c0_i32_0 = arith.constant 0 : i32
    %c0_i32_1 = arith.constant 0 : i32
    return %c0_i32, %c0_i32_0 : i32, i32
  }
  func.func @transform_4(%arg0: i32, %arg1: i32) -> (i32, i32) {
    %c0_i32 = arith.constant 0 : i32
    %c0_i32_0 = arith.constant 0 : i32
    %c0_i32_1 = arith.constant 0 : i32
    return %c0_i32, %c0_i32_0 : i32, i32
  }
  func.func @transform_5(%arg0: i32, %arg1: i32) -> (i32, i32) {
    %c0_i32 = arith.constant 0 : i32
    %c0_i32_0 = arith.constant 0 : i32
    %c0_i32_1 = arith.constant 0 : i32
    return %c0_i32, %c0_i32_0 : i32, i32
  }
  func.func @transform_6(%arg0: i32, %arg1: i32) -> (i32, i32, i32) {
    %c0_i32 = arith.constant 0 : i32
    %c0_i32_0 = arith.constant 0 : i32
    return %arg0, %c0_i32, %arg1 : i32, i32, i32
  }
}

</mosaic_0001>

<bundles_post_ra>
// kernel: unit_gcn_forward.3
= control target key start
LH: loop header
LB: loop body
LE: loop exit
PB: predicated region body
PF: predicated region fallthrough
CT: control target
= control target key end

     0   :  { %s1679_s18 = smov 0   ;;  %s1681_s19 = smov 0   ;;  %s2210_s0 = inlined_call_operand.vmem [shape: f32[2,4,256], index: 0, kind: input, shape index: {}]   ;;  %s2211_s1 = inlined_call_operand.vmem [shape: f32[88,4], index: 1, kind: input, shape index: {}]   ;;  %s2212_s2 = inlined_call_operand.vmem [shape: f32[88,1], index: 2, kind: input, shape index: {}]   ;;  %s2213_s3 = inlined_call_operand.vmem [shape: f32[2,88,256], index: 3, kind: output, shape index: {0}]   ;;  %s2214_s4 = inlined_call_operand.vmem [shape: f32[2,1,16,1], index: 4, kind: output, shape index: {1}]   ;;  %s2215_s5 = inlined_call_operand.vmem [shape: f32[2,1,16,1], index: 5, kind: output, shape index: {2}]  }
   0x1   :  { %s1683_s20 = smov 0  }
   0x2 LB: > { %s28_s21 = sadd.s32 1, %s1642_s19  ;;  %p1582_p0 = scmp.ge.s32.totalorder %s1646_s20, 1  ;;  %s1646_s20 = sphi %s1683_s20, %s16_s20   ;;  %s1642_s19 = sphi %s1681_s19, %s2217_s19   ;;  %s1638_s18 = sphi %s1679_s18, %s2216_s18  }
   0x3   : > { %p30_p1 = scmp.ge.s32.totalorder %s28_s21, 2  ;;  %p217_p2 = scmp.lt.s32.totalorder %s1646_s20, 3 }
   0x5   : > { %s2219_s21 = smov (%p30_p1, %s28_s21), 0  ;;  %p218_p3 = pnand %p1582_p0, %p217_p2 }
   0x6   : > { %p272_p4 = scmp.lt.s32.totalorder (!%p218_p3), %s1638_s18, 1 }
   0x7   : > { %221 = sbr.rel (%p218_p3) target bundleno = 473 (0x1d9), region = 32 }
   0xc   : > { %v309_v0 = vld [vmem:[%s2211_s1] sm:$0xff]  ;;  %vm391_vm0 = vcmask 31744   ;;  %v310_v2 = vld [vmem:[%s2211_s1 + $0x8] sm:$0xff]  ;;  %s2221_s18 = smov (!%p272_p4, %s1638_s18), 1  ;;  %v1648_v4 = vmov 0   ;;  %v311_v11 = vld [vmem:[%s2211_s1 + $0x10] sm:$0xff] }
   0xd   : > { %v393_v1 = vsel %vm391_vm0, %v309_v0, 0  ;;  %1621 = vset.pattern.permute.xlu0 %v1648_v4  ;;  %v321_v5 = vld [vmem:[%s2212_s2] sm:$0xff]  ;;  %1622 = vset.pattern.permute.xlu1 %v1648_v4  ;;  %s1592_s28 = sshll.u32 %s2221_s18, 3  ;;  %v396_v7 = vsel %vm391_vm0, %v310_v2, 0  ;;  %v399_v12 = vsel %vm391_vm0, %v311_v11, 0  ;;  %v322_v15 = vld [vmem:[%s2212_s2 + $0x8] sm:$0xff] }
   0xe   : > { %v1706_v3 = vand.u32 4294901760, %v393_v1  ;;  %334 = vperm.xlu0 %1621, %v321_v5   ;;  %1623 = vset.pattern.permute.xlu2 %v1648_v4  ;;  %s279_s6 = scalar_lea.vmem %s2210_s0, %s1592_s28  ;;  %v1722_v10 = vand.u32 4294901760, %v396_v7  ;;  %vm425_vm1 = vcmask 1043456   ;;  %v1736_v16 = vand.u32 4294901760, %v399_v12  ;;  %v312_v25 = vld [vmem:[%s2211_s1 + $0x18] sm:$0xff]  ;;  %v323_v30 = vld [vmem:[%s2212_s2 + $0x10] sm:$0xff] }
   0xf   : > { %v320_v8 = vld [vmem:[%s279_s6] sm:$0xff]  ;;  %v402_v33 = vsel %vm391_vm0, %v312_v25, 0  ;;  %344 = vperm.xlu1 %1622, %v323_v30   ;;  %v324_v44 = vld [vmem:[%s2212_s2 + $0x18] sm:$0xff]  ;;  %v314_v49 = vld [vmem:[%s2211_s1 + $0x28] sm:$0xff]  ;;  %s1595_s28 = smul.u32 176, %s2221_s18  ;;  %s1593_s7 = sshll.u32 %s2221_s18, 4 }
  0x10   : > { %v1713_v6 = vsub.f32 %v393_v1, %v1706_v3  ;;  %388 = vst [vmem:[#allocation1] ss:$2 sm:$0xff] %v320_v8  ;;  %v1731_v14 = vsub.f32 %v396_v7, %v1722_v10  ;;  %v1751_v29 = vsub.f32 %v399_v12, %v1736_v16  ;;  %v1763_v38 = vand.u32 4294901760, %v402_v33  ;;  %v313_v41 = vld [vmem:[%s2211_s1 + $0x20] sm:$0xff]  ;;  %v315_v56 = vld [vmem:[%s2211_s1 + $0x30] sm:$0xff]  ;;  %v316_v63 = vld [vmem:[%s2211_s1 + $0x38] sm:$0xff]  ;;  %s299_s10 = scalar_lea.vmem %s2214_s4, %s1593_s7  ;;  %s308_s13 = scalar_lea.vmem %s2215_s5, %s1593_s7 }
  0x11   : > { %v405_v45 = vsel %vm391_vm0, %v313_v41, 0  ;;  %v408_v52 = vsel %vm391_vm0, %v314_v49, 0  ;;  %v411_v59 = vsel %vm391_vm0, %v315_v56, 0  ;;  %v327_v2 = vld [vmem:[%s2212_s2 + $0x30] sm:$0xff]  ;;  %v414_v4 = vsel %vm391_vm0, %v316_v63, 0  ;;  %v317_v11 = vld [vmem:[%s2211_s1 + $0x40] sm:$0xff]  ;;  %s2083_s6 = scalar_lea.vmem %s2213_s3, %s1595_s28 }
  0x12   : > { %v1720_v9 = vand.u32 4294901760, %v1713_v6  ;;  %v1741_v22 = vand.u32 4294901760, %v1731_v14  ;;  %v1761_v37 = vand.u32 4294901760, %v1751_v29  ;;  %v1773_v43 = vsub.f32 %v402_v33, %v1763_v38  ;;  %v319_v33 = vld [vmem:[%s2211_s1 + $0x50] sm:$0xff] }
  0x13   : > { %v1786_v48 = vand.u32 4294901760, %v405_v45  ;;  %v1806_v55 = vand.u32 4294901760, %v408_v52  ;;  %v1826_v62 = vand.u32 4294901760, %v411_v59  ;;  %v1849_v8 = vand.u32 4294901760, %v414_v4 }
  0x14   : > { %v450_v13 = vsub.f32 %v1713_v6, %v1720_v9  ;;  %v458_v28 = vsub.f32 %v1731_v14, %v1741_v22  ;;  %v466_v42 = vsub.f32 %v1751_v29, %v1761_v37  ;;  %v1784_v47 = vand.u32 4294901760, %v1773_v43 }
  0x15   : > { %v1796_v51 = vsub.f32 %v405_v45, %v1786_v48  ;;  %v1816_v58 = vsub.f32 %v408_v52, %v1806_v55  ;;  %v1836_v1 = vsub.f32 %v411_v59, %v1826_v62  ;;  %v329_v59 = vld [vmem:[%s2212_s2 + $0x40] sm:$0xff]  ;;  %vm1370_vm2 = vcmask 7168  }
  0x16   : > { %339 = vperm.xlu0 %1621, %v322_v15   ;;  %v1738_v20 = vand.u32 4294901760, %v450_v13  ;;  %v1758_v36 = vand.u32 4294901760, %v458_v28  ;;  %v1781_v46 = vand.u32 4294901760, %v466_v42  ;;  %v474_v50 = vsub.f32 %v1773_v43, %v1784_v47  ;;  %v325_v15 = vld [vmem:[%s2212_s2 + $0x20] sm:$0xff] }
  0x17   : > { %v389_v17 = vld.sshfl [vmem:[#allocation1] sm:$0xff pattern:$0x75316420]  ;;  %v390_v18 = vld.sshfl [vmem:[#allocation1 + $0x8] sm:$0xff pattern:$0x75316420]  ;;  %349 = vperm.xlu1 %1622, %v324_v44   ;;  %v1859_v13 = vsub.f32 %v414_v4, %v1849_v8  ;;  %354 = vperm.xlu2 %1623, %v325_v15  }
  0x18   : > { %v426_v19 = vsel %vm425_vm1, %v389_v17, 0  ;;  %v428_v21 = vsel %vm425_vm1, %v390_v18, 0  ;;  %v1801_v53 = vand.u32 4294901760, %v474_v50  ;;  %v1804_v54 = vand.u32 4294901760, %v1796_v51  ;;  %v328_v17 = vld [vmem:[%s2212_s2 + $0x38] sm:$0xff]  ;;  %v331_v50 = vld [vmem:[%s2212_s2 + $0x50] sm:$0xff] }
  0x19   : > { %v445_v23 = vand.u32 4294901760, %v426_v19  ;;  %v901_v24 = vand.u32 4294901760, %v428_v21  ;;  %v1824_v61 = vand.u32 4294901760, %v1816_v58  ;;  %v1847_v7 = vand.u32 4294901760, %v1836_v1 }
  0x1a   : > { %v482_v57 = vsub.f32 %v1796_v51, %v1804_v54  ;;  %v417_v18 = vsel %vm391_vm0, %v317_v11, 0 }
  0x1b   : > { %446 = vmatpush.msra.mxu0 %v445_v23  ;;  %v552_v26 = vsub.f32 %v426_v19, %v445_v23  ;;  %692 = vmatpush.msra.mxu3 %v445_v23  ;;  %v1008_v27 = vsub.f32 %v428_v21, %v901_v24  ;;  %v490_v0 = vsub.f32 %v1816_v58, %v1824_v61  ;;  %v1873_v21 = vand.u32 4294901760, %v1859_v13 }
  0x1c   : > { %452 = vmatmul.f32.vlgmr.msra.gmra.mxu0 %v1738_v20  ;;  %696 = vmatmul.f32.vlgmr.msra.gmra.mxu3 %v1720_v9  ;;  %v1821_v60 = vand.u32 4294901760, %v482_v57  ;;  %v498_v12 = vsub.f32 %v1836_v1, %v1847_v7 }
  0x1d   : > { %619 = vmatpush.msra.mxu2 %v552_v26  ;;  %v553_v31 = vand.u32 4294901760, %v552_v26  ;;  %v1009_v32 = vand.u32 4294901760, %v1008_v27  ;;  %v1844_v5 = vand.u32 4294901760, %v490_v0  ;;  %v506_v25 = vsub.f32 %v1859_v13, %v1873_v21 }
  0x1e   : > { %622 = vmatmul.f32.vlgmr.msra.gmra.mxu2 %v1713_v6  ;;  %364 = vperm.xlu0 %1621, %v327_v2   ;;  %v1870_v19 = vand.u32 4294901760, %v498_v12 }
  0x1f   : > { %902 = vmatpush.msrb.mxu2 %v901_v24  ;;  %v554_v34 = vsub.f32 %v552_v26, %v553_v31  ;;  %778 = vmatpush.msrb.mxu0 %v553_v31  ;;  %v1010_v35 = vsub.f32 %v1008_v27, %v1009_v32  ;;  %v1893_v30 = vand.u32 4294901760, %v506_v25 }
  0x20   : > { %369 = vperm.xlu1 %1622, %v328_v17  }
  0x21   : > { %1234 = vmatpush.msra.mxu2 %v1009_v32  ;;  %1075 = vmatpush.msra.mxu0 %v1008_v27  ;;  %v555_v39 = vand.u32 4294901760, %v554_v34  ;;  %v1011_v40 = vand.u32 4294901760, %v1010_v35  ;;  %v326_v27 = vld [vmem:[%s2212_s2 + $0x28] sm:$0xff] }
  0x22   : > { %359 = vperm.xlu2 %1623, %v326_v27  }
  0x23   : > { %556 = vmatpush.msra.mxu1 %v555_v39  ;;  %1012 = vmatpush.msrb.mxu3 %v1011_v40  ;;  %v330_v39 = vld [vmem:[%s2212_s2 + $0x48] sm:$0xff]  ;;  %v423_v40 = vsel %vm391_vm0, %v319_v33, 0 }
  0x24   : > { %460 = vmatmul.f32.gmra.mxu0 %v1758_v36  ;;  %558 = vmatmul.f32.vlgmr.msra.gmra.mxu1 %v1706_v3  ;;  %v1921_v44 = vand.u32 4294901760, %v423_v40 }
  0x25   : > { %840 = vmatpush.msrb.mxu1 %v445_v23  ;;  %702 = vmatmul.f32.gmra.mxu3 %v1741_v22  ;;  %v1875_v23 = vand.u32 4294901760, %v417_v18 }
  0x26   : > { %627 = vmatmul.f32.gmra.mxu2 %v1731_v14  ;;  %1296 = vmatpush.msra.mxu3 %v901_v24  ;;  %v1928_v49 = vsub.f32 %v423_v40, %v1921_v44 }
  0x27   : > { %1148 = vmatpush.msra.mxu1 %v901_v24  ;;  %v318_v24 = vld [vmem:[%s2211_s1 + $0x48] sm:$0xff]  ;;  %v1885_v26 = vsub.f32 %v417_v18, %v1875_v23  ;;  %379 = vperm.xlu0 %1621, %v330_v39  }
  0x28   : > { %v420_v28 = vsel %vm391_vm0, %v318_v24, 0  ;;  %384 = vperm.xlu1 %1622, %v331_v50   ;;  %v1938_v56 = vand.u32 4294901760, %v1928_v49 }
  0x29   : > { %v1896_v31 = vand.u32 4294901760, %v1885_v26  ;;  %v1898_v32 = vand.u32 4294901760, %v420_v28 }
  0x2a   : > { %v530_v57 = vsub.f32 %v1928_v49, %v1938_v56  ;;  %374 = vperm.xlu2 %1623, %v329_v59  }
  0x2b   : > { %v514_v34 = vsub.f32 %v1885_v26, %v1896_v31  ;;  %v1908_v35 = vsub.f32 %v420_v28, %v1898_v32 }
  0x2c   : > { %468 = vmatmul.f32.gmra.mxu0 %v1781_v46  ;;  %562 = vmatmul.f32.gmra.mxu1 %v1722_v10  ;;  %v1949_v63 = vand.u32 4294901760, %v530_v57 }
  0x2d   : > { %708 = vmatmul.f32.gmra.mxu3 %v1761_v37  ;;  %v1916_v41 = vand.u32 4294901760, %v514_v34  ;;  %v1919_v42 = vand.u32 4294901760, %v1908_v35 }
  0x2e   : > { %632 = vmatmul.f32.gmra.mxu2 %v1751_v29 }
  0x2f   : > { %v522_v45 = vsub.f32 %v1908_v35, %v1919_v42 }
  0x31   : > { %v1935_v52 = vand.u32 4294901760, %v522_v45 }
  0x34   : > { %476 = vmatmul.f32.gmra.mxu0 %v1801_v53  ;;  %566 = vmatmul.f32.gmra.mxu1 %v1736_v16 }
  0x35   : > { %714 = vmatmul.f32.gmra.mxu3 %v1784_v47 }
  0x36   : > { %637 = vmatmul.f32.gmra.mxu2 %v1773_v43 }
  0x3c   : > { %484 = vmatmul.f32.gmra.mxu0 %v1821_v60  ;;  %570 = vmatmul.f32.gmra.mxu1 %v1763_v38 }
  0x3d   : > { %720 = vmatmul.f32.gmra.mxu3 %v1804_v54 }
  0x3e   : > { %642 = vmatmul.f32.gmra.mxu2 %v1796_v51 }
  0x44   : > { %492 = vmatmul.f32.gmra.mxu0 %v1844_v5  ;;  %574 = vmatmul.f32.gmra.mxu1 %v1786_v48 }
  0x45   : > { %726 = vmatmul.f32.gmra.mxu3 %v1824_v61 }
  0x46   : > { %647 = vmatmul.f32.gmra.mxu2 %v1816_v58 }
  0x4c   : > { %500 = vmatmul.f32.gmra.mxu0 %v1870_v19  ;;  %578 = vmatmul.f32.gmra.mxu1 %v1806_v55 }
  0x4d   : > { %732 = vmatmul.f32.gmra.mxu3 %v1847_v7 }
  0x4e   : > { %652 = vmatmul.f32.gmra.mxu2 %v1836_v1 }
  0x54   : > { %508 = vmatmul.f32.gmra.mxu0 %v1893_v30  ;;  %582 = vmatmul.f32.gmra.mxu1 %v1826_v62 }
  0x55   : > { %738 = vmatmul.f32.gmra.mxu3 %v1873_v21 }
  0x56   : > { %657 = vmatmul.f32.gmra.mxu2 %v1859_v13 }
  0x5c   : > { %516 = vmatmul.f32.gmra.mxu0 %v1916_v41  ;;  %586 = vmatmul.f32.gmra.mxu1 %v1849_v8 }
  0x5d   : > { %744 = vmatmul.f32.gmra.mxu3 %v1896_v31 }
  0x5e   : > { %662 = vmatmul.f32.gmra.mxu2 %v1885_v26 }
  0x64   : > { %524 = vmatmul.f32.gmra.mxu0 %v1935_v52  ;;  %590 = vmatmul.f32.gmra.mxu1 %v1875_v23 }
  0x65   : > { %750 = vmatmul.f32.gmra.mxu3 %v1919_v42 }
  0x66   : > { %667 = vmatmul.f32.gmra.mxu2 %v1908_v35 }
  0x6c   : > { %532 = vmatmul.f32.gmra.mxu0 %v1949_v63  ;;  %594 = vmatmul.f32.gmra.mxu1 %v1898_v32 }
  0x6d   : > { %756 = vmatmul.f32.gmra.mxu3 %v1938_v56 }
  0x6e   : > { %672 = vmatmul.f32.gmra.mxu2 %v1928_v49 }
  0x74   : > { %598 = vmatmul.f32.gmra.mxu1 %v1921_v44  ;;  %780 = vmatmul.f32.vlgmr.msrb.gmra.mxu0 %v1706_v3 }
  0x75   : > { %1014 = vmatmul.f32.vlgmr.msrb.gmra.mxu3 %v1706_v3 }
  0x76   : > { %908 = vmatmul.f32.vlgmr.msrb.gmra.mxu2 %v1738_v20 }
  0x7c   : > { %784 = vmatmul.f32.gmra.mxu0 %v1722_v10  ;;  %842 = vmatmul.f32.vlgmr.msrb.gmra.mxu1 %v1706_v3 }
  0x7d   : > { %1018 = vmatmul.f32.gmra.mxu3 %v1722_v10 }
  0x7e   : > { %916 = vmatmul.f32.gmra.mxu2 %v1758_v36 }
  0x80   : > { %v1975_v36 = vpop.permute.xlu0 %334 }
  0x81   : > { %v1991_v18 = vpop.permute.xlu1 %344 }
  0x84   : > { %788 = vmatmul.f32.gmra.mxu0 %v1736_v16  ;;  %846 = vmatmul.f32.gmra.mxu1 %v1722_v10 }
  0x85   : > { %1022 = vmatmul.f32.gmra.mxu3 %v1736_v16 }
  0x86   : > { %924 = vmatmul.f32.gmra.mxu2 %v1781_v46 }
  0x88   : > { %v1982_v12 = vpop.permute.xlu0 %339 }
  0x89   : > { %v2000_v59 = vpop.permute.xlu1 %349 }
  0x8c   : > { %792 = vmatmul.f32.gmra.mxu0 %v1763_v38  ;;  %850 = vmatmul.f32.gmra.mxu1 %v1736_v16 }
  0x8d   : > { %1026 = vmatmul.f32.gmra.mxu3 %v1763_v38 }
  0x8e   : > { %932 = vmatmul.f32.gmra.mxu2 %v1801_v53 }
  0x94   : > { %796 = vmatmul.f32.gmra.mxu0 %v1786_v48  ;;  %854 = vmatmul.f32.gmra.mxu1 %v1763_v38 }
  0x95   : > { %1030 = vmatmul.f32.gmra.mxu3 %v1786_v48 }
  0x96   : > { %940 = vmatmul.f32.gmra.mxu2 %v1821_v60 }
  0x99   : > { %v453_v20 = vpop.f32.mrf.mxu0 }
  0x9a   : > { %v454_v46 = vadd.f32 %v453_v20, %v1975_v36 }
  0x9c   : > { %800 = vmatmul.f32.gmra.mxu0 %v1806_v55  ;;  %858 = vmatmul.f32.gmra.mxu1 %v1786_v48 }
  0x9d   : > { %1034 = vmatmul.f32.gmra.mxu3 %v1806_v55 }
  0x9e   : > { %948 = vmatmul.f32.gmra.mxu2 %v1844_v5 }
  0x9f   : > { %v697_v53 = vpop.f32.mrf.mxu3 }
  0xa1   : > { %v461_v0 = vpop.f32.mrf.mxu0  ;;  %v559_v2 = vpop.f32.mrf.mxu1 }
  0xa2   : > { %v560_v4 = vadd.f32 %v559_v2, %v454_v46  ;;  %v623_v11 = vpop.f32.mrf.mxu2  ;;  %v462_v17 = vadd.f32 %v461_v0, %v1982_v12  ;;  %v2009_v0 = vpop.permute.xlu2 %354 }
  0xa4   : > { %v624_v60 = vadd.f32 %v623_v11, %v560_v4  ;;  %804 = vmatmul.f32.gmra.mxu0 %v1826_v62  ;;  %862 = vmatmul.f32.gmra.mxu1 %v1806_v55 }
  0xa5   : > { %1038 = vmatmul.f32.gmra.mxu3 %v1826_v62 }
  0xa6   : > { %v1987_v15 = vadd.f32 %v697_v53, %v624_v60  ;;  %956 = vmatmul.f32.gmra.mxu2 %v1870_v19 }
  0xa8   : > { %v703_v5 = vpop.f32.mrf.mxu3 }
  0xa9   : > { %v469_v24 = vpop.f32.mrf.mxu0  ;;  %v563_v25 = vpop.f32.mrf.mxu1 }
  0xaa   : > { %v564_v27 = vadd.f32 %v563_v25, %v462_v17  ;;  %v628_v28 = vpop.f32.mrf.mxu2  ;;  %v470_v39 = vadd.f32 %v469_v24, %v1991_v18 }
  0xac   : > { %v629_v33 = vadd.f32 %v628_v28, %v564_v27  ;;  %808 = vmatmul.f32.gmra.mxu0 %v1849_v8  ;;  %866 = vmatmul.f32.gmra.mxu1 %v1826_v62 }
  0xad   : > { %1042 = vmatmul.f32.gmra.mxu3 %v1849_v8 }
  0xae   : > { %v1996_v34 = vadd.f32 %v703_v5, %v629_v33  ;;  %964 = vmatmul.f32.gmra.mxu2 %v1893_v30 }
  0xb0   : > { %v709_v19 = vpop.f32.mrf.mxu3 }
  0xb1   : > { %v477_v40 = vpop.f32.mrf.mxu0  ;;  %v567_v45 = vpop.f32.mrf.mxu1 }
  0xb2   : > { %v568_v50 = vadd.f32 %v567_v45, %v470_v39  ;;  %v633_v57 = vpop.f32.mrf.mxu2  ;;  %v478_v53 = vadd.f32 %v477_v40, %v2000_v59  ;;  %v2018_v39 = vpop.permute.xlu2 %359 }
  0xb4   : > { %v634_v20 = vadd.f32 %v633_v57, %v568_v50  ;;  %812 = vmatmul.f32.gmra.mxu0 %v1875_v23  ;;  %870 = vmatmul.f32.gmra.mxu1 %v1849_v8 }
  0xb5   : > { %1046 = vmatmul.f32.gmra.mxu3 %v1875_v23 }
  0xb6   : > { %v2005_v46 = vadd.f32 %v709_v19, %v634_v20  ;;  %972 = vmatmul.f32.gmra.mxu2 %v1916_v41 }
  0xb8   : > { %v715_v30 = vpop.f32.mrf.mxu3 }
  0xb9   : > { %v485_v2 = vpop.f32.mrf.mxu0  ;;  %v571_v4 = vpop.f32.mrf.mxu1 }
  0xba   : > { %v572_v11 = vadd.f32 %v571_v4, %v478_v53  ;;  %v638_v60 = vpop.f32.mrf.mxu2  ;;  %v486_v24 = vadd.f32 %v485_v2, %v2009_v0 }
  0xbc   : > { %v639_v17 = vadd.f32 %v638_v60, %v572_v11  ;;  %816 = vmatmul.f32.gmra.mxu0 %v1898_v32  ;;  %874 = vmatmul.f32.gmra.mxu1 %v1875_v23 }
  0xbd   : > { %1050 = vmatmul.f32.gmra.mxu3 %v1898_v32 }
  0xbe   : > { %v2014_v5 = vadd.f32 %v715_v30, %v639_v17  ;;  %980 = vmatmul.f32.gmra.mxu2 %v1935_v52  ;;  %v2027_v30 = vpop.permute.xlu0 %364 }
  0xc0   : > { %v721_v41 = vpop.f32.mrf.mxu3 }
  0xc1   : > { %v493_v25 = vpop.f32.mrf.mxu0  ;;  %v575_v27 = vpop.f32.mrf.mxu1 }
  0xc2   : > { %v576_v28 = vadd.f32 %v575_v27, %v486_v24  ;;  %v643_v33 = vpop.f32.mrf.mxu2  ;;  %v494_v45 = vadd.f32 %v493_v25, %v2018_v39  ;;  %v2036_v25 = vpop.permute.xlu1 %369 }
  0xc4   : > { %v644_v19 = vadd.f32 %v643_v33, %v576_v28  ;;  %820 = vmatmul.f32.gmra.mxu0 %v1921_v44  ;;  %878 = vmatmul.f32.gmra.mxu1 %v1898_v32 }
  0xc5   : > { %1054 = vmatmul.f32.gmra.mxu3 %v1921_v44 }
  0xc6   : > { %v2023_v40 = vadd.f32 %v721_v41, %v644_v19  ;;  %988 = vmatmul.f32.gmra.mxu2 %v1949_v63 }
  0xc8   : > { %v727_v52 = vpop.f32.mrf.mxu3 }
  0xc9   : > { %v501_v50 = vpop.f32.mrf.mxu0  ;;  %v579_v57 = vpop.f32.mrf.mxu1 }
  0xca   : > { %v580_v20 = vadd.f32 %v579_v57, %v494_v45  ;;  %v648_v53 = vpop.f32.mrf.mxu2  ;;  %v502_v11 = vadd.f32 %v501_v50, %v2027_v30  ;;  %v2045_v50 = vpop.permute.xlu2 %374 }
  0xcc   : > { %v649_v2 = vadd.f32 %v648_v53, %v580_v20  ;;  %882 = vmatmul.f32.gmra.mxu1 %v1921_v44  ;;  %1078 = vmatmul.f32.vlgmr.msra.gmra.mxu0 %v1713_v6 }
  0xcd   : > { %1298 = vmatmul.f32.vlgmr.msra.gmra.mxu3 %v1706_v3 }
  0xce   : > { %v2032_v4 = vadd.f32 %v727_v52, %v649_v2  ;;  %1236 = vmatmul.f32.vlgmr.msra.gmra.mxu2 %v1706_v3 }
  0xd0   : > { %v733_v63 = vpop.f32.mrf.mxu3 }
  0xd1   : > { %v509_v60 = vpop.f32.mrf.mxu0  ;;  %v583_v17 = vpop.f32.mrf.mxu1 }
  0xd2   : > { %v584_v24 = vadd.f32 %v583_v17, %v502_v11  ;;  %v653_v41 = vpop.f32.mrf.mxu2  ;;  %v510_v28 = vadd.f32 %v509_v60, %v2036_v25 }
  0xd4   : > { %v654_v27 = vadd.f32 %v653_v41, %v584_v24  ;;  %1083 = vmatmul.f32.gmra.mxu0 %v1731_v14  ;;  %1152 = vmatmul.f32.vlgmr.msra.gmra.mxu1 %v1720_v9 }
  0xd5   : > { %1302 = vmatmul.f32.gmra.mxu3 %v1722_v10 }
  0xd6   : > { %v2041_v6 = vadd.f32 %v733_v63, %v654_v27  ;;  %1240 = vmatmul.f32.gmra.mxu2 %v1722_v10  ;;  %v2054_v63 = vpop.permute.xlu0 %379 }
  0xd8   : > { %v739_v3 = vpop.f32.mrf.mxu3 }
  0xd9   : > { %v517_v33 = vpop.f32.mrf.mxu0  ;;  %v587_v19 = vpop.f32.mrf.mxu1 }
  0xda   : > { %v588_v45 = vadd.f32 %v587_v19, %v510_v28  ;;  %v658_v52 = vpop.f32.mrf.mxu2  ;;  %v518_v14 = vadd.f32 %v517_v33, %v2045_v50  ;;  %v2063_v28 = vpop.permute.xlu1 %384 }
  0xdc   : > { %v659_v57 = vadd.f32 %v658_v52, %v588_v45  ;;  %1088 = vmatmul.f32.gmra.mxu0 %v1751_v29  ;;  %1158 = vmatmul.f32.gmra.mxu1 %v1741_v22 }
  0xdd   : > { %1306 = vmatmul.f32.gmra.mxu3 %v1736_v16 }
  0xde   : > { %v2050_v9 = vadd.f32 %v739_v3, %v659_v57  ;;  %1244 = vmatmul.f32.gmra.mxu2 %v1736_v16 }
  0xe0   : > { %v745_v10 = vpop.f32.mrf.mxu3 }
  0xe1   : > { %v525_v20 = vpop.f32.mrf.mxu0  ;;  %v591_v53 = vpop.f32.mrf.mxu1 }
  0xe2   : > { %v592_v2 = vadd.f32 %v591_v53, %v518_v14  ;;  %v663_v11 = vpop.f32.mrf.mxu2  ;;  %v526_v29 = vadd.f32 %v525_v20, %v2054_v63 }
  0xe4   : > { %v664_v60 = vadd.f32 %v663_v11, %v592_v2  ;;  %1093 = vmatmul.f32.gmra.mxu0 %v1773_v43  ;;  %1164 = vmatmul.f32.gmra.mxu1 %v1761_v37 }
  0xe5   : > { %1310 = vmatmul.f32.gmra.mxu3 %v1763_v38 }
  0xe6   : > { %v2059_v22 = vadd.f32 %v745_v10, %v664_v60  ;;  %1248 = vmatmul.f32.gmra.mxu2 %v1763_v38 }
  0xe8   : > { %v751_v16 = vpop.f32.mrf.mxu3 }
  0xe9   : > { %v533_v17 = vpop.f32.mrf.mxu0  ;;  %v595_v24 = vpop.f32.mrf.mxu1 }
  0xea   : > { %v596_v41 = vadd.f32 %v595_v24, %v526_v29  ;;  %v668_v27 = vpop.f32.mrf.mxu2  ;;  %v534_v43 = vadd.f32 %v533_v17, %v2063_v28 }
  0xec   : > { %v669_v3 = vadd.f32 %v668_v27, %v596_v41  ;;  %1098 = vmatmul.f32.gmra.mxu0 %v1796_v51  ;;  %1170 = vmatmul.f32.gmra.mxu1 %v1784_v47 }
  0xed   : > { %1314 = vmatmul.f32.gmra.mxu3 %v1786_v48 }
  0xee   : > { %v2068_v37 = vadd.f32 %v751_v16, %v669_v3  ;;  %1252 = vmatmul.f32.gmra.mxu2 %v1786_v48 }
  0xf0   : > { %v757_v38 = vpop.f32.mrf.mxu3 }
  0xf1   : > { %v599_v33 = vpop.f32.mrf.mxu1  ;;  %v781_v19 = vpop.f32.mrf.mxu0 }
  0xf2   : > { %v600_v45 = vadd.f32 %v599_v33, %v534_v43  ;;  %v673_v52 = vpop.f32.mrf.mxu2  ;;  %v782_v51 = vadd.f32 %v781_v19, %v1987_v15 }
  0xf4   : > { %v674_v57 = vadd.f32 %v673_v52, %v600_v45  ;;  %1103 = vmatmul.f32.gmra.mxu0 %v1816_v58  ;;  %1176 = vmatmul.f32.gmra.mxu1 %v1804_v54 }
  0xf5   : > { %1318 = vmatmul.f32.gmra.mxu3 %v1806_v55 }
  0xf6   : > { %v2076_v47 = vadd.f32 %v757_v38, %v674_v57  ;;  %1256 = vmatmul.f32.gmra.mxu2 %v1806_v55 }
  0xf8   : > { %v1015_v48 = vpop.f32.mrf.mxu3 }
  0xf9   : > { %v785_v14 = vpop.f32.mrf.mxu0  ;;  %v843_v58 = vpop.f32.mrf.mxu1 }
  0xfa   : > { %v2085_v10 = vadd.f32 %v843_v58, %v782_v51  ;;  %v909_v54 = vpop.f32.mrf.mxu2  ;;  %v786_v15 = vadd.f32 %v785_v14, %v1996_v34 }
  0xfb   : > { %v910_v20 = vadd.f32 %v909_v54, %v1975_v36 }
  0xfc   : > { %1342 = vst [vmem:[%s2083_s6] sm:$0xff] %v2085_v10  ;;  %1108 = vmatmul.f32.gmra.mxu0 %v1836_v1  ;;  %1182 = vmatmul.f32.gmra.mxu1 %v1824_v61 }
  0xfd   : > { %v2092_v55 = vadd.f32 %v1015_v48, %v910_v20  ;;  %1322 = vmatmul.f32.gmra.mxu3 %v1826_v62 }
  0xfe   : > { %1260 = vmatmul.f32.gmra.mxu2 %v1826_v62 }
 0x100   : > { %v1019_v53 = vpop.f32.mrf.mxu3 }
 0x101   : > { %v789_v2 = vpop.f32.mrf.mxu0  ;;  %v847_v11 = vpop.f32.mrf.mxu1 }
 0x102   : > { %v2097_v60 = vadd.f32 %v847_v11, %v786_v15  ;;  %v917_v36 = vpop.f32.mrf.mxu2  ;;  %v790_v62 = vadd.f32 %v789_v2, %v2005_v46 }
 0x103   : > { %v918_v29 = vadd.f32 %v917_v36, %v1982_v12 }
 0x104   : > { %1344 = vst [vmem:[%s2083_s6 + $0x10] sm:$0xff] %v2097_v60  ;;  %1113 = vmatmul.f32.gmra.mxu0 %v1859_v13  ;;  %1188 = vmatmul.f32.gmra.mxu1 %v1847_v7 }
 0x105   : > { %v2104_v61 = vadd.f32 %v1019_v53, %v918_v29  ;;  %1326 = vmatmul.f32.gmra.mxu3 %v1849_v8 }
 0x106   : > { %1264 = vmatmul.f32.gmra.mxu2 %v1849_v8 }
 0x108   : > { %v1023_v1 = vpop.f32.mrf.mxu3 }
 0x109   : > { %v793_v34 = vpop.f32.mrf.mxu0  ;;  %v851_v16 = vpop.f32.mrf.mxu1 }
 0x10a   : > { %v852_v17 = vadd.f32 %v851_v16, %v790_v62  ;;  %v925_v12 = vpop.f32.mrf.mxu2  ;;  %v794_v8 = vadd.f32 %v793_v34, %v2014_v5 }
 0x10b   : > { %v926_v24 = vadd.f32 %v925_v12, %v1991_v18 }
 0x10c   : > { %1346 = vst [vmem:[%s2083_s6 + $0x20] sm:$0xff] %v852_v17  ;;  %1118 = vmatmul.f32.gmra.mxu0 %v1885_v26  ;;  %1194 = vmatmul.f32.gmra.mxu1 %v1873_v21 }
 0x10d   : > { %v2113_v7 = vadd.f32 %v1023_v1, %v926_v24  ;;  %1330 = vmatmul.f32.gmra.mxu3 %v1875_v23 }
 0x10e   : > { %1268 = vmatmul.f32.gmra.mxu2 %v1875_v23 }
 0x110   : > { %v1027_v13 = vpop.f32.mrf.mxu3 }
 0x111   : > { %v797_v46 = vpop.f32.mrf.mxu0  ;;  %v855_v41 = vpop.f32.mrf.mxu1 }
 0x112   : > { %v856_v27 = vadd.f32 %v855_v41, %v794_v8  ;;  %v933_v3 = vpop.f32.mrf.mxu2  ;;  %v798_v23 = vadd.f32 %v797_v46, %v2023_v40 }
 0x113   : > { %v934_v18 = vadd.f32 %v933_v3, %v2000_v59 }
 0x114   : > { %1348 = vst [vmem:[%s2083_s6 + $0x30] sm:$0xff] %v856_v27  ;;  %1123 = vmatmul.f32.gmra.mxu0 %v1908_v35  ;;  %1200 = vmatmul.f32.gmra.mxu1 %v1896_v31 }
 0x115   : > { %v2122_v21 = vadd.f32 %v1027_v13, %v934_v18  ;;  %1334 = vmatmul.f32.gmra.mxu3 %v1898_v32 }
 0x116   : > { %1272 = vmatmul.f32.gmra.mxu2 %v1898_v32 }
 0x118   : > { %v1031_v26 = vpop.f32.mrf.mxu3 }
 0x119   : > { %v801_v5 = vpop.f32.mrf.mxu0  ;;  %v859_v43 = vpop.f32.mrf.mxu1 }
 0x11a   : > { %v860_v38 = vadd.f32 %v859_v43, %v798_v23  ;;  %v941_v33 = vpop.f32.mrf.mxu2  ;;  %v802_v32 = vadd.f32 %v801_v5, %v2032_v4 }
 0x11b   : > { %v942_v59 = vadd.f32 %v941_v33, %v2009_v0 }
 0x11c   : > { %1350 = vst [vmem:[%s2083_s6 + $0x40] sm:$0xff] %v860_v38  ;;  %1128 = vmatmul.f32.gmra.mxu0 %v1928_v49  ;;  %1206 = vmatmul.f32.gmra.mxu1 %v1919_v42 }
 0x11d   : > { %v2131_v31 = vadd.f32 %v1031_v26, %v942_v59  ;;  %1338 = vmatmul.f32.gmra.mxu3 %v1921_v44 }
 0x11e   : > { %1276 = vmatmul.f32.gmra.mxu2 %v1921_v44 }
 0x120   : > { %v1035_v35 = vpop.f32.mrf.mxu3 }
 0x121   : > { %v805_v40 = vpop.f32.mrf.mxu0  ;;  %v863_v19 = vpop.f32.mrf.mxu1 }
 0x122   : > { %v864_v45 = vadd.f32 %v863_v19, %v802_v32  ;;  %v949_v52 = vpop.f32.mrf.mxu2  ;;  %v806_v49 = vadd.f32 %v805_v40, %v2041_v6 }
 0x123   : > { %v950_v0 = vadd.f32 %v949_v52, %v2018_v39 }
 0x124   : > { %1352 = vst [vmem:[%s2083_s6 + $0x50] sm:$0xff] %v864_v45  ;;  %1212 = vmatmul.f32.gmra.mxu1 %v1938_v56 }
 0x125   : > { %v2139_v42 = vadd.f32 %v1035_v35, %v950_v0 }
 0x128   : > { %v1039_v57 = vpop.f32.mrf.mxu3 }
 0x129   : > { %v809_v44 = vpop.f32.mrf.mxu0  ;;  %v867_v51 = vpop.f32.mrf.mxu1 }
 0x12a   : > { %v868_v4 = vadd.f32 %v867_v51, %v806_v49  ;;  %v957_v48 = vpop.f32.mrf.mxu2  ;;  %v810_v39 = vadd.f32 %v809_v44, %v2050_v9 }
 0x12b   : > { %v958_v14 = vadd.f32 %v957_v48, %v2027_v30 }
 0x12c   : > { %1354 = vst [vmem:[%s2083_s6 + $0x60] sm:$0xff] %v868_v4 }
 0x12d   : > { %v2144_v58 = vadd.f32 %v1039_v57, %v958_v14 }
 0x130   : > { %v1043_v54 = vpop.f32.mrf.mxu3 }
 0x131   : > { %v813_v56 = vpop.f32.mrf.mxu0  ;;  %v871_v20 = vpop.f32.mrf.mxu1 }
 0x132   : > { %v872_v15 = vadd.f32 %v871_v20, %v810_v39  ;;  %v965_v53 = vpop.f32.mrf.mxu2  ;;  %v814_v11 = vadd.f32 %v813_v56, %v2059_v22 }
 0x133   : > { %v966_v6 = vadd.f32 %v965_v53, %v2036_v25 }
 0x134   : > { %1356 = vst [vmem:[%s2083_s6 + $0x70] sm:$0xff] %v872_v15 }
 0x135   : > { %v2149_v2 = vadd.f32 %v1043_v54, %v966_v6 }
 0x138   : > { %v1047_v30 = vpop.f32.mrf.mxu3 }
 0x139   : > { %v817_v36 = vpop.f32.mrf.mxu0  ;;  %v875_v29 = vpop.f32.mrf.mxu1 }
 0x13a   : > { %v876_v62 = vadd.f32 %v875_v29, %v814_v11  ;;  %v973_v1 = vpop.f32.mrf.mxu2  ;;  %v818_v16 = vadd.f32 %v817_v36, %v2068_v37 }
 0x13b   : > { %v974_v9 = vadd.f32 %v973_v1, %v2045_v50 }
 0x13c   : > { %1358 = vst [vmem:[%s2083_s6 + $0x80] sm:$0xff] %v876_v62 }
 0x13d   : > { %v2154_v34 = vadd.f32 %v1047_v30, %v974_v9 }
 0x140   : > { %v1051_v25 = vpop.f32.mrf.mxu3 }
 0x141   : > { %v821_v17 = vpop.f32.mrf.mxu0  ;;  %v879_v12 = vpop.f32.mrf.mxu1 }
 0x142   : > { %v880_v24 = vadd.f32 %v879_v12, %v818_v16  ;;  %v981_v8 = vpop.f32.mrf.mxu2  ;;  %v822_v46 = vadd.f32 %v821_v17, %v2076_v47 }
 0x143   : > { %v982_v22 = vadd.f32 %v981_v8, %v2054_v63 }
 0x144   : > { %1360 = vst [vmem:[%s2083_s6 + $0x90] sm:$0xff] %v880_v24 }
 0x145   : > { %v2159_v13 = vadd.f32 %v1051_v25, %v982_v22 }
 0x148   : > { %v1055_v41 = vpop.f32.mrf.mxu3 }
 0x149   : > { %v883_v50 = vpop.f32.mrf.mxu1  ;;  %v1079_v27 = vpop.f32.mrf.mxu0 }
 0x14a   : > { %v884_v3 = vadd.f32 %v883_v50, %v822_v46  ;;  %v989_v18 = vpop.f32.mrf.mxu2  ;;  %v1080_v26 = vadd.f32 %v1079_v27, %v2092_v55 }
 0x14b   : > { %v990_v37 = vadd.f32 %v989_v18, %v2063_v28  ;;  %v1373_v28 = vmul.f32 %v2085_v10, %v2085_v10 }
 0x14c   : > { %1362 = vst [vmem:[%s2083_s6 + $0xa0] sm:$0xff] %v884_v3 }
 0x14d   : > { %v2164_v23 = vadd.f32 %v1055_v41, %v990_v37 }
 0x150   : > { %v1299_v5 = vpop.f32.mrf.mxu3 }
 0x151   : > { %v1084_v63 = vpop.f32.mrf.mxu0  ;;  %v1153_v43 = vpop.f32.mrf.mxu1 }
 0x152   : > { %v1154_v38 = vadd.f32 %v1153_v43, %v1080_v26  ;;  %v1237_v33 = vpop.f32.mrf.mxu2  ;;  %v1085_v32 = vadd.f32 %v1084_v63, %v2104_v61 }
 0x154   : > { %v1238_v59 = vadd.f32 %v1237_v33, %v1154_v38 }
 0x156   : > { %v1300_v47 = vadd.f32 %v1299_v5, %v1238_v59 }
 0x158   : > { %1343 = vst [vmem:[%s2083_s6 + $0x8] sm:$0xff] %v1300_v47  ;;  %v1364_v35 = vadd.f32 %v1300_v47, %v2085_v10  ;;  %v1374_v40 = vmul.f32 %v1300_v47, %v1300_v47  ;;  %v1303_v19 = vpop.f32.mrf.mxu3  ;;  %v1375_v10 = vmul.f32 %v2097_v60, %v2097_v60 }
 0x159   : > { %v1089_v45 = vpop.f32.mrf.mxu0  ;;  %v1159_v55 = vpop.f32.mrf.mxu1 }
 0x15a   : > { %v1160_v52 = vadd.f32 %v1159_v55, %v1085_v32  ;;  %1365 = vadd.xlane.f32.xlu2 %v1364_v35  ;;  %v1241_v0 = vpop.f32.mrf.mxu2  ;;  %v1377_v49 = vadd.f32 %v1374_v40, %v1373_v28  ;;  %v1090_v61 = vadd.f32 %v1089_v45, %v2113_v7 }
 0x15c   : > { %v1242_v57 = vadd.f32 %v1241_v0, %v1160_v52  ;;  %1378 = vadd.xlane.f32.xlu1 %v1377_v49 }
 0x15e   : > { %v1304_v44 = vadd.f32 %v1303_v19, %v1242_v57 }
 0x160   : > { %1345 = vst [vmem:[%s2083_s6 + $0x18] sm:$0xff] %v1304_v44  ;;  %v1367_v51 = vadd.f32 %v1304_v44, %v2097_v60  ;;  %v1376_v4 = vmul.f32 %v1304_v44, %v1304_v44  ;;  %v1307_v48 = vpop.f32.mrf.mxu3 }
 0x161   : > { %v1094_v14 = vpop.f32.mrf.mxu0  ;;  %v1165_v39 = vpop.f32.mrf.mxu1 }
 0x162   : > { %v1166_v54 = vadd.f32 %v1165_v39, %v1090_v61  ;;  %1368 = vadd.xlane.f32.xlu0 %v1367_v51  ;;  %v1245_v56 = vpop.f32.mrf.mxu2  ;;  %v1380_v20 = vadd.f32 %v1376_v4, %v1375_v10  ;;  %v1095_v7 = vadd.f32 %v1094_v14, %v2122_v21 }
 0x164   : > { %v1246_v15 = vadd.f32 %v1245_v56, %v1166_v54  ;;  %1381 = vadd.xlane.f32.xlu2 %v1380_v20 }
 0x166   : > { %v1308_v53 = vadd.f32 %v1307_v48, %v1246_v15 }
 0x168   : > { %1347 = vst [vmem:[%s2083_s6 + $0x28] sm:$0xff] %v1308_v53  ;;  %v1311_v6 = vpop.f32.mrf.mxu3 }
 0x169   : > { %v1099_v11 = vpop.f32.mrf.mxu0  ;;  %v1171_v30 = vpop.f32.mrf.mxu1 }
 0x16a   : > { %v1172_v60 = vadd.f32 %v1171_v30, %v1095_v7  ;;  %v1249_v36 = vpop.f32.mrf.mxu2  ;;  %v1100_v1 = vadd.f32 %v1099_v11, %v2131_v31 }
 0x16c   : > { %v1250_v29 = vadd.f32 %v1249_v36, %v1172_v60 }
 0x16e   : > { %v1312_v62 = vadd.f32 %v1311_v6, %v1250_v29 }
 0x170   : > { %1349 = vst [vmem:[%s2083_s6 + $0x38] sm:$0xff] %v1312_v62  ;;  %v1315_v9 = vpop.f32.mrf.mxu3 }
 0x171   : > { %v1104_v16 = vpop.f32.mrf.mxu0  ;;  %v1177_v25 = vpop.f32.mrf.mxu1 }
 0x172   : > { %v1178_v17 = vadd.f32 %v1177_v25, %v1100_v1  ;;  %v1253_v12 = vpop.f32.mrf.mxu2  ;;  %v1105_v8 = vadd.f32 %v1104_v16, %v2139_v42 }
 0x174   : > { %v1254_v24 = vadd.f32 %v1253_v12, %v1178_v17 }
 0x176   : > { %v1316_v21 = vadd.f32 %v1315_v9, %v1254_v24 }
 0x178   : > { %1351 = vst [vmem:[%s2083_s6 + $0x48] sm:$0xff] %v1316_v21  ;;  %v1319_v22 = vpop.f32.mrf.mxu3 }
 0x179   : > { %v1109_v46 = vpop.f32.mrf.mxu0  ;;  %v1183_v41 = vpop.f32.mrf.mxu1 }
 0x17a   : > { %v1184_v50 = vadd.f32 %v1183_v41, %v1105_v8  ;;  %v1257_v27 = vpop.f32.mrf.mxu2  ;;  %v1110_v18 = vadd.f32 %v1109_v46, %v2144_v58 }
 0x17c   : > { %v1258_v3 = vadd.f32 %v1257_v27, %v1184_v50 }
 0x17e   : > { %v1320_v31 = vadd.f32 %v1319_v22, %v1258_v3 }
 0x180   : > { %1353 = vst [vmem:[%s2083_s6 + $0x58] sm:$0xff] %v1320_v31  ;;  %v1323_v37 = vpop.f32.mrf.mxu3 }
 0x181   : > { %v1114_v26 = vpop.f32.mrf.mxu0  ;;  %v1189_v5 = vpop.f32.mrf.mxu1 }
 0x182   : > { %v1190_v63 = vadd.f32 %v1189_v5, %v1110_v18  ;;  %v1261_v43 = vpop.f32.mrf.mxu2  ;;  %v1115_v33 = vadd.f32 %v1114_v26, %v2149_v2 }
 0x184   : > { %v1262_v38 = vadd.f32 %v1261_v43, %v1190_v63 }
 0x186   : > { %v1324_v42 = vadd.f32 %v1323_v37, %v1262_v38 }
 0x188   : > { %1355 = vst [vmem:[%s2083_s6 + $0x68] sm:$0xff] %v1324_v42  ;;  %v1327_v59 = vpop.f32.mrf.mxu3 }
 0x189   : > { %v1119_v47 = vpop.f32.mrf.mxu0  ;;  %v1195_v32 = vpop.f32.mrf.mxu1 }
 0x18a   : > { %v1196_v35 = vadd.f32 %v1195_v32, %v1115_v33  ;;  %v1265_v28 = vpop.f32.mrf.mxu2  ;;  %v1120_v19 = vadd.f32 %v1119_v47, %v2154_v34 }
 0x18c   : > { %v1266_v40 = vadd.f32 %v1265_v28, %v1196_v35 }
 0x18e   : > { %v1328_v58 = vadd.f32 %v1327_v59, %v1266_v40 }
 0x190   : > { %1357 = vst [vmem:[%s2083_s6 + $0x78] sm:$0xff] %v1328_v58  ;;  %v1331_v45 = vpop.f32.mrf.mxu3 }
 0x191   : > { %v1201_v55 = vpop.f32.mrf.mxu1  ;;  %v1124_v49 = vpop.f32.mrf.mxu0 }
 0x192   : > { %v1202_v52 = vadd.f32 %v1201_v55, %v1120_v19  ;;  %v1269_v0 = vpop.f32.mrf.mxu2  ;;  %v1125_v44 = vadd.f32 %v1124_v49, %v2159_v13 }
 0x194   : > { %v1270_v57 = vadd.f32 %v1269_v0, %v1202_v52 }
 0x196   : > { %v1332_v2 = vadd.f32 %v1331_v45, %v1270_v57 }
 0x198   : > { %1359 = vst [vmem:[%s2083_s6 + $0x88] sm:$0xff] %v1332_v2  ;;  %v1335_v51 = vpop.f32.mrf.mxu3 }
 0x199   : > { %v1207_v61 = vpop.f32.mrf.mxu1  ;;  %v1129_v34 = vpop.f32.mrf.mxu0 }
 0x19a   : > { %v1208_v10 = vadd.f32 %v1207_v61, %v1125_v44  ;;  %v1273_v4 = vpop.f32.mrf.mxu2  ;;  %v1130_v39 = vadd.f32 %v1129_v34, %v2164_v23 }
 0x19c   : > { %v1274_v48 = vadd.f32 %v1273_v4, %v1208_v10 }
 0x19e   : > { %v1336_v14 = vadd.f32 %v1335_v51, %v1274_v48 }
 0x1a0   : > { %1361 = vst [vmem:[%s2083_s6 + $0x98] sm:$0xff] %v1336_v14  ;;  %v1339_v15 = vpop.f32.mrf.mxu3 }
 0x1a1   : > { %v1213_v54 = vpop.f32.mrf.mxu1 }
 0x1a2   : > { %v1214_v56 = vadd.f32 %v1213_v54, %v1130_v39  ;;  %v1277_v20 = vpop.f32.mrf.mxu2 }
 0x1a4   : > { %v1278_v53 = vadd.f32 %v1277_v20, %v1214_v56 }
 0x1a6   : > { %v1340_v7 = vadd.f32 %v1339_v15, %v1278_v53 }
 0x1a8   : > { %1363 = vst [vmem:[%s2083_s6 + $0xa8] sm:$0xff] %v1340_v7 }
 0x1cd   : > { %v1366_v13 = vpop.xlane.xlu2 %1365 }
 0x1ce   : > { %1371 = vst.msk [vmem:[%s299_s10] sm:$0xff] %vm1370_vm2, %v1366_v13 }
 0x1cf   : > { %v1379_v23 = vpop.xlane.xlu1 %1378 }
 0x1d0   : > { %1383 = vst.msk [vmem:[%s308_s13] sm:$0xff] %vm1370_vm2, %v1379_v23 }
 0x1d5   : > { %v1369_v6 = vpop.xlane.xlu0 %1368 }
 0x1d6   : > { %1372 = vst.msk [vmem:[%s299_s10 + $0x8] sm:$0xff] %vm1370_vm2, %v1369_v6 }
 0x1d7   : > { %v1382_v11 = vpop.xlane.xlu2 %1381 }
 0x1d8   : > { %1384 = vst.msk [vmem:[%s308_s13 + $0x8] sm:$0xff] %vm1370_vm2, %v1382_v11 }
 0x1d9 PF: > { %s16_s20 = sadd.s32 1, %s1646_s20   ;;  %s2216_s18 = smov %s1642_s19 }
 0x1da   : > { %p13_p5 = scmp.ge.s32.totalorder %s16_s20, 4   ;;  %s2217_s19 = smov %s2219_s21 }
 0x1dc   :  { %15 = sbr.rel (!%p13_p5) target bundleno = 2 (0x2), region = 86 }

// kernel: unit_gcn_forward.4
= control target key start
LH: loop header
LB: loop body
LE: loop exit
PB: predicated region body
PF: predicated region fallthrough
CT: control target
= control target key end

     0   :  { %s3228_s24 = smov 0   ;;  %s3230_s25 = smov 0   ;;  %s4838_s0 = inlined_call_operand.vmem [shape: f32[2,1408,16], index: 0, kind: input, shape index: {}, may-alias: {0,1,2}]   ;;  %s4839_s1 = inlined_call_operand.vmem [shape: f32[2,1408,16], index: 1, kind: input, shape index: {}, may-alias: {0,1,2}]   ;;  %s4840_s2 = inlined_call_operand.vmem [shape: f32[2,1408,16], index: 2, kind: input, shape index: {}, may-alias: {0,1,2}]   ;;  %s4841_s3 = inlined_call_operand.vmem [shape: f32[3,16,16], index: 3, kind: input, shape index: {}]   ;;  %s4842_s4 = inlined_call_operand.vmem [shape: f32[256,1], index: 4, kind: input, shape index: {}]   ;;  %s4843_s5 = inlined_call_operand.vmem [shape: f32[2,256,16], index: 5, kind: output, shape index: {0}]   ;;  %s4844_s6 = inlined_call_operand.vmem [shape: f32[2,256,1], index: 6, kind: output, shape index: {1}]   ;;  %s4845_s7 = inlined_call_operand.vmem [shape: f32[2,256,1], index: 7, kind: output, shape index: {2}]  }
   0x1   :  { %s3232_s26 = smov 0   ;;  %s3234_s27 = smov 0  }
   0x2   :  { %s3236_s28 = smov 0  }
   0x3 LB: > { %s30_s29 = sadd.s32 1, %s3177_s26  ;;  %s37_s30 = sadd.s32 1, %s3181_s27  ;;  %s3185_s28 = sphi %s3236_s28, %s18_s28   ;;  %s3181_s27 = sphi %s3234_s27, %s4997_s27   ;;  %s3177_s26 = sphi %s3232_s26, %s4996_s26   ;;  %s3173_s25 = sphi %s3230_s25, %s4995_s25   ;;  %s3169_s24 = sphi %s3228_s24, %s4994_s24  }
   0x4   : > { %p31_p0 = scmp.ge.s32.totalorder %s30_s29, 3  ;;  %p3062_p1 = scmp.ge.s32.totalorder %s3185_s28, 1 }
   0x5   : > { %p353_p2 = scmp.lt.s32.totalorder %s3185_s28, 7 }
   0x6   : > { %s4999_s29 = smov (%p31_p0, %s30_s29), 0  ;;  %s5001_s30 = smov (!%p31_p0, %s37_s30), %s3181_s27 }
   0x7   : > { %p354_p3 = pnand %p3062_p1, %p353_p2  ;;  %p39_p4 = scmp.ge.s32.totalorder %s5001_s30, 2 }
   0x9   : > { %s5003_s30 = smov (%p39_p4, %s5001_s30), 0  ;;  %357 = sbr.rel (%p354_p3) target bundleno = 1471 (0x5bf), region = 40 }
   0xe   : > { %s3081_s8 = sshll.u32 %s3169_s24, 3  ;;  %p449_p5 = scmp.lt.s32.totalorder %s3173_s25, 1  ;;  %vm582_vm0 = vcmask 523264   ;;  %vm859_vm1 = vcmask 130048  }
   0xf   : > { %s3082_s9 = sadd.s32 128, %s3081_s8  ;;  %p493_p9 = scmp.lt.s32.totalorder %s3169_s24, 2 }
  0x10   : > { %s5005_s25 = smov (!%p449_p5, %s3173_s25), 1  ;;  %p451_p6 = scmp.lt.s32.totalorder %s3082_s9, 175 }
  0x11   : > { %s3261_s10 = smul.u32 176, %s5005_s25  ;;  %s3088_s16 = sshll.u32 %s5005_s25, 8 }
  0x12   : > { %s5007_s9 = smov (!%p451_p6, %s3082_s9), 175  ;;  %s3273_s19 = scalar_lea.vmem %s4843_s5, %s3088_s16 }
  0x13   : > { %s454_s11 = sadd.s32 %s3261_s10, %s5007_s9  ;;  %s3278_s22 = scalar_lea.vmem %s4844_s6, %s3088_s16 }
  0x14   : > { %s3064_s12 = sshll.u32 %s454_s11, 3  ;;  %s3283_s11 = scalar_lea.vmem %s4845_s7, %s3088_s16 }
  0x15   : > { %s3267_s15 = scalar_lea.vmem %s4838_s0, %s3064_s12  ;;  %s3084_s12 = sadd.s32 152, %s3081_s8 }
  0x16   : > { %v534_v0 = vld [vmem:[%s3267_s15] sm:$0xff]  ;;  %v535_v1 = vld [vmem:[%s3267_s15 + $0x8] sm:$0xff]  ;;  %p463_p7 = scmp.lt.s32.totalorder %s3084_s12, 175  ;;  %v536_v2 = vld [vmem:[%s3267_s15 + $0x10] sm:$0xff]  ;;  %s3085_s8 = sshll.u32 %s3169_s24, 5 }
  0x17   : > { %550 = vxpose.xlu0.b32.start [1/8] (short) (narrow) %v534_v0, 16  ;;  %v537_v3 = vld [vmem:[%s3267_s15 + $0x18] sm:$0xff]  ;;  %v538_v21 = vld [vmem:[%s3267_s15 + $0x20] sm:$0xff]  ;;  %v539_v37 = vld [vmem:[%s3267_s15 + $0x28] sm:$0xff]  ;;  %p3077_p10 = scmp.ne.s32.totalorder %s3169_s24, 0 }
  0x18   : > { %s5009_s12 = smov (!%p463_p7, %s3084_s12), 175  ;;  %v540_v42 = vld [vmem:[%s3267_s15 + $0x30] sm:$0xff]  ;;  %v541_v43 = vld [vmem:[%s3267_s15 + $0x38] sm:$0xff]  ;;  %s3086_s15 = sadd.s32 32, %s3085_s8 }
  0x19   : > { %s466_s25 = sadd.s32 %s3261_s10, %s5009_s12  ;;  %p480_p8 = scmp.lt.s32.totalorder %s3086_s15, 175 }
  0x1a   : > { %s3066_s13 = sshll.u32 %s466_s25, 3 }
  0x1b   : > { %s3292_s18 = scalar_lea.vmem %s4839_s1, %s3066_s13  ;;  %s5011_s15 = smov (!%p480_p8, %s3086_s15), 175 }
  0x1c   : > { %v549_v4 = vld [vmem:[%s3292_s18 + $0x38] sm:$0xff]  ;;  %v548_v5 = vld [vmem:[%s3292_s18 + $0x30] sm:$0xff]  ;;  %v547_v6 = vld [vmem:[%s3292_s18 + $0x28] sm:$0xff]  ;;  %s483_s16 = sadd.s32 %s3261_s10, %s5011_s15 }
  0x1d   : > { %v3297_v7 = vand.u32 4294901760, %v549_v4  ;;  %v3299_v8 = vand.u32 4294901760, %v548_v5  ;;  %v3301_v9 = vand.u32 4294901760, %v547_v6  ;;  %v546_v10 = vld [vmem:[%s3292_s18 + $0x20] sm:$0xff]  ;;  %v545_v11 = vld [vmem:[%s3292_s18 + $0x18] sm:$0xff]  ;;  %v544_v12 = vld [vmem:[%s3292_s18 + $0x10] sm:$0xff] }
  0x1e   : > { %v3306_v13 = vand.u32 4294901760, %v546_v10  ;;  %v3308_v14 = vand.u32 4294901760, %v545_v11  ;;  %v3310_v15 = vand.u32 4294901760, %v544_v12  ;;  %v543_v44 = vld [vmem:[%s3292_s18 + $0x8] sm:$0xff]  ;;  %v542_v46 = vld [vmem:[%s3292_s18] sm:$0xff]  ;;  %s3068_s20 = sshll.u32 %s483_s16, 3 }
  0x1f   : > { %551 = vxpose.xlu0.b32.cont [2/8] (short) (narrow) %v535_v1, 16  ;;  %v3313_v16 = vsub.f32 %v549_v4, %v3297_v7  ;;  %v3316_v17 = vsub.f32 %v548_v5, %v3299_v8  ;;  %v3319_v18 = vsub.f32 %v547_v6, %v3301_v9  ;;  %747 = vmatpush.msra.mxu3 %v3297_v7  ;;  %v609_v45 = vand.u32 4294901760, %v543_v44  ;;  %s3393_s9 = scalar_lea.vmem %s4840_s2, %s3068_s20 }
  0x20   : > { %598 = vmatpush.msra.mxu0 %v3297_v7  ;;  %v3324_v19 = vsub.f32 %v546_v10, %v3306_v13  ;;  %v3327_v20 = vsub.f32 %v545_v11, %v3308_v14  ;;  %v3336_v25 = vsub.f32 %v544_v12, %v3310_v15  ;;  %v611_v48 = vand.u32 4294901760, %v542_v46  ;;  %s494_s10 = scalar_select %p493_p9, %s3169_s24, 2 }
  0x21   : > { %v640_v22 = vand.u32 4294901760, %v3313_v16  ;;  %v646_v23 = vand.u32 4294901760, %v3316_v17  ;;  %705 = vmatpush.msra.mxu2 %v3313_v16  ;;  %v652_v24 = vand.u32 4294901760, %v3319_v18  ;;  %749 = vmatpush.msra.mxu3 %v3299_v8  ;;  %v675_v47 = vsub.f32 %v543_v44, %v609_v45 }
  0x22   : > { %v658_v26 = vand.u32 4294901760, %v3324_v19  ;;  %600 = vmatpush.msra.mxu0 %v3299_v8  ;;  %v664_v30 = vand.u32 4294901760, %v3327_v20  ;;  %v670_v34 = vand.u32 4294901760, %v3336_v25  ;;  %v681_v50 = vsub.f32 %v542_v46, %v611_v48  ;;  %s3087_s12 = sshll.u32 %s494_s10, 4 }
  0x23   : > { %v641_v27 = vsub.f32 %v3313_v16, %v640_v22  ;;  %v647_v28 = vsub.f32 %v3316_v17, %v646_v23  ;;  %v653_v29 = vsub.f32 %v3319_v18, %v652_v24  ;;  %708 = vmatpush.msra.mxu2 %v3316_v17  ;;  %751 = vmatpush.msra.mxu3 %v3301_v9  ;;  %v676_v49 = vand.u32 4294901760, %v675_v47  ;;  %s497_s14 = scalar_lea.vmem %s4841_s3, %s3087_s12 }
  0x24   : > { %602 = vmatpush.msra.mxu0 %v3301_v9  ;;  %v659_v33 = vsub.f32 %v3324_v19, %v658_v26  ;;  %v665_v36 = vsub.f32 %v3327_v20, %v664_v30  ;;  %v671_v39 = vsub.f32 %v3336_v25, %v670_v34  ;;  %v682_v52 = vand.u32 4294901760, %v681_v50 }
  0x25   : > { %v642_v31 = vand.u32 4294901760, %v641_v27  ;;  %v648_v32 = vand.u32 4294901760, %v647_v28  ;;  %711 = vmatpush.msra.mxu2 %v3319_v18  ;;  %753 = vmatpush.msra.mxu3 %v3306_v13  ;;  %v654_v35 = vand.u32 4294901760, %v653_v29  ;;  %v677_v51 = vsub.f32 %v675_v47, %v676_v49 }
  0x26   : > { %604 = vmatpush.msra.mxu0 %v3306_v13  ;;  %v660_v38 = vand.u32 4294901760, %v659_v33  ;;  %v666_v40 = vand.u32 4294901760, %v665_v36  ;;  %v672_v41 = vand.u32 4294901760, %v671_v39  ;;  %v683_v54 = vsub.f32 %v681_v50, %v682_v52 }
  0x27   : > { %552 = vxpose.xlu0.b32.cont [3/8] (short) (narrow) %v536_v2, 16  ;;  %643 = vmatpush.msra.mxu1 %v642_v31  ;;  %v678_v53 = vand.u32 4294901760, %v677_v51 }
  0x28   : > { %714 = vmatpush.msra.mxu2 %v3324_v19  ;;  %755 = vmatpush.msra.mxu3 %v3308_v14  ;;  %v684_v55 = vand.u32 4294901760, %v683_v54  ;;  %v904_v54 = vld [vmem:[%s3393_s9] sm:$0xff] }
  0x29   : > { %606 = vmatpush.msra.mxu0 %v3308_v14  ;;  %649 = vmatpush.msra.mxu1 %v648_v32 }
  0x2a   : > { %717 = vmatpush.msra.mxu2 %v3327_v20  ;;  %757 = vmatpush.msra.mxu3 %v3310_v15 }
  0x2b   : > { %608 = vmatpush.msra.mxu0 %v3310_v15  ;;  %655 = vmatpush.msra.mxu1 %v654_v35 }
  0x2c   : > { %720 = vmatpush.msra.mxu2 %v3336_v25  ;;  %759 = vmatpush.msra.mxu3 %v609_v45 }
  0x2d   : > { %661 = vmatpush.msra.mxu1 %v660_v38  ;;  %610 = vmatpush.msra.mxu0 %v609_v45 }
  0x2e   : > { %723 = vmatpush.msra.mxu2 %v675_v47  ;;  %761 = vmatpush.msra.mxu3 %v611_v48 }
  0x2f   : > { %553 = vxpose.xlu0.b32.cont [4/8] (short) (narrow) %v537_v3, 16  ;;  %667 = vmatpush.msra.mxu1 %v666_v40 }
  0x30   : > { %612 = vmatpush.msra.mxu0 %v611_v48  ;;  %726 = vmatpush.msra.mxu2 %v681_v50 }
  0x31   : > { %673 = vmatpush.msra.mxu1 %v672_v41 }
  0x32   : > { %786 = vmatpush.msrb.mxu0 %v640_v22 }
  0x33   : > { %679 = vmatpush.msra.mxu1 %v678_v53 }
  0x34   : > { %790 = vmatpush.msrb.mxu0 %v646_v23 }
  0x35   : > { %685 = vmatpush.msra.mxu1 %v684_v55  ;;  %v919_v55 = vld [vmem:[%s3393_s9 + $0x78] sm:$0xff] }
  0x36   : > { %794 = vmatpush.msrb.mxu0 %v652_v24 }
  0x37   : > { %554 = vxpose.xlu0.b32.cont [5/8] (short) (narrow) %v538_v21, 16  ;;  %833 = vmatpush.msrb.mxu1 %v3297_v7 }
  0x38   : > { %798 = vmatpush.msrb.mxu0 %v658_v26 }
  0x39   : > { %835 = vmatpush.msrb.mxu1 %v3299_v8 }
  0x3a   : > { %802 = vmatpush.msrb.mxu0 %v664_v30 }
  0x3b   : > { %837 = vmatpush.msrb.mxu1 %v3301_v9 }
  0x3c   : > { %806 = vmatpush.msrb.mxu0 %v670_v34 }
  0x3d   : > { %839 = vmatpush.msrb.mxu1 %v3306_v13 }
  0x3e   : > { %810 = vmatpush.msrb.mxu0 %v676_v49 }
  0x3f   : > { %555 = vxpose.xlu0.b32.cont [6/8] (short) (narrow) %v539_v37, 16  ;;  %841 = vmatpush.msrb.mxu1 %v3308_v14 }
  0x40   : > { %814 = vmatpush.msrb.mxu0 %v682_v52 }
  0x41   : > { %843 = vmatpush.msrb.mxu1 %v3310_v15 }
  0x43   : > { %845 = vmatpush.msrb.mxu1 %v609_v45 }
  0x45   : > { %847 = vmatpush.msrb.mxu1 %v611_v48 }
  0x47   : > { %556 = vxpose.xlu0.b32.cont [7/8] (short) (narrow) %v540_v42, 16 }
  0x4f   : > { %557 = vxpose.xlu0.b32.end [8/8] (short) (narrow) %v541_v43, 16 }
  0xbb   : > { %v566_v56 = vpop.trf.xlu0 }
  0xbc   : > { %v584_v57 = vsel %vm582_vm0, %v566_v56, 0  ;;  %v937_v56 = vsel %vm859_vm1, %v904_v54, 0 }
  0xbd   : > { %v613_v58 = vand.u32 4294901760, %v584_v57 }
  0xbf   : > { %v614_v59 = vsub.f32 %v584_v57, %v613_v58  ;;  %687 = vmatmul.f32.vlgmr.msra.gmra.mxu1 %v613_v58  ;;  %v982_v57 = vsel %vm859_vm1, %v919_v55, 0 }
  0xc1   : > { %729 = vmatmul.f32.vlgmr.msra.gmra.mxu2 %v614_v59  ;;  %v615_v60 = vand.u32 4294901760, %v614_v59 }
  0xc3   : > { %765 = vmatmul.f32.vlgmr.msra.gmra.mxu3 %v615_v60  ;;  %v567_v61 = vpop.trf.xlu0  ;;  %v616_v62 = vsub.f32 %v614_v59, %v615_v60  ;;  %v3403_v60 = vand.u32 4294901760, %v982_v57 }
  0xc4   : > { %v587_v63 = vsel %vm582_vm0, %v567_v61, 0 }
  0xc5   : > { %v621_v0 = vand.u32 4294901760, %v587_v63  ;;  %v617_v1 = vand.u32 4294901760, %v616_v62  ;;  %v905_v62 = vld [vmem:[%s3393_s9 + $0x8] sm:$0xff] }
  0xc7   : > { %v622_v2 = vsub.f32 %v587_v63, %v621_v0  ;;  %618 = vmatmul.f32.vlgmr.msra.gmra.mxu0 %v617_v1  ;;  %691 = vmatmul.f32.gmra.mxu1 %v621_v0  ;;  %v920_v63 = vld [vmem:[%s3393_s9 + $0x80] sm:$0xff] }
  0xc9   : > { %734 = vmatmul.f32.gmra.mxu2 %v622_v2  ;;  %v623_v3 = vand.u32 4294901760, %v622_v2 }
  0xcb   : > { %771 = vmatmul.f32.gmra.mxu3 %v623_v3  ;;  %v624_v4 = vsub.f32 %v622_v2, %v623_v3  ;;  %v3411_v3 = vsub.f32 %v982_v57, %v3403_v60 }
  0xcd   : > { %v625_v5 = vand.u32 4294901760, %v624_v4  ;;  %v940_v4 = vsel %vm859_vm1, %v905_v62, 0  ;;  %v908_v62 = vld [vmem:[%s3393_s9 + $0x20] sm:$0xff] }
  0xcf   : > { %626 = vmatmul.f32.gmra.mxu0 %v625_v5  ;;  %849 = vmatmul.f32.vlgmr.msrb.gmra.mxu1 %v613_v58 }
  0xd7   : > { %816 = vmatmul.f32.vlgmr.msrb.gmra.mxu0 %v613_v58  ;;  %853 = vmatmul.f32.gmra.mxu1 %v621_v0  ;;  %v3401_v58 = vand.u32 4294901760, %v937_v56 }
  0xd9   : > { %v3408_v1 = vsub.f32 %v937_v56, %v3401_v58 }
  0xdf   : > { %820 = vmatmul.f32.gmra.mxu0 %v621_v0 }
 0x13c   : > { %v688_v6 = vpop.f32.mrf.mxu1 }
 0x144   : > { %v619_v7 = vpop.f32.mrf.mxu0  ;;  %v692_v8 = vpop.f32.mrf.mxu1 }
 0x145   : > { %v730_v9 = vpop.f32.mrf.mxu2  ;;  %v689_v11 = vadd.f32 %v688_v6, %v619_v7  ;;  %v985_v7 = vsel %vm859_vm1, %v920_v63, 0  ;;  %v923_v63 = vld [vmem:[%s3393_s9 + $0x98] sm:$0xff] }
 0x146   : > { %v766_v12 = vpop.f32.mrf.mxu3 }
 0x147   : > { %v731_v13 = vadd.f32 %v730_v9, %v689_v11  ;;  %v4868_v9 = vand.u32 4294901760, %v3408_v1 }
 0x149   : > { %v767_v17 = vadd.f32 %v766_v12, %v731_v13  ;;  %v4854_v12 = vand.u32 4294901760, %v3411_v3  ;;  %v3422_v13 = vand.u32 4294901760, %v985_v7 }
 0x14c   : > { %v627_v10 = vpop.f32.mrf.mxu0  ;;  %v850_v15 = vpop.f32.mrf.mxu1 }
 0x14d   : > { %v693_v14 = vadd.f32 %v692_v8, %v627_v10  ;;  %v735_v18 = vpop.f32.mrf.mxu2  ;;  %v3419_v10 = vand.u32 4294901760, %v940_v4 }
 0x14e   : > { %v772_v21 = vpop.f32.mrf.mxu3 }
 0x14f   : > { %v736_v19 = vadd.f32 %v735_v18, %v693_v14  ;;  %v906_v18 = vld [vmem:[%s3393_s9 + $0x10] sm:$0xff] }
 0x151   : > { %v773_v22 = vadd.f32 %v772_v21, %v736_v19  ;;  %v921_v19 = vld [vmem:[%s3393_s9 + $0x88] sm:$0xff] }
 0x154   : > { %v817_v16 = vpop.f32.mrf.mxu0  ;;  %v854_v26 = vpop.f32.mrf.mxu1 }
 0x155   : > { %v818_v20 = vadd.f32 %v817_v16, %v767_v17  ;;  %v900_v17 = vld [vmem:[%s497_s14] sm:$0xff] }
 0x157   : > { %v851_v23 = vadd.f32 %v850_v15, %v818_v20  ;;  %v901_v15 = vld [vmem:[%s497_s14 + $0x8] sm:$0xff] }
 0x159   : > { %v857_v27 = vmul.f32 0.015625, %v851_v23  ;;  %v3430_v23 = vsub.f32 %v940_v4, %v3419_v10 }
 0x15b   : > { %v860_v30 = vsel %vm859_vm1, %v857_v27, -inf }
 0x15c   : > { %v821_v24 = vpop.f32.mrf.mxu0 }
 0x15d   : > { %v822_v25 = vadd.f32 %v821_v24, %v773_v22  ;;  %v1053_v22 = vsub.f32 %v3408_v1, %v4868_v9  ;;  %v1173_v24 = vsub.f32 %v3411_v3, %v4854_v12 }
 0x15f   : > { %v855_v28 = vadd.f32 %v854_v26, %v822_v25  ;;  %v3436_v25 = vsub.f32 %v985_v7, %v3422_v13  ;;  %v994_v7 = vsel %vm859_vm1, %v923_v63, 0 }
 0x161   : > { %v858_v29 = vmul.f32 0.015625, %v855_v28  ;;  %v943_v28 = vsel %vm859_vm1, %v906_v18, 0  ;;  %v909_v18 = vld [vmem:[%s3393_s9 + $0x28] sm:$0xff] }
 0x163   : > { %v861_v31 = vsel %vm859_vm1, %v858_v29, -inf }
 0x164   : > { %v862_v32 = vmax.f32 %v860_v30, %v861_v31 }
 0x166   : > { %v863_v33 = vrot.slane %v862_v32, 4 }
 0x168   : > { %v864_v34 = vmax.f32 %v862_v32, %v863_v33  ;;  %v1054_v32 = vand.u32 4294901760, %v1053_v22  ;;  %v4866_v33 = vand.u32 4294901760, %v3430_v23 }
 0x16a   : > { %v865_v35 = vrot.slane %v864_v34, 2 }
 0x16c   : > { %v866_v36 = vmax.f32 %v864_v34, %v865_v35  ;;  %v1174_v34 = vand.u32 4294901760, %v1173_v24  ;;  %v4853_v35 = vand.u32 4294901760, %v3436_v25 }
 0x16e   : > { %v867_v37 = vrot.slane %v866_v36, 1 }
 0x170   : > { %v868_v38 = vmax.f32 %v866_v36, %v867_v37  ;;  %v3442_v36 = vand.u32 4294901760, %v943_v28 }
 0x172   : > { %v869_v39 = vsub.f32 %v857_v27, %v868_v38  ;;  %v870_v40 = vsub.f32 %v858_v29, %v868_v38  ;;  %v988_v29 = vsel %vm859_vm1, %v921_v19, 0  ;;  %v924_v19 = vld [vmem:[%s3393_s9 + $0xa0] sm:$0xff] }
 0x173   : > { %v3444_v37 = vand.u32 4294901760, %v988_v29 }
 0x174   : > { %v871_v41 = vmul.f32 1.442695, %v869_v39  ;;  %v873_v42 = vmul.f32 1.442695, %v870_v40  ;;  %v907_v40 = vld [vmem:[%s3393_s9 + $0x18] sm:$0xff] }
 0x176   : > { %3138 = vpow2.f32 %v871_v41  ;;  %v922_v41 = vld [vmem:[%s3393_s9 + $0x90] sm:$0xff] }
 0x177   : > { %3140 = vpow2.f32 %v873_v42 }
 0x17c   : > { %v3139_v43 = vpop.eup %3138 }
 0x17d   : > { %v3141_v44 = vpop.eup %3140  ;;  %v875_v45 = vsel %vm859_vm1, %v3139_v43, 0.0 }
 0x17e   : > { %v876_v46 = vsel %vm859_vm1, %v3141_v44, 0.0 }
 0x17f   : > { %v877_v47 = vadd.f32 %v876_v46, %v875_v45  ;;  %v1181_v45 = vsub.f32 %v3436_v25, %v4853_v35  ;;  %v3455_v46 = vsub.f32 %v943_v28, %v3442_v36  ;;  %v930_v35 = vld [vmem:[%s3393_s9 + $0xd0] sm:$0xff] }
 0x181   : > { %v878_v48 = vrot.slane %v877_v47, 4  ;;  %v1182_v55 = vand.u32 4294901760, %v1181_v45  ;;  %v4865_v56 = vand.u32 4294901760, %v3455_v46 }
 0x183   : > { %v879_v49 = vadd.f32 %v878_v48, %v877_v47  ;;  %v3458_v47 = vsub.f32 %v988_v29, %v3444_v37  ;;  %v946_v48 = vsel %vm859_vm1, %v907_v40, 0 }
 0x184   : > { %v3462_v54 = vand.u32 4294901760, %v946_v48 }
 0x185   : > { %v880_v50 = vrot.slane %v879_v49, 2  ;;  %v4851_v57 = vand.u32 4294901760, %v3458_v47 }
 0x187   : > { %v881_v51 = vadd.f32 %v880_v50, %v879_v49  ;;  %v1189_v4 = vsub.f32 %v3458_v47, %v4851_v57 }
 0x189   : > { %v882_v52 = vrot.slane %v881_v51, 1 }
 0x18b   : > { %v883_v53 = vadd.f32 %v882_v52, %v881_v51  ;;  %v991_v51 = vsel %vm859_vm1, %v922_v41, 0 }
 0x18d   : > { %3142 = vrcp.f32 %v883_v53  ;;  %v895_v2 = vand.u32 2147483648, %v883_v53  ;;  %v893_v6 = vand.u32 2147483647, %v883_v53  ;;  %vm889_vm3 = vweird.f32 %v883_v53 }
 0x18f   : > { %v896_v11 = vor.u32 1.1754944e-38, %v895_v2  ;;  %vm894_vm5 = vcmp.eq.f32.partialorder %v893_v6, 8.507059e+37  ;;  %v1069_v2 = vsub.f32 %v3455_v46, %v4865_v56  ;;  %v949_v6 = vsel %vm859_vm1, %v908_v62, 0  ;;  %v932_v56 = vld [vmem:[%s3393_s9 + $0xe0] sm:$0xff] }
 0x193   : > { %v3143_v59 = vpop.eup %3142 }
 0x194   : > { %v885_v61 = vmul.f32 %v3143_v59, %v883_v53  ;;  %vm890_vm2 = vweird.f32 %v3143_v59 }
 0x195   : > { %vm891_vm4 = vmor %vm889_vm3, %vm890_vm2 }
 0x196   : > { %v886_v0 = vsub.f32 1.0, %v885_v61 }
 0x198   : > { %v887_v5 = vmul.f32 %v3143_v59, %v886_v0  ;;  %v3471_v0 = vsub.f32 %v946_v48, %v3462_v54 }
 0x19a   : > { %v888_v8 = vadd.f32 %v3143_v59, %v887_v5 }
 0x19c   : > { %v892_v14 = vsel %vm891_vm4, %v3143_v59, %v888_v8  ;;  %v3466_v59 = vand.u32 4294901760, %v991_v51  ;;  %v4864_v8 = vand.u32 4294901760, %v3471_v0 }
 0x19d   : > { %v897_v16 = vsel %vm894_vm5, %v896_v11, %v892_v14  ;;  %v3487_v11 = vand.u32 4294901760, %v949_v6  ;;  %v1070_v14 = vand.u32 4294901760, %v1069_v2 }
 0x19e   : > { %v899_v20 = vmul.f32 %v3141_v44, %v897_v16  ;;  %v898_v21 = vmul.f32 %v3139_v43, %v897_v16  ;;  %v1061_v44 = vsub.f32 %v3430_v23, %v4866_v33  ;;  %v3480_v5 = vsub.f32 %v991_v51, %v3466_v59 }
 0x1a0   : > { %v903_v26 = vadd.f32 %v901_v15, %v899_v20  ;;  %v902_v27 = vadd.f32 %v900_v17, %v898_v21  ;;  %v1062_v53 = vand.u32 4294901760, %v1061_v44  ;;  %v1190_v15 = vand.u32 4294901760, %v1189_v4 }
 0x1a1   : > { %v4850_v16 = vand.u32 4294901760, %v3480_v5  ;;  %v3490_v17 = vand.u32 4294901760, %v994_v7  ;;  %v1077_v20 = vsub.f32 %v3471_v0, %v4864_v8  ;;  %v3498_v21 = vsub.f32 %v949_v6, %v3487_v11 }
 0x1a2   : > { %v1046_v30 = vand.u32 4294901760, %v903_v26  ;;  %v1048_v31 = vand.u32 4294901760, %v902_v27 }
 0x1a3   : > { %v1197_v22 = vsub.f32 %v3480_v5, %v4850_v16  ;;  %v3504_v24 = vsub.f32 %v994_v7, %v3490_v17  ;;  %v1078_v28 = vand.u32 4294901760, %v1077_v20  ;;  %v4862_v29 = vand.u32 4294901760, %v3498_v21 }
 0x1a4   : > { %1047 = vmatpush.msra.mxu0 %v1046_v30  ;;  %3091 = vmatpush.msrb.mxu2 %v1046_v30  ;;  %v1322_v38 = vsub.f32 %v903_v26, %v1046_v30  ;;  %v1328_v39 = vsub.f32 %v902_v27, %v1048_v31  ;;  %v952_v26 = vsel %vm859_vm1, %v909_v18, 0  ;;  %v997_v27 = vsel %vm859_vm1, %v924_v19, 0 }
 0x1a5   : > { %v1085_v40 = vsub.f32 %v3498_v21, %v4862_v29 }
 0x1a6   : > { %1049 = vmatpush.msra.mxu0 %v1048_v31  ;;  %3092 = vmatpush.msrb.mxu2 %v1048_v31  ;;  %v1323_v42 = vand.u32 4294901760, %v1322_v38  ;;  %v1329_v43 = vand.u32 4294901760, %v1328_v39 }
 0x1a7   : > { %1055 = vmatmul.f32.vlgmr.msra.gmra.mxu0 %v1054_v32  ;;  %1175 = vmatmul.f32.vlgmr.msrb.gmra.mxu2 %v1174_v34  ;;  %v3512_v32 = vand.u32 4294901760, %v952_v26  ;;  %v3514_v34 = vand.u32 4294901760, %v997_v27  ;;  %v1086_v48 = vand.u32 4294901760, %v1085_v40 }
 0x1a8   : > { %1478 = vmatpush.msrb.mxu0 %v1322_v38  ;;  %1871 = vmatpush.msra.mxu2 %v1323_v42  ;;  %v1324_v49 = vsub.f32 %v1322_v38, %v1323_v42  ;;  %v1330_v50 = vsub.f32 %v1328_v39, %v1329_v43  ;;  %v910_v38 = vld [vmem:[%s3393_s9 + $0x30] sm:$0xff] }
 0x1a9   : > { %v3525_v42 = vsub.f32 %v952_v26, %v3512_v32  ;;  %v955_v44 = vsel %vm859_vm1, %v910_v38, 0  ;;  %v912_v26 = vld [vmem:[%s3393_s9 + $0x40] sm:$0xff] }
 0x1aa   : > { %1481 = vmatpush.msrb.mxu0 %v1328_v39  ;;  %1875 = vmatpush.msra.mxu2 %v1329_v43  ;;  %v1325_v52 = vand.u32 4294901760, %v1324_v49  ;;  %v1331_v61 = vand.u32 4294901760, %v1330_v50  ;;  %v925_v39 = vld [vmem:[%s3393_s9 + $0xa8] sm:$0xff]  ;;  %v3528_v43 = vsub.f32 %v997_v27, %v3514_v34  ;;  %v3534_v49 = vand.u32 4294901760, %v955_v44  ;;  %v927_v27 = vld [vmem:[%s3393_s9 + $0xb8] sm:$0xff] }
 0x1ab   : > { %v1000_v45 = vsel %vm859_vm1, %v925_v39, 0  ;;  %v4860_v51 = vand.u32 4294901760, %v3525_v42  ;;  %v961_v40 = vsel %vm859_vm1, %v912_v26, 0 }
 0x1ac   : > { %1326 = vmatpush.msra.mxu1 %v1325_v52  ;;  %3093 = vmatpush.msrb.mxu3 %v1325_v52  ;;  %v4848_v52 = vand.u32 4294901760, %v3528_v43  ;;  %v3543_v62 = vsub.f32 %v955_v44, %v3534_v49 }
 0x1ad   : > { %v1093_v63 = vsub.f32 %v3525_v42, %v4860_v51 }
 0x1ae   : > { %1332 = vmatpush.msra.mxu1 %v1331_v61  ;;  %3094 = vmatpush.msrb.mxu3 %v1331_v61  ;;  %v926_v61 = vld [vmem:[%s3393_s9 + $0xb0] sm:$0xff]  ;;  %v1213_v2 = vsub.f32 %v3528_v43, %v4848_v52 }
 0x1af   : > { %1063 = vmatmul.f32.gmra.mxu0 %v1062_v53  ;;  %1183 = vmatmul.f32.gmra.mxu2 %v1182_v55  ;;  %v3538_v53 = vand.u32 4294901760, %v1000_v45  ;;  %v911_v55 = vld [vmem:[%s3393_s9 + $0x38] sm:$0xff]  ;;  %v1003_v7 = vsel %vm859_vm1, %v926_v61, 0  ;;  %v1094_v18 = vand.u32 4294901760, %v1093_v63  ;;  %v913_v63 = vld [vmem:[%s3393_s9 + $0x48] sm:$0xff] }
 0x1b0   : > { %1334 = vmatmul.f32.vlgmr.msra.gmra.mxu1 %v3401_v58  ;;  %1394 = vmatmul.f32.vlgmr.msrb.gmra.mxu3 %v3403_v60  ;;  %v958_v6 = vsel %vm859_vm1, %v911_v55, 0  ;;  %v1214_v19 = vand.u32 4294901760, %v1213_v2  ;;  %v3584_v55 = vand.u32 4294901760, %v961_v40  ;;  %v928_v2 = vld [vmem:[%s3393_s9 + $0xc0] sm:$0xff]  ;;  %v964_v26 = vsel %vm859_vm1, %v913_v63, 0 }
 0x1b1   : > { %1658 = vmatpush.msrb.mxu1 %v1046_v30  ;;  %2020 = vmatpush.msra.mxu3 %v1046_v30  ;;  %v1198_v30 = vand.u32 4294901760, %v1197_v22  ;;  %v3552_v4 = vsub.f32 %v1000_v45, %v3538_v53  ;;  %v3562_v22 = vand.u32 4294901760, %v1003_v7 }
 0x1b3   : > { %1660 = vmatpush.msrb.mxu1 %v1048_v31  ;;  %2022 = vmatpush.msra.mxu3 %v1048_v31  ;;  %v4849_v31 = vand.u32 4294901760, %v3504_v24  ;;  %v4847_v20 = vand.u32 4294901760, %v3552_v4  ;;  %4904 = vst [vmem:[#allocation2_spill] sm:$0xff] %v3562_v22  ;;  %v3576_v39 = vsub.f32 %v1003_v7, %v3562_v22 }
 0x1b5   : > { %v1205_v41 = vsub.f32 %v3504_v24, %v4849_v31  ;;  %v1221_v38 = vsub.f32 %v3552_v4, %v4847_v20  ;;  %v929_v20 = vld [vmem:[%s3393_s9 + $0xc8] sm:$0xff] }
 0x1b7   : > { %1071 = vmatmul.f32.gmra.mxu0 %v1070_v14  ;;  %1191 = vmatmul.f32.gmra.mxu2 %v1190_v15  ;;  %v1206_v50 = vand.u32 4294901760, %v1205_v41  ;;  %v4859_v14 = vand.u32 4294901760, %v3543_v62  ;;  %v3559_v15 = vand.u32 4294901760, %v958_v6  ;;  %v1006_v41 = vsel %vm859_vm1, %v927_v27, 0 }
 0x1b8   : > { %1338 = vmatmul.f32.gmra.mxu1 %v3419_v10  ;;  %1398 = vmatmul.f32.gmra.mxu3 %v3422_v13  ;;  %v3586_v61 = vand.u32 4294901760, %v1006_v41  ;;  %v1009_v27 = vsel %vm859_vm1, %v928_v2, 0 }
 0x1ba   : > { %4905 = vst [vmem:[#allocation3_spill] sm:$0xff] %v3586_v61 }
 0x1bf   : > { %1079 = vmatmul.f32.gmra.mxu0 %v1078_v28  ;;  %1199 = vmatmul.f32.gmra.mxu2 %v1198_v30  ;;  %v1101_v28 = vsub.f32 %v3543_v62, %v4859_v14  ;;  %v3570_v30 = vsub.f32 %v958_v6, %v3559_v15  ;;  %v931_v14 = vld [vmem:[%s3393_s9 + $0xd8] sm:$0xff] }
 0x1c0   : > { %1342 = vmatmul.f32.gmra.mxu1 %v3442_v36  ;;  %1402 = vmatmul.f32.gmra.mxu3 %v3444_v37 }
 0x1c1   : > { %v1102_v44 = vand.u32 4294901760, %v1101_v28  ;;  %v4857_v45 = vand.u32 4294901760, %v3570_v30 }
 0x1c3   : > { %v1109_v6 = vsub.f32 %v3570_v30, %v4857_v45 }
 0x1c5   : > { %v1110_v28 = vand.u32 4294901760, %v1109_v6 }
 0x1c7   : > { %1087 = vmatmul.f32.gmra.mxu0 %v1086_v48  ;;  %1207 = vmatmul.f32.gmra.mxu2 %v1206_v50  ;;  %v1222_v48 = vand.u32 4294901760, %v1221_v38  ;;  %v4846_v50 = vand.u32 4294901760, %v3576_v39  ;;  %v3606_v38 = vand.u32 4294901760, %v964_v26 }
 0x1c8   : > { %1346 = vmatmul.f32.gmra.mxu1 %v3462_v54  ;;  %1406 = vmatmul.f32.gmra.mxu3 %v3466_v59 }
 0x1c9   : > { %v1229_v7 = vsub.f32 %v3576_v39, %v4846_v50  ;;  %v3610_v50 = vand.u32 4294901760, %v1009_v27  ;;  %v3615_v63 = vsub.f32 %v964_v26, %v3606_v38  ;;  %v1012_v26 = vsel %vm859_vm1, %v929_v20, 0 }
 0x1cb   : > { %4906 = vst [vmem:[#allocation4_spill] sm:$0xff] %v3610_v50 }
 0x1cf   : > { %1095 = vmatmul.f32.gmra.mxu0 %v1094_v18  ;;  %1215 = vmatmul.f32.gmra.mxu2 %v1214_v19  ;;  %v3597_v18 = vsub.f32 %v961_v40, %v3584_v55  ;;  %v3600_v19 = vsub.f32 %v1006_v41, %v3586_v61  ;;  %v914_v41 = vld [vmem:[%s3393_s9 + $0x50] sm:$0xff] }
 0x1d0   : > { %1350 = vmatmul.f32.gmra.mxu1 %v3487_v11  ;;  %1410 = vmatmul.f32.gmra.mxu3 %v3490_v17  ;;  %v967_v52 = vsel %vm859_vm1, %v914_v41, 0 }
 0x1d1   : > { %v4852_v40 = vand.u32 4294901760, %v3600_v19 }
 0x1d3   : > { %v1237_v6 = vsub.f32 %v3600_v19, %v4852_v40  ;;  %v3634_v40 = vand.u32 4294901760, %v1012_v26 }
 0x1d5   : > { %v1238_v16 = vand.u32 4294901760, %v1237_v6  ;;  %4908 = vst [vmem:[#allocation6_spill] sm:$0xff] %v3634_v40 }
 0x1d7   : > { %1103 = vmatmul.f32.gmra.mxu0 %v1102_v44  ;;  %1223 = vmatmul.f32.gmra.mxu2 %v1222_v48  ;;  %v1230_v44 = vand.u32 4294901760, %v1229_v7  ;;  %v4856_v48 = vand.u32 4294901760, %v3597_v18  ;;  %v3624_v7 = vsub.f32 %v1009_v27, %v3610_v50  ;;  %v915_v27 = vld [vmem:[%s3393_s9 + $0x58] sm:$0xff] }
 0x1d8   : > { %1354 = vmatmul.f32.gmra.mxu1 %v3512_v32  ;;  %1414 = vmatmul.f32.gmra.mxu3 %v3514_v34  ;;  %v970_v6 = vsel %vm859_vm1, %v915_v27, 0 }
 0x1d9   : > { %v1117_v2 = vsub.f32 %v3597_v18, %v4856_v48  ;;  %4907 = vst [vmem:[#allocation5_spill] sm:$0xff] %v3624_v7  ;;  %v4858_v57 = vand.u32 4294901760, %v3624_v7  ;;  %v3656_v45 = vand.u32 4294901760, %v970_v6 }
 0x1db   : > { %v1118_v31 = vand.u32 4294901760, %v1117_v2  ;;  %v1245_v20 = vsub.f32 %v3624_v7, %v4858_v57  ;;  %v3648_v2 = vsub.f32 %v1012_v26, %v3634_v40  ;;  %v916_v26 = vld [vmem:[%s3393_s9 + $0x60] sm:$0xff]  ;;  %v3669_v27 = vsub.f32 %v970_v6, %v3656_v45 }
 0x1dd   : > { %4909 = vst [vmem:[#allocation7_spill] sm:$0xff] %v3648_v2 }
 0x1df   : > { %1111 = vmatmul.f32.gmra.mxu0 %v1110_v28  ;;  %1231 = vmatmul.f32.gmra.mxu2 %v1230_v44  ;;  %v4855_v28 = vand.u32 4294901760, %v3615_v63  ;;  %v3631_v44 = vand.u32 4294901760, %v967_v52 }
 0x1e0   : > { %1358 = vmatmul.f32.gmra.mxu1 %v3534_v49  ;;  %1418 = vmatmul.f32.gmra.mxu3 %v3538_v53 }
 0x1e1   : > { %v1125_v41 = vsub.f32 %v3615_v63, %v4855_v28  ;;  %v3642_v12 = vsub.f32 %v967_v52, %v3631_v44  ;;  %v1015_v28 = vsel %vm859_vm1, %v930_v35, 0 }
 0x1e2   : > { %v3658_v57 = vand.u32 4294901760, %v1015_v28 }
 0x1e3   : > { %v1126_v52 = vand.u32 4294901760, %v1125_v41  ;;  %v4861_v48 = vand.u32 4294901760, %v3642_v12 }
 0x1e4   : > { %4910 = vst [vmem:[#allocation8_spill] sm:$0xff] %v3658_v57  ;;  %v3672_v41 = vsub.f32 %v1015_v28, %v3658_v57  ;;  %v917_v28 = vld [vmem:[%s3393_s9 + $0x68] sm:$0xff] }
 0x1e5   : > { %v1133_v51 = vsub.f32 %v3642_v12, %v4861_v48  ;;  %v976_v33 = vsel %vm859_vm1, %v917_v28, 0 }
 0x1e6   : > { %4911 = vst [vmem:[#allocation9_spill] sm:$0xff] %v3672_v41  ;;  %v4871_v6 = vand.u32 4294901760, %v3672_v41 }
 0x1e7   : > { %1119 = vmatmul.f32.gmra.mxu0 %v1118_v31  ;;  %1239 = vmatmul.f32.gmra.mxu2 %v1238_v16  ;;  %v1246_v31 = vand.u32 4294901760, %v1245_v20  ;;  %v4863_v16 = vand.u32 4294901760, %v3648_v2  ;;  %v973_v20 = vsel %vm859_vm1, %v916_v26, 0  ;;  %v1134_v48 = vand.u32 4294901760, %v1133_v51 }
 0x1e8   : > { %1362 = vmatmul.f32.gmra.mxu1 %v3559_v15  ;;  %1422 = vmatmul.f32.gmra.mxu3 %v3562_v22 }
 0x1e9   : > { %v1253_v35 = vsub.f32 %v3648_v2, %v4863_v16  ;;  %v4867_v16 = vand.u32 4294901760, %v3669_v27 }
 0x1eb   : > { %v1254_v29 = vand.u32 4294901760, %v1253_v35  ;;  %v1141_v51 = vsub.f32 %v3669_v27, %v4867_v16 }
 0x1ed   : > { %v1142_v16 = vand.u32 4294901760, %v1141_v51 }
 0x1ef   : > { %1127 = vmatmul.f32.gmra.mxu0 %v1126_v52  ;;  %1247 = vmatmul.f32.gmra.mxu2 %v1246_v31  ;;  %v1018_v52 = vsel %vm859_vm1, %v931_v14, 0  ;;  %v3678_v31 = vand.u32 4294901760, %v973_v20  ;;  %v1261_v14 = vsub.f32 %v3672_v41, %v4871_v6  ;;  %v933_v41 = vld [vmem:[%s3393_s9 + $0xe8] sm:$0xff] }
 0x1f0   : > { %1366 = vmatmul.f32.gmra.mxu1 %v3584_v55  ;;  %1426 = vmatmul.f32.gmra.mxu3 %v3586_v61  ;;  %v3682_v8 = vand.u32 4294901760, %v1018_v52 }
 0x1f1   : > { %v3687_v26 = vsub.f32 %v973_v20, %v3678_v31  ;;  %v3703_v20 = vand.u32 4294901760, %v976_v33  ;;  %v1262_v9 = vand.u32 4294901760, %v1261_v14 }
 0x1f2   : > { %v3696_v35 = vsub.f32 %v1018_v52, %v3682_v8  ;;  %v918_v52 = vld [vmem:[%s3393_s9 + $0x70] sm:$0xff] }
 0x1f3   : > { %v979_v14 = vsel %vm859_vm1, %v918_v52, 0 }
 0x1f4   : > { %4912 = vst [vmem:[#allocation10_spill] sm:$0xff] %v3696_v35  ;;  %v4881_v61 = vand.u32 4294901760, %v3696_v35  ;;  %v3728_v22 = vand.u32 4294901760, %v979_v14 }
 0x1f6   : > { %v3740_v52 = vsub.f32 %v979_v14, %v3728_v22 }
 0x1f7   : > { %1135 = vmatmul.f32.gmra.mxu0 %v1134_v48  ;;  %1255 = vmatmul.f32.gmra.mxu2 %v1254_v29  ;;  %v1021_v48 = vsel %vm859_vm1, %v932_v56, 0  ;;  %v4876_v29 = vand.u32 4294901760, %v3687_v26  ;;  %v1269_v56 = vsub.f32 %v3696_v35, %v4881_v61 }
 0x1f8   : > { %1370 = vmatmul.f32.gmra.mxu1 %v3606_v38  ;;  %1430 = vmatmul.f32.gmra.mxu3 %v3610_v50  ;;  %v3706_v6 = vand.u32 4294901760, %v1021_v48  ;;  %v3714_v50 = vsub.f32 %v976_v33, %v3703_v20 }
 0x1f9   : > { %v1149_v28 = vsub.f32 %v3687_v26, %v4876_v29  ;;  %v1024_v29 = vsel %vm859_vm1, %v933_v41, 0 }
 0x1fa   : > { %v3720_v51 = vsub.f32 %v1021_v48, %v3706_v6  ;;  %v4886_v33 = vand.u32 4294901760, %v3714_v50  ;;  %v3730_v61 = vand.u32 4294901760, %v1024_v29  ;;  %v934_v48 = vld [vmem:[%s3393_s9 + $0xf0] sm:$0xff] }
 0x1fb   : > { %v1150_v2 = vand.u32 4294901760, %v1149_v28 }
 0x1fc   : > { %4913 = vst [vmem:[#allocation11_spill] sm:$0xff] %v3730_v61  ;;  %v3743_v28 = vsub.f32 %v1024_v29, %v3730_v61 }
 0x1ff   : > { %1143 = vmatmul.f32.gmra.mxu0 %v1142_v16  ;;  %1263 = vmatmul.f32.gmra.mxu2 %v1262_v9  ;;  %v1270_v16 = vand.u32 4294901760, %v1269_v56  ;;  %v4889_v9 = vand.u32 4294901760, %v3720_v51  ;;  %v1027_v56 = vsel %vm859_vm1, %v934_v48, 0 }
 0x200   : > { %1374 = vmatmul.f32.gmra.mxu1 %v3631_v44  ;;  %1434 = vmatmul.f32.gmra.mxu3 %v3634_v40  ;;  %v1157_v40 = vsub.f32 %v3714_v50, %v4886_v33  ;;  %v3750_v7 = vand.u32 4294901760, %v1027_v56 }
 0x201   : > { %v1277_v41 = vsub.f32 %v3720_v51, %v4889_v9  ;;  %v935_v9 = vld [vmem:[%s3393_s9 + $0xf8] sm:$0xff] }
 0x202   : > { %v1158_v35 = vand.u32 4294901760, %v1157_v40  ;;  %4914 = vst [vmem:[#allocation12_spill] sm:$0xff] %v3750_v7  ;;  %v3760_v40 = vsub.f32 %v1027_v56, %v3750_v7  ;;  %v1030_v48 = vsel %vm859_vm1, %v935_v9, 0 }
 0x203   : > { %v1278_v33 = vand.u32 4294901760, %v1277_v41 }
 0x207   : > { %1151 = vmatmul.f32.gmra.mxu0 %v1150_v2  ;;  %1271 = vmatmul.f32.gmra.mxu2 %v1270_v16  ;;  %v4895_v2 = vand.u32 4294901760, %v3740_v52  ;;  %v4892_v16 = vand.u32 4294901760, %v3743_v28 }
 0x208   : > { %1378 = vmatmul.f32.gmra.mxu1 %v3656_v45  ;;  %1438 = vmatmul.f32.gmra.mxu3 %v3658_v57  ;;  %v3766_v57 = vand.u32 4294901760, %v1030_v48 }
 0x209   : > { %v1165_v29 = vsub.f32 %v3740_v52, %v4895_v2  ;;  %v1285_v14 = vsub.f32 %v3743_v28, %v4892_v16 }
 0x20a   : > { %4915 = vst [vmem:[#allocation13_spill] sm:$0xff] %v3766_v57  ;;  %v3772_v56 = vsub.f32 %v1030_v48, %v3766_v57 }
 0x20b   : > { %v1166_v41 = vand.u32 4294901760, %v1165_v29 }
 0x20c   : > { %4916 = vst [vmem:[#allocation14_spill] sm:$0xff] %v3772_v56  ;;  %v4894_v29 = vand.u32 4294901760, %v3772_v56 }
 0x20f   : > { %1159 = vmatmul.f32.gmra.mxu0 %v1158_v35  ;;  %1279 = vmatmul.f32.gmra.mxu2 %v1278_v33  ;;  %v1286_v35 = vand.u32 4294901760, %v1285_v14  ;;  %v4893_v33 = vand.u32 4294901760, %v3760_v40  ;;  %v1301_v14 = vsub.f32 %v3772_v56, %v4894_v29 }
 0x210   : > { %1382 = vmatmul.f32.gmra.mxu1 %v3678_v31  ;;  %1442 = vmatmul.f32.gmra.mxu3 %v3682_v8 }
 0x211   : > { %v1293_v16 = vsub.f32 %v3760_v40, %v4893_v33  ;;  %v1302_v48 = vand.u32 4294901760, %v1301_v14  ;;  %v4918_v14 = vand.u32 4294901760, %v3430_v23 }
 0x213   : > { %v1294_v9 = vand.u32 4294901760, %v1293_v16  ;;  %v4917_v16 = vand.u32 4294901760, %v3408_v1 }
 0x217   : > { %1167 = vmatmul.f32.gmra.mxu0 %v1166_v41  ;;  %1287 = vmatmul.f32.gmra.mxu2 %v1286_v35 }
 0x218   : > { %1386 = vmatmul.f32.gmra.mxu1 %v3703_v20  ;;  %1446 = vmatmul.f32.gmra.mxu3 %v3706_v6 }
 0x21f   : > { %1295 = vmatmul.f32.gmra.mxu2 %v1294_v9  ;;  %1484 = vmatmul.f32.vlgmr.msrb.gmra.mxu0 %v3408_v1 }
 0x220   : > { %1390 = vmatmul.f32.gmra.mxu1 %v3728_v22  ;;  %1450 = vmatmul.f32.gmra.mxu3 %v3730_v61 }
 0x224   : > { %v3783_v41 = vpop.f32.mrf.mxu0 }
 0x227   : > { %1303 = vmatmul.f32.gmra.mxu2 %v1302_v48  ;;  %1489 = vmatmul.f32.gmra.mxu0 %v3430_v23 }
 0x228   : > { %1454 = vmatmul.f32.gmra.mxu3 %v3750_v7  ;;  %1664 = vmatmul.f32.vlgmr.msrb.gmra.mxu1 %v4917_v16  ;;  %v4920_v7 = vand.u32 4294901760, %v3455_v46 }
 0x22a   : > { %v1176_v35 = vpop.f32.mrf.mxu2 }
 0x22c   : > { %v3789_v9 = vpop.f32.mrf.mxu0 }
 0x22d   : > { %v3791_v33 = vpop.f32.mrf.mxu1 }
 0x22f   : > { %1494 = vmatmul.f32.gmra.mxu0 %v3455_v46  ;;  %1877 = vmatmul.f32.vlgmr.msra.gmra.mxu2 %v3401_v58 }
 0x230   : > { %1458 = vmatmul.f32.gmra.mxu3 %v3766_v57  ;;  %1670 = vmatmul.f32.gmra.mxu1 %v4918_v14 }
 0x232   : > { %v1184_v48 = vpop.f32.mrf.mxu2 }
 0x233   : > { %v1395_v29 = vpop.f32.mrf.mxu3 }
 0x234   : > { %v3798_v2 = vadd.f32 %v1395_v29, %v1176_v35  ;;  %v3800_v1 = vpop.f32.mrf.mxu0  ;;  %v4922_v35 = vand.u32 4294901760, %v3471_v0 }
 0x235   : > { %v3802_v16 = vpop.f32.mrf.mxu1 }
 0x236   : > { %4919 = vst [vmem:[#allocation15_spill] sm:$0xff] %v3798_v2 }
 0x237   : > { %1499 = vmatmul.f32.gmra.mxu0 %v3471_v0  ;;  %1881 = vmatmul.f32.gmra.mxu2 %v3419_v10 }
 0x238   : > { %1676 = vmatmul.f32.gmra.mxu1 %v4920_v7  ;;  %2024 = vmatmul.f32.vlgmr.msra.gmra.mxu3 %v3401_v58 }
 0x23a   : > { %v1192_v57 = vpop.f32.mrf.mxu2 }
 0x23b   : > { %v1399_v23 = vpop.f32.mrf.mxu3 }
 0x23c   : > { %v3809_v14 = vadd.f32 %v1399_v23, %v1184_v48  ;;  %v3811_v61 = vpop.f32.mrf.mxu0  ;;  %v4924_v23 = vand.u32 4294901760, %v3498_v21 }
 0x23d   : > { %v3813_v29 = vpop.f32.mrf.mxu1 }
 0x23e   : > { %4921 = vst [vmem:[#allocation16_spill] sm:$0xff] %v3809_v14 }
 0x23f   : > { %1504 = vmatmul.f32.gmra.mxu0 %v3498_v21  ;;  %1885 = vmatmul.f32.gmra.mxu2 %v3442_v36 }
 0x240   : > { %1682 = vmatmul.f32.gmra.mxu1 %v4922_v35  ;;  %2028 = vmatmul.f32.gmra.mxu3 %v3419_v10 }
 0x242   : > { %v1200_v46 = vpop.f32.mrf.mxu2 }
 0x243   : > { %v1403_v7 = vpop.f32.mrf.mxu3 }
 0x244   : > { %v3820_v58 = vadd.f32 %v1403_v7, %v1192_v57  ;;  %v3822_v56 = vpop.f32.mrf.mxu0  ;;  %v4926_v7 = vand.u32 4294901760, %v3525_v42 }
 0x245   : > { %v3824_v48 = vpop.f32.mrf.mxu1 }
 0x246   : > { %4923 = vst [vmem:[#allocation17_spill] sm:$0xff] %v3820_v58 }
 0x247   : > { %1509 = vmatmul.f32.gmra.mxu0 %v3525_v42  ;;  %1889 = vmatmul.f32.gmra.mxu2 %v3462_v54 }
 0x248   : > { %1688 = vmatmul.f32.gmra.mxu1 %v4924_v23  ;;  %2032 = vmatmul.f32.gmra.mxu3 %v3442_v36 }
 0x24a   : > { %v1208_v0 = vpop.f32.mrf.mxu2 }
 0x24b   : > { %v1407_v35 = vpop.f32.mrf.mxu3 }
 0x24c   : > { %v3831_v10 = vadd.f32 %v1407_v35, %v1200_v46  ;;  %v3833_v14 = vpop.f32.mrf.mxu0  ;;  %v4928_v35 = vand.u32 4294901760, %v3543_v62 }
 0x24d   : > { %v3835_v57 = vpop.f32.mrf.mxu1 }
 0x24e   : > { %4925 = vst [vmem:[#allocation18_spill] sm:$0xff] %v3831_v10 }
 0x24f   : > { %1514 = vmatmul.f32.gmra.mxu0 %v3543_v62  ;;  %1893 = vmatmul.f32.gmra.mxu2 %v3487_v11 }
 0x250   : > { %1694 = vmatmul.f32.gmra.mxu1 %v4926_v7  ;;  %2036 = vmatmul.f32.gmra.mxu3 %v3462_v54 }
 0x252   : > { %v1216_v21 = vpop.f32.mrf.mxu2 }
 0x253   : > { %v1411_v23 = vpop.f32.mrf.mxu3 }
 0x254   : > { %v3842_v36 = vadd.f32 %v1411_v23, %v1208_v0  ;;  %v3844_v58 = vpop.f32.mrf.mxu0  ;;  %v4930_v23 = vand.u32 4294901760, %v3570_v30 }
 0x255   : > { %v3846_v46 = vpop.f32.mrf.mxu1 }
 0x256   : > { %4927 = vst [vmem:[#allocation19_spill] sm:$0xff] %v3842_v36 }
 0x257   : > { %1519 = vmatmul.f32.gmra.mxu0 %v3570_v30  ;;  %1897 = vmatmul.f32.gmra.mxu2 %v3512_v32 }
 0x258   : > { %1700 = vmatmul.f32.gmra.mxu1 %v4928_v35  ;;  %2040 = vmatmul.f32.gmra.mxu3 %v3487_v11 }
 0x25a   : > { %v1224_v42 = vpop.f32.mrf.mxu2 }
 0x25b   : > { %v1415_v7 = vpop.f32.mrf.mxu3 }
 0x25c   : > { %v3853_v54 = vadd.f32 %v1415_v7, %v1216_v21  ;;  %v3855_v10 = vpop.f32.mrf.mxu0  ;;  %v4932_v7 = vand.u32 4294901760, %v3597_v18 }
 0x25d   : > { %v3857_v0 = vpop.f32.mrf.mxu1 }
 0x25e   : > { %4929 = vst [vmem:[#allocation20_spill] sm:$0xff] %v3853_v54 }
 0x25f   : > { %1524 = vmatmul.f32.gmra.mxu0 %v3597_v18  ;;  %1901 = vmatmul.f32.gmra.mxu2 %v3534_v49 }
 0x260   : > { %1706 = vmatmul.f32.gmra.mxu1 %v4930_v23  ;;  %2044 = vmatmul.f32.gmra.mxu3 %v3512_v32 }
 0x262   : > { %v1232_v62 = vpop.f32.mrf.mxu2 }
 0x263   : > { %v1419_v35 = vpop.f32.mrf.mxu3 }
 0x264   : > { %v3864_v11 = vadd.f32 %v1419_v35, %v1224_v42  ;;  %v3866_v36 = vpop.f32.mrf.mxu0  ;;  %v4934_v35 = vand.u32 4294901760, %v3615_v63 }
 0x265   : > { %v3868_v21 = vpop.f32.mrf.mxu1 }
 0x266   : > { %4931 = vst [vmem:[#allocation21_spill] sm:$0xff] %v3864_v11 }
 0x267   : > { %1529 = vmatmul.f32.gmra.mxu0 %v3615_v63  ;;  %1905 = vmatmul.f32.gmra.mxu2 %v3559_v15 }
 0x268   : > { %1712 = vmatmul.f32.gmra.mxu1 %v4932_v7  ;;  %2048 = vmatmul.f32.gmra.mxu3 %v3534_v49 }
 0x26a   : > { %v1240_v30 = vpop.f32.mrf.mxu2 }
 0x26b   : > { %v1423_v23 = vpop.f32.mrf.mxu3 }
 0x26c   : > { %v3875_v32 = vadd.f32 %v1423_v23, %v1232_v62  ;;  %v3877_v54 = vpop.f32.mrf.mxu0  ;;  %v4936_v23 = vand.u32 4294901760, %v3642_v12 }
 0x26d   : > { %v3879_v42 = vpop.f32.mrf.mxu1 }
 0x26e   : > { %4933 = vst [vmem:[#allocation22_spill] sm:$0xff] %v3875_v32 }
 0x26f   : > { %1534 = vmatmul.f32.gmra.mxu0 %v3642_v12  ;;  %1909 = vmatmul.f32.gmra.mxu2 %v3584_v55 }
 0x270   : > { %1718 = vmatmul.f32.gmra.mxu1 %v4934_v35  ;;  %2052 = vmatmul.f32.gmra.mxu3 %v3559_v15 }
 0x272   : > { %v1248_v18 = vpop.f32.mrf.mxu2 }
 0x273   : > { %v1427_v7 = vpop.f32.mrf.mxu3 }
 0x274   : > { %v3886_v49 = vadd.f32 %v1427_v7, %v1240_v30  ;;  %v3888_v11 = vpop.f32.mrf.mxu0  ;;  %v4938_v7 = vand.u32 4294901760, %v3669_v27 }
 0x275   : > { %v3890_v62 = vpop.f32.mrf.mxu1 }
 0x276   : > { %4935 = vst [vmem:[#allocation23_spill] sm:$0xff] %v3886_v49 }
 0x277   : > { %1539 = vmatmul.f32.gmra.mxu0 %v3669_v27  ;;  %1913 = vmatmul.f32.gmra.mxu2 %v3606_v38 }
 0x278   : > { %1724 = vmatmul.f32.gmra.mxu1 %v4936_v23  ;;  %2056 = vmatmul.f32.gmra.mxu3 %v3584_v55 }
 0x27a   : > { %v1256_v63 = vpop.f32.mrf.mxu2 }
 0x27b   : > { %v1431_v35 = vpop.f32.mrf.mxu3 }
 0x27c   : > { %v3897_v15 = vadd.f32 %v1431_v35, %v1248_v18  ;;  %v3899_v32 = vpop.f32.mrf.mxu0  ;;  %v4940_v35 = vand.u32 4294901760, %v3687_v26 }
 0x27d   : > { %v3901_v30 = vpop.f32.mrf.mxu1 }
 0x27e   : > { %4937 = vst [vmem:[#allocation24_spill] sm:$0xff] %v3897_v15 }
 0x27f   : > { %1544 = vmatmul.f32.gmra.mxu0 %v3687_v26  ;;  %1917 = vmatmul.f32.gmra.mxu2 %v3631_v44 }
 0x280   : > { %1730 = vmatmul.f32.gmra.mxu1 %v4938_v7  ;;  %2060 = vmatmul.f32.gmra.mxu3 %v3606_v38 }
 0x282   : > { %v1264_v12 = vpop.f32.mrf.mxu2 }
 0x283   : > { %v1435_v23 = vpop.f32.mrf.mxu3 }
 0x284   : > { %v3908_v55 = vadd.f32 %v1435_v23, %v1256_v63  ;;  %v3910_v49 = vpop.f32.mrf.mxu0  ;;  %v4942_v23 = vand.u32 4294901760, %v3714_v50 }
 0x285   : > { %v3912_v18 = vpop.f32.mrf.mxu1 }
 0x286   : > { %4939 = vst [vmem:[#allocation25_spill] sm:$0xff] %v3908_v55 }
 0x287   : > { %1549 = vmatmul.f32.gmra.mxu0 %v3714_v50  ;;  %1921 = vmatmul.f32.gmra.mxu2 %v3656_v45 }
 0x288   : > { %1736 = vmatmul.f32.gmra.mxu1 %v4940_v35  ;;  %2064 = vmatmul.f32.gmra.mxu3 %v3631_v44 }
 0x28a   : > { %v1272_v27 = vpop.f32.mrf.mxu2 }
 0x28b   : > { %v1439_v7 = vpop.f32.mrf.mxu3 }
 0x28c   : > { %v3919_v38 = vadd.f32 %v1439_v7, %v1264_v12  ;;  %v3921_v15 = vpop.f32.mrf.mxu0  ;;  %v4944_v7 = vand.u32 4294901760, %v3740_v52 }
 0x28d   : > { %v3923_v63 = vpop.f32.mrf.mxu1 }
 0x28e   : > { %4941 = vst [vmem:[#allocation26_spill] sm:$0xff] %v3919_v38 }
 0x28f   : > { %1554 = vmatmul.f32.gmra.mxu0 %v3740_v52  ;;  %1925 = vmatmul.f32.gmra.mxu2 %v3678_v31 }
 0x290   : > { %1742 = vmatmul.f32.gmra.mxu1 %v4942_v23  ;;  %2068 = vmatmul.f32.gmra.mxu3 %v3656_v45 }
 0x292   : > { %v1280_v26 = vpop.f32.mrf.mxu2 }
 0x293   : > { %v1443_v35 = vpop.f32.mrf.mxu3 }
 0x294   : > { %v3930_v44 = vadd.f32 %v1443_v35, %v1272_v27  ;;  %v3932_v55 = vpop.f32.mrf.mxu0  ;;  %v4946_v35 = vand.u32 4294901760, %v3411_v3 }
 0x295   : > { %v3934_v12 = vpop.f32.mrf.mxu1 }
 0x296   : > { %4943 = vst [vmem:[#allocation27_spill] sm:$0xff] %v3930_v44 }
 0x297   : > { %1559 = vmatmul.f32.gmra.mxu0 %v3411_v3  ;;  %1929 = vmatmul.f32.gmra.mxu2 %v3703_v20 }
 0x298   : > { %1748 = vmatmul.f32.gmra.mxu1 %v4944_v7  ;;  %2072 = vmatmul.f32.gmra.mxu3 %v3678_v31 }
 0x29a   : > { %v1288_v50 = vpop.f32.mrf.mxu2 }
 0x29b   : > { %v1447_v23 = vpop.f32.mrf.mxu3 }
 0x29c   : > { %v3941_v45 = vadd.f32 %v1447_v23, %v1280_v26  ;;  %v1485_v38 = vpop.f32.mrf.mxu0  ;;  %v4948_v26 = vand.u32 4294901760, %v3436_v25 }
 0x29d   : > { %v3943_v27 = vpop.f32.mrf.mxu1 }
 0x29e   : > { %4945 = vst [vmem:[#allocation28_spill] sm:$0xff] %v3941_v45  ;;  %v4950_v45 = vand.u32 4294901760, %v3458_v47 }
 0x29f   : > { %1564 = vmatmul.f32.gmra.mxu0 %v3436_v25  ;;  %1933 = vmatmul.f32.gmra.mxu2 %v3728_v22 }
 0x2a0   : > { %1754 = vmatmul.f32.gmra.mxu1 %v4946_v35  ;;  %2076 = vmatmul.f32.gmra.mxu3 %v3703_v20 }
 0x2a2   : > { %v1296_v52 = vpop.f32.mrf.mxu2 }
 0x2a3   : > { %v1451_v7 = vpop.f32.mrf.mxu3 }
 0x2a4   : > { %v3950_v44 = vadd.f32 %v1451_v7, %v1288_v50  ;;  %v1490_v31 = vpop.f32.mrf.mxu0  ;;  %v1336_v50 = vadd.f32 %v3791_v33, %v3783_v41  ;;  %v1340_v33 = vadd.f32 %v3802_v16, %v3789_v9  ;;  %v1344_v9 = vadd.f32 %v3813_v29, %v3800_v1 }
 0x2a5   : > { %v1665_v2 = vpop.f32.mrf.mxu1  ;;  %v1348_v1 = vadd.f32 %v3824_v48, %v3811_v61  ;;  %v1352_v61 = vadd.f32 %v3835_v57, %v3822_v56  ;;  %v1356_v56 = vadd.f32 %v3846_v46, %v3833_v14  ;;  %v1360_v46 = vadd.f32 %v3857_v0, %v3844_v58 }
 0x2a6   : > { %4947 = vst [vmem:[#allocation29_spill] sm:$0xff] %v3950_v44  ;;  %v1486_v44 = vadd.f32 %v1485_v38, %v1336_v50  ;;  %v1491_v38 = vadd.f32 %v1490_v31, %v1340_v33 }
 0x2a7   : > { %1569 = vmatmul.f32.gmra.mxu0 %v3458_v47  ;;  %1937 = vmatmul.f32.gmra.mxu2 %v3403_v60  ;;  %v4951_v47 = vand.u32 4294901760, %v3480_v5 }
 0x2a8   : > { %1760 = vmatmul.f32.gmra.mxu1 %v4948_v26  ;;  %2080 = vmatmul.f32.gmra.mxu3 %v3728_v22  ;;  %v1666_v25 = vadd.f32 %v1665_v2, %v1486_v44 }
 0x2aa   : > { %v1304_v23 = vpop.f32.mrf.mxu2 }
 0x2ab   : > { %v1455_v3 = vpop.f32.mrf.mxu3 }
 0x2ac   : > { %v3957_v35 = vadd.f32 %v1455_v3, %v1296_v52  ;;  %v1495_v20 = vpop.f32.mrf.mxu0 }
 0x2ad   : > { %v1671_v7 = vpop.f32.mrf.mxu1  ;;  %v1496_v31 = vadd.f32 %v1495_v20, %v1344_v9 }
 0x2ae   : > { %4949 = vst [vmem:[#allocation30_spill] sm:$0xff] %v3957_v35 }
 0x2af   : > { %1574 = vmatmul.f32.gmra.mxu0 %v3480_v5  ;;  %1941 = vmatmul.f32.gmra.mxu2 %v3422_v13  ;;  %v4952_v5 = vand.u32 4294901760, %v3504_v24 }
 0x2b0   : > { %1766 = vmatmul.f32.gmra.mxu1 %v4950_v45  ;;  %2084 = vmatmul.f32.gmra.mxu3 %v3403_v60  ;;  %v1672_v60 = vadd.f32 %v1671_v7, %v1491_v38 }
 0x2b2   : > { %v1878_v22 = vpop.f32.mrf.mxu2 }
 0x2b3   : > { %v1459_v26 = vpop.f32.mrf.mxu3  ;;  %v1879_v52 = vadd.f32 %v1878_v22, %v1666_v25 }
 0x2b4   : > { %v3966_v3 = vadd.f32 %v1459_v26, %v1304_v23  ;;  %v1500_v35 = vpop.f32.mrf.mxu0 }
 0x2b5   : > { %v1677_v41 = vpop.f32.mrf.mxu1  ;;  %v1501_v20 = vadd.f32 %v1500_v35, %v1348_v1 }
 0x2b7   : > { %1579 = vmatmul.f32.gmra.mxu0 %v3504_v24  ;;  %1945 = vmatmul.f32.gmra.mxu2 %v3444_v37  ;;  %v4953_v24 = vand.u32 4294901760, %v3528_v43 }
 0x2b8   : > { %1772 = vmatmul.f32.gmra.mxu1 %v4951_v47  ;;  %2088 = vmatmul.f32.gmra.mxu3 %v3422_v13  ;;  %v1678_v13 = vadd.f32 %v1677_v41, %v1496_v31 }
 0x2ba   : > { %v1882_v2 = vpop.f32.mrf.mxu2 }
 0x2bb   : > { %v1883_v44 = vadd.f32 %v1882_v2, %v1672_v60  ;;  %v2025_v45 = vpop.f32.mrf.mxu3 }
 0x2bc   : > { %v3975_v23 = vadd.f32 %v2025_v45, %v1879_v52  ;;  %v1505_v50 = vpop.f32.mrf.mxu0 }
 0x2bd   : > { %v1683_v16 = vpop.f32.mrf.mxu1  ;;  %v1506_v35 = vadd.f32 %v1505_v50, %v1352_v61  ;;  %v4959_v61 = vld [vmem:[#allocation7_spill] sm:$0xff] }
 0x2bf   : > { %1584 = vmatmul.f32.gmra.mxu0 %v3528_v43  ;;  %1949 = vmatmul.f32.gmra.mxu2 %v3466_v59  ;;  %v4954_v43 = vand.u32 4294901760, %v3552_v4 }
 0x2c0   : > { %1778 = vmatmul.f32.gmra.mxu1 %v4952_v5  ;;  %2092 = vmatmul.f32.gmra.mxu3 %v3444_v37  ;;  %v1684_v37 = vadd.f32 %v1683_v16, %v1501_v20  ;;  %v1368_v5 = vadd.f32 %v3879_v42, %v3866_v36  ;;  %v1372_v20 = vadd.f32 %v3890_v62, %v3877_v54 }
 0x2c2   : > { %v1886_v7 = vpop.f32.mrf.mxu2 }
 0x2c3   : > { %v1887_v25 = vadd.f32 %v1886_v7, %v1678_v13  ;;  %v2029_v22 = vpop.f32.mrf.mxu3 }
 0x2c4   : > { %v3984_v26 = vadd.f32 %v2029_v22, %v1883_v44  ;;  %v1510_v52 = vpop.f32.mrf.mxu0 }
 0x2c5   : > { %v1689_v29 = vpop.f32.mrf.mxu1  ;;  %v1511_v50 = vadd.f32 %v1510_v52, %v1356_v56  ;;  %v4963_v56 = vld [vmem:[#allocation4_spill] sm:$0xff] }
 0x2c7   : > { %1589 = vmatmul.f32.gmra.mxu0 %v3552_v4  ;;  %1953 = vmatmul.f32.gmra.mxu2 %v3490_v17  ;;  %v4955_v4 = vand.u32 4294901760, %v3576_v39 }
 0x2c8   : > { %1784 = vmatmul.f32.gmra.mxu1 %v4953_v24  ;;  %2096 = vmatmul.f32.gmra.mxu3 %v3466_v59  ;;  %v1690_v59 = vadd.f32 %v1689_v29, %v1506_v35  ;;  %v4957_v29 = vld [vmem:[#allocation2_spill] sm:$0xff]  ;;  %v1376_v35 = vadd.f32 %v3901_v30, %v3888_v11  ;;  %v1380_v11 = vadd.f32 %v3912_v18, %v3899_v32 }
 0x2c9   : > { %v1384_v32 = vadd.f32 %v3923_v63, %v3910_v49  ;;  %v1388_v49 = vadd.f32 %v3934_v12, %v3921_v15  ;;  %v1392_v15 = vadd.f32 %v3943_v27, %v3932_v55 }
 0x2ca   : > { %v1890_v33 = vpop.f32.mrf.mxu2 }
 0x2cb   : > { %v1891_v41 = vadd.f32 %v1890_v33, %v1684_v37  ;;  %v2033_v38 = vpop.f32.mrf.mxu3  ;;  %v1364_v33 = vadd.f32 %v3868_v21, %v3855_v10 }
 0x2cc   : > { %v3993_v47 = vadd.f32 %v2033_v38, %v1887_v25  ;;  %v1515_v60 = vpop.f32.mrf.mxu0 }
 0x2cd   : > { %v1695_v48 = vpop.f32.mrf.mxu1  ;;  %v1516_v1 = vadd.f32 %v1515_v60, %v1360_v46  ;;  %v4966_v46 = vld [vmem:[#allocation6_spill] sm:$0xff] }
 0x2cf   : > { %1594 = vmatmul.f32.gmra.mxu0 %v3576_v39  ;;  %1957 = vmatmul.f32.gmra.mxu2 %v3514_v34  ;;  %v4956_v39 = vld [vmem:[#allocation5_spill] sm:$0xff] }
 0x2d0   : > { %1790 = vmatmul.f32.gmra.mxu1 %v4954_v43  ;;  %2100 = vmatmul.f32.gmra.mxu3 %v3490_v17  ;;  %v1696_v17 = vadd.f32 %v1695_v48, %v1511_v50  ;;  %v4961_v48 = vand.u32 4294901760, %v4956_v39 }
 0x2d2   : > { %v1894_v2 = vpop.f32.mrf.mxu2 }
 0x2d3   : > { %v1895_v44 = vadd.f32 %v1894_v2, %v1690_v59  ;;  %v2037_v45 = vpop.f32.mrf.mxu3 }
 0x2d4   : > { %v4002_v9 = vadd.f32 %v2037_v45, %v1891_v41  ;;  %v1520_v16 = vpop.f32.mrf.mxu0 }
 0x2d5   : > { %v1701_v57 = vpop.f32.mrf.mxu1 }
 0x2d6   : > { %v1702_v36 = vadd.f32 %v1701_v57, %v1516_v1  ;;  %v4964_v57 = vand.u32 4294901760, %v4959_v61 }
 0x2d7   : > { %1599 = vmatmul.f32.gmra.mxu0 %v3600_v19  ;;  %1961 = vmatmul.f32.gmra.mxu2 %v3538_v53 }
 0x2d8   : > { %1796 = vmatmul.f32.gmra.mxu1 %v4955_v4  ;;  %2104 = vmatmul.f32.gmra.mxu3 %v3514_v34  ;;  %v4958_v34 = vand.u32 4294901760, %v3600_v19  ;;  %v1521_v19 = vadd.f32 %v1520_v16, %v1364_v33  ;;  %v4962_v16 = vld [vmem:[#allocation9_spill] sm:$0xff] }
 0x2da   : > { %v1898_v31 = vpop.f32.mrf.mxu2 }
 0x2db   : > { %v1899_v13 = vadd.f32 %v1898_v31, %v1696_v17  ;;  %v2041_v7 = vpop.f32.mrf.mxu3 }
 0x2dc   : > { %v4013_v25 = vadd.f32 %v2041_v7, %v1895_v44  ;;  %v1525_v14 = vpop.f32.mrf.mxu0 }
 0x2dd   : > { %v1526_v22 = vadd.f32 %v1525_v14, %v1368_v5  ;;  %v1707_v52 = vpop.f32.mrf.mxu1  ;;  %v4965_v14 = vld [vmem:[#allocation10_spill] sm:$0xff] }
 0x2de   : > { %v1708_v54 = vadd.f32 %v1707_v52, %v1521_v19 }
 0x2df   : > { %1604 = vmatmul.f32.gmra.mxu0 %v4956_v39  ;;  %1965 = vmatmul.f32.gmra.mxu2 %v4957_v29 }
 0x2e0   : > { %1802 = vmatmul.f32.gmra.mxu1 %v4958_v34  ;;  %2108 = vmatmul.f32.gmra.mxu3 %v3538_v53  ;;  %v4960_v53 = vld [vmem:[#allocation3_spill] sm:$0xff] }
 0x2e2   : > { %v1902_v42 = vpop.f32.mrf.mxu2 }
 0x2e3   : > { %v1903_v24 = vadd.f32 %v1902_v42, %v1702_v36  ;;  %v2045_v37 = vpop.f32.mrf.mxu3 }
 0x2e4   : > { %v4024_v58 = vadd.f32 %v2045_v37, %v1899_v13  ;;  %v1530_v0 = vpop.f32.mrf.mxu0 }
 0x2e5   : > { %v1531_v41 = vadd.f32 %v1530_v0, %v1372_v20  ;;  %v1713_v38 = vpop.f32.mrf.mxu1  ;;  %v4968_v20 = vld [vmem:[#allocation8_spill] sm:$0xff] }
 0x2e6   : > { %v1714_v60 = vadd.f32 %v1713_v38, %v1526_v22  ;;  %v4967_v22 = vand.u32 4294901760, %v4962_v16 }
 0x2e7   : > { %1609 = vmatmul.f32.gmra.mxu0 %v4959_v61  ;;  %1969 = vmatmul.f32.gmra.mxu2 %v4960_v53  ;;  %v4970_v61 = vand.u32 4294901760, %v3720_v51 }
 0x2e8   : > { %1808 = vmatmul.f32.gmra.mxu1 %v4961_v48  ;;  %2112 = vmatmul.f32.gmra.mxu3 %v4957_v29 }
 0x2ea   : > { %v1906_v62 = vpop.f32.mrf.mxu2 }
 0x2eb   : > { %v1907_v43 = vadd.f32 %v1906_v62, %v1708_v54  ;;  %v2049_v10 = vpop.f32.mrf.mxu3 }
 0x2ec   : > { %v4035_v21 = vadd.f32 %v2049_v10, %v1903_v24  ;;  %v1535_v59 = vpop.f32.mrf.mxu0  ;;  %v4969_v24 = vand.u32 4294901760, %v4965_v14 }
 0x2ed   : > { %v1536_v2 = vadd.f32 %v1535_v59, %v1376_v35  ;;  %v1719_v44 = vpop.f32.mrf.mxu1 }
 0x2ee   : > { %v1720_v45 = vadd.f32 %v1719_v44, %v1531_v41 }
 0x2ef   : > { %1614 = vmatmul.f32.gmra.mxu0 %v4962_v16  ;;  %1973 = vmatmul.f32.gmra.mxu2 %v4963_v56 }
 0x2f0   : > { %1814 = vmatmul.f32.gmra.mxu1 %v4964_v57  ;;  %2116 = vmatmul.f32.gmra.mxu3 %v4960_v53 }
 0x2f2   : > { %v1910_v50 = vpop.f32.mrf.mxu2 }
 0x2f3   : > { %v1911_v30 = vadd.f32 %v1910_v50, %v1714_v60  ;;  %v2053_v4 = vpop.f32.mrf.mxu3  ;;  %v4973_v50 = vld [vmem:[#allocation14_spill] sm:$0xff] }
 0x2f4   : > { %v4044_v17 = vadd.f32 %v2053_v4, %v1907_v43  ;;  %v1540_v31 = vpop.f32.mrf.mxu0 }
 0x2f5   : > { %v1541_v5 = vadd.f32 %v1540_v31, %v1380_v11  ;;  %v1725_v13 = vpop.f32.mrf.mxu1  ;;  %v4974_v11 = vld [vmem:[#allocation11_spill] sm:$0xff] }
 0x2f6   : > { %v1726_v7 = vadd.f32 %v1725_v13, %v1536_v2  ;;  %v4976_v13 = vld [vmem:[#allocation16_spill] sm:$0xff] }
 0x2f7   : > { %1619 = vmatmul.f32.gmra.mxu0 %v4965_v14  ;;  %1977 = vmatmul.f32.gmra.mxu2 %v4966_v46 }
 0x2f8   : > { %1820 = vmatmul.f32.gmra.mxu1 %v4967_v22  ;;  %2120 = vmatmul.f32.gmra.mxu3 %v4963_v56  ;;  %v4977_v22 = vld [vmem:[#allocation12_spill] sm:$0xff] }
 0x2fa   : > { %v1914_v52 = vpop.f32.mrf.mxu2 }
 0x2fb   : > { %v1915_v18 = vadd.f32 %v1914_v52, %v1720_v45  ;;  %v2057_v1 = vpop.f32.mrf.mxu3  ;;  %v4972_v45 = vld [vmem:[#allocation15_spill] sm:$0xff]  ;;  %v4978_v52 = vand.u32 4294901760, %v4973_v50 }
 0x2fc   : > { %v4053_v39 = vadd.f32 %v2057_v1, %v1911_v30  ;;  %v1545_v29 = vpop.f32.mrf.mxu0  ;;  %v4975_v30 = vand.u32 4294901760, %v3760_v40 }
 0x2fd   : > { %v1546_v34 = vadd.f32 %v1545_v29, %v1384_v32  ;;  %v1731_v36 = vpop.f32.mrf.mxu1  ;;  %v4979_v29 = vld [vmem:[#allocation17_spill] sm:$0xff] }
 0x2fe   : > { %v1732_v42 = vadd.f32 %v1731_v36, %v1541_v5 }
 0x2ff   : > { %1624 = vmatmul.f32.gmra.mxu0 %v3720_v51  ;;  %1981 = vmatmul.f32.gmra.mxu2 %v4968_v20  ;;  %v4971_v51 = vand.u32 4294901760, %v3743_v28 }
 0x300   : > { %1826 = vmatmul.f32.gmra.mxu1 %v4969_v24  ;;  %2124 = vmatmul.f32.gmra.mxu3 %v4966_v46 }
 0x302   : > { %v1918_v37 = vpop.f32.mrf.mxu2 }
 0x303   : > { %v1919_v63 = vadd.f32 %v1918_v37, %v1726_v7  ;;  %v2061_v0 = vpop.f32.mrf.mxu3 }
 0x304   : > { %v4062_v33 = vadd.f32 %v2061_v0, %v1915_v18  ;;  %v1550_v41 = vpop.f32.mrf.mxu0 }
 0x305   : > { %v1551_v38 = vadd.f32 %v1550_v41, %v1388_v49  ;;  %v1737_v60 = vpop.f32.mrf.mxu1  ;;  %v4981_v41 = vld [vmem:[#allocation18_spill] sm:$0xff] }
 0x306   : > { %v1738_v19 = vadd.f32 %v1737_v60, %v1546_v34 }
 0x307   : > { %1629 = vmatmul.f32.gmra.mxu0 %v3743_v28  ;;  %1985 = vmatmul.f32.gmra.mxu2 %v3682_v8 }
 0x308   : > { %1832 = vmatmul.f32.gmra.mxu1 %v4970_v61  ;;  %2128 = vmatmul.f32.gmra.mxu3 %v4968_v20  ;;  %v4980_v20 = vld [vmem:[#allocation13_spill] sm:$0xff] }
 0x30a   : > { %v1922_v53 = vpop.f32.mrf.mxu2 }
 0x30b   : > { %v1923_v12 = vadd.f32 %v1922_v53, %v1732_v42  ;;  %v2065_v48 = vpop.f32.mrf.mxu3 }
 0x30c   : > { %v4071_v54 = vadd.f32 %v2065_v48, %v1919_v63  ;;  %v1555_v62 = vpop.f32.mrf.mxu0 }
 0x30d   : > { %v1556_v35 = vadd.f32 %v1555_v62, %v1392_v15  ;;  %v1743_v43 = vpop.f32.mrf.mxu1  ;;  %v4982_v62 = vld [vmem:[#allocation19_spill] sm:$0xff] }
 0x30e   : > { %v1744_v10 = vadd.f32 %v1743_v43, %v1551_v38 }
 0x30f   : > { %1634 = vmatmul.f32.gmra.mxu0 %v3760_v40  ;;  %1989 = vmatmul.f32.gmra.mxu2 %v3706_v6 }
 0x310   : > { %1838 = vmatmul.f32.gmra.mxu1 %v4971_v51  ;;  %2132 = vmatmul.f32.gmra.mxu3 %v3682_v8 }
 0x312   : > { %v1926_v59 = vpop.f32.mrf.mxu2 }
 0x313   : > { %v1927_v2 = vadd.f32 %v1926_v59, %v1738_v19  ;;  %v2069_v55 = vpop.f32.mrf.mxu3 }
 0x314   : > { %v4078_v27 = vadd.f32 %v2069_v55, %v1923_v12  ;;  %v1560_v44 = vpop.f32.mrf.mxu0 }
 0x315   : > { %v1561_v16 = vadd.f32 %v1560_v44, %v4972_v45  ;;  %v1749_v56 = vpop.f32.mrf.mxu1  ;;  %v4983_v45 = vld [vmem:[#allocation20_spill] sm:$0xff] }
 0x316   : > { %v1750_v57 = vadd.f32 %v1749_v56, %v1556_v35 }
 0x317   : > { %1639 = vmatmul.f32.gmra.mxu0 %v4973_v50  ;;  %1993 = vmatmul.f32.gmra.mxu2 %v4974_v11 }
 0x318   : > { %1844 = vmatmul.f32.gmra.mxu1 %v4975_v30  ;;  %2136 = vmatmul.f32.gmra.mxu3 %v3706_v6 }
 0x31a   : > { %v1930_v8 = vpop.f32.mrf.mxu2 }
 0x31b   : > { %v1931_v28 = vadd.f32 %v1930_v8, %v1744_v10  ;;  %v2073_v4 = vpop.f32.mrf.mxu3 }
 0x31c   : > { %v4086_v31 = vadd.f32 %v2073_v4, %v1927_v2  ;;  %v1565_v5 = vpop.f32.mrf.mxu0  ;;  %v4984_v4 = vld [vmem:[#allocation21_spill] sm:$0xff] }
 0x31d   : > { %v1566_v7 = vadd.f32 %v1565_v5, %v4976_v13  ;;  %v1755_v14 = vpop.f32.mrf.mxu1 }
 0x31e   : > { %v1756_v46 = vadd.f32 %v1755_v14, %v1561_v16 }
 0x31f   : > { %1997 = vmatmul.f32.gmra.mxu2 %v4977_v22 }
 0x320   : > { %1850 = vmatmul.f32.gmra.mxu1 %v4978_v52  ;;  %2140 = vmatmul.f32.gmra.mxu3 %v4974_v11 }
 0x322   : > { %v1934_v40 = vpop.f32.mrf.mxu2 }
 0x323   : > { %v1935_v32 = vadd.f32 %v1934_v40, %v1750_v57  ;;  %v2077_v6 = vpop.f32.mrf.mxu3 }
 0x324   : > { %v4093_v18 = vadd.f32 %v2077_v6, %v1931_v28  ;;  %v1570_v1 = vpop.f32.mrf.mxu0 }
 0x325   : > { %v1571_v34 = vadd.f32 %v1570_v1, %v4979_v29  ;;  %v1761_v36 = vpop.f32.mrf.mxu1 }
 0x326   : > { %v1762_v42 = vadd.f32 %v1761_v36, %v1566_v7 }
 0x327   : > { %2001 = vmatmul.f32.gmra.mxu2 %v4980_v20 }
 0x328   : > { %2144 = vmatmul.f32.gmra.mxu3 %v4977_v22 }
 0x32a   : > { %v1938_v24 = vpop.f32.mrf.mxu2 }
 0x32b   : > { %v1939_v37 = vadd.f32 %v1938_v24, %v1756_v46  ;;  %v2081_v49 = vpop.f32.mrf.mxu3 }
 0x32c   : > { %v4098_v63 = vadd.f32 %v2081_v49, %v1935_v32  ;;  %v1575_v0 = vpop.f32.mrf.mxu0  ;;  %v4985_v32 = vld [vmem:[#allocation22_spill] sm:$0xff] }
 0x32d   : > { %v1576_v38 = vadd.f32 %v1575_v0, %v4981_v41  ;;  %v1767_v60 = vpop.f32.mrf.mxu1 }
 0x32e   : > { %v1768_v19 = vadd.f32 %v1767_v60, %v1571_v34 }
 0x330   : > { %2148 = vmatmul.f32.gmra.mxu3 %v4980_v20 }
 0x332   : > { %v1942_v61 = vpop.f32.mrf.mxu2 }
 0x333   : > { %v1943_v53 = vadd.f32 %v1942_v61, %v1762_v42  ;;  %v2085_v15 = vpop.f32.mrf.mxu3 }
 0x334   : > { %v4102_v12 = vadd.f32 %v2085_v15, %v1939_v37  ;;  %v1580_v48 = vpop.f32.mrf.mxu0  ;;  %v4986_v37 = vld [vmem:[#allocation23_spill] sm:$0xff] }
 0x335   : > { %v1581_v35 = vadd.f32 %v1580_v48, %v4982_v62  ;;  %v1773_v43 = vpop.f32.mrf.mxu1 }
 0x336   : > { %v1774_v10 = vadd.f32 %v1773_v43, %v1576_v38 }
 0x33a   : > { %v1946_v51 = vpop.f32.mrf.mxu2 }
 0x33b   : > { %v1947_v59 = vadd.f32 %v1946_v51, %v1768_v19  ;;  %v2089_v2 = vpop.f32.mrf.mxu3 }
 0x33c   : > { %v4105_v55 = vadd.f32 %v2089_v2, %v1943_v53  ;;  %v1585_v44 = vpop.f32.mrf.mxu0 }
 0x33d   : > { %v1586_v16 = vadd.f32 %v1585_v44, %v4983_v45  ;;  %v1779_v56 = vpop.f32.mrf.mxu1 }
 0x33e   : > { %v1780_v57 = vadd.f32 %v1779_v56, %v1581_v35 }
 0x342   : > { %v1950_v50 = vpop.f32.mrf.mxu2 }
 0x343   : > { %v1951_v11 = vadd.f32 %v1950_v50, %v1774_v10  ;;  %v2093_v30 = vpop.f32.mrf.mxu3 }
 0x344   : > { %v4108_v8 = vadd.f32 %v2093_v30, %v1947_v59  ;;  %v1590_v28 = vpop.f32.mrf.mxu0  ;;  %v4987_v30 = vld [vmem:[#allocation24_spill] sm:$0xff] }
 0x345   : > { %v1591_v5 = vadd.f32 %v1590_v28, %v4984_v4  ;;  %v1785_v13 = vpop.f32.mrf.mxu1 }
 0x346   : > { %v1786_v7 = vadd.f32 %v1785_v13, %v1586_v16 }
 0x34a   : > { %v1954_v14 = vpop.f32.mrf.mxu2 }
 0x34b   : > { %v1955_v46 = vadd.f32 %v1954_v14, %v1780_v57  ;;  %v2097_v22 = vpop.f32.mrf.mxu3 }
 0x34c   : > { %v4111_v52 = vadd.f32 %v2097_v22, %v1951_v11  ;;  %v1595_v40 = vpop.f32.mrf.mxu0 }
 0x34d   : > { %v1596_v6 = vadd.f32 %v1595_v40, %v4985_v32  ;;  %v1791_v1 = vpop.f32.mrf.mxu1  ;;  %v4988_v40 = vld [vmem:[#allocation25_spill] sm:$0xff] }
 0x34e   : > { %v1792_v29 = vadd.f32 %v1791_v1, %v1591_v5 }
 0x352   : > { %v1958_v34 = vpop.f32.mrf.mxu2 }
 0x353   : > { %v1959_v36 = vadd.f32 %v1958_v34, %v1786_v7  ;;  %v2101_v42 = vpop.f32.mrf.mxu3 }
 0x354   : > { %v4114_v20 = vadd.f32 %v2101_v42, %v1955_v46  ;;  %v1600_v24 = vpop.f32.mrf.mxu0 }
 0x355   : > { %v1601_v49 = vadd.f32 %v1600_v24, %v4986_v37  ;;  %v1797_v0 = vpop.f32.mrf.mxu1  ;;  %v4989_v37 = vld [vmem:[#allocation26_spill] sm:$0xff] }
 0x356   : > { %v1798_v41 = vadd.f32 %v1797_v0, %v1596_v6 }
 0x35a   : > { %v1962_v38 = vpop.f32.mrf.mxu2 }
 0x35b   : > { %v1963_v60 = vadd.f32 %v1962_v38, %v1792_v29  ;;  %v2105_v19 = vpop.f32.mrf.mxu3 }
 0x35c   : > { %v4117_v61 = vadd.f32 %v2105_v19, %v1959_v36  ;;  %v1605_v10 = vpop.f32.mrf.mxu0 }
 0x35d   : > { %v1803_v53 = vpop.f32.mrf.mxu1  ;;  %v1606_v28 = vadd.f32 %v1605_v10, %v4987_v30 }
 0x35e   : > { %v1804_v15 = vadd.f32 %v1803_v53, %v1601_v49 }
 0x362   : > { %v1966_v48 = vpop.f32.mrf.mxu2 }
 0x363   : > { %v1967_v62 = vadd.f32 %v1966_v48, %v1798_v41  ;;  %v2109_v35 = vpop.f32.mrf.mxu3 }
 0x364   : > { %v4119_v43 = vadd.f32 %v2109_v35, %v1963_v60  ;;  %v1610_v16 = vpop.f32.mrf.mxu0 }
 0x365   : > { %v1809_v51 = vpop.f32.mrf.mxu1  ;;  %v1611_v32 = vadd.f32 %v1610_v16, %v4988_v40 }
 0x366   : > { %v1810_v4 = vadd.f32 %v1809_v51, %v1606_v28 }
 0x36a   : > { %v1970_v59 = vpop.f32.mrf.mxu2 }
 0x36b   : > { %v1971_v2 = vadd.f32 %v1970_v59, %v1804_v15  ;;  %v2113_v44 = vpop.f32.mrf.mxu3  ;;  %v4990_v15 = vld [vmem:[#allocation27_spill] sm:$0xff] }
 0x36c   : > { %v4121_v45 = vadd.f32 %v2113_v44, %v1967_v62  ;;  %v1615_v5 = vpop.f32.mrf.mxu0  ;;  %v4991_v44 = vld [vmem:[#allocation28_spill] sm:$0xff] }
 0x36d   : > { %v1815_v56 = vpop.f32.mrf.mxu1  ;;  %v1616_v49 = vadd.f32 %v1615_v5, %v4989_v37 }
 0x36e   : > { %v1816_v6 = vadd.f32 %v1815_v56, %v1611_v32 }
 0x372   : > { %v1974_v57 = vpop.f32.mrf.mxu2 }
 0x373   : > { %v2117_v50 = vpop.f32.mrf.mxu3  ;;  %v1975_v13 = vadd.f32 %v1974_v57, %v1810_v4 }
 0x374   : > { %v4123_v11 = vadd.f32 %v2117_v50, %v1971_v2  ;;  %v1620_v34 = vpop.f32.mrf.mxu0 }
 0x375   : > { %v1821_v14 = vpop.f32.mrf.mxu1  ;;  %v1621_v48 = vadd.f32 %v1620_v34, %v4990_v15  ;;  %v4993_v34 = vld [vmem:[#allocation30_spill] sm:$0xff] }
 0x376   : > { %v1822_v0 = vadd.f32 %v1821_v14, %v1616_v49 }
 0x37a   : > { %v1978_v7 = vpop.f32.mrf.mxu2 }
 0x37b   : > { %v2121_v46 = vpop.f32.mrf.mxu3  ;;  %v1979_v1 = vadd.f32 %v1978_v7, %v1816_v6 }
 0x37c   : > { %v4126_v22 = vadd.f32 %v2121_v46, %v1975_v13  ;;  %v1625_v53 = vpop.f32.mrf.mxu0  ;;  %v4992_v13 = vld [vmem:[#allocation29_spill] sm:$0xff] }
 0x37d   : > { %v1827_v24 = vpop.f32.mrf.mxu1  ;;  %v1626_v16 = vadd.f32 %v1625_v53, %v4991_v44 }
 0x37e   : > { %v1828_v35 = vadd.f32 %v1827_v24, %v1621_v48 }
 0x382   : > { %v1982_v29 = vpop.f32.mrf.mxu2 }
 0x383   : > { %v2125_v36 = vpop.f32.mrf.mxu3  ;;  %v1983_v41 = vadd.f32 %v1982_v29, %v1822_v0 }
 0x384   : > { %v4129_v42 = vadd.f32 %v2125_v36, %v1979_v1  ;;  %v1630_v56 = vpop.f32.mrf.mxu0 }
 0x385   : > { %v1833_v62 = vpop.f32.mrf.mxu1  ;;  %v1631_v7 = vadd.f32 %v1630_v56, %v4992_v13 }
 0x386   : > { %v1834_v57 = vadd.f32 %v1833_v62, %v1626_v16 }
 0x38a   : > { %v1986_v38 = vpop.f32.mrf.mxu2 }
 0x38b   : > { %v2129_v60 = vpop.f32.mrf.mxu3  ;;  %v1987_v10 = vadd.f32 %v1986_v38, %v1828_v35 }
 0x38c   : > { %v4132_v19 = vadd.f32 %v2129_v60, %v1983_v41  ;;  %v1635_v46 = vpop.f32.mrf.mxu0 }
 0x38d   : > { %v1839_v50 = vpop.f32.mrf.mxu1  ;;  %v1636_v36 = vadd.f32 %v1635_v46, %v4993_v34 }
 0x38e   : > { %v1840_v14 = vadd.f32 %v1839_v50, %v1631_v7 }
 0x392   : > { %v1990_v51 = vpop.f32.mrf.mxu2 }
 0x393   : > { %v2133_v59 = vpop.f32.mrf.mxu3  ;;  %v1991_v30 = vadd.f32 %v1990_v51, %v1834_v57 }
 0x394   : > { %v4135_v2 = vadd.f32 %v2133_v59, %v1987_v10  ;;  %v1640_v49 = vpop.f32.mrf.mxu0 }
 0x395   : > { %v1845_v32 = vpop.f32.mrf.mxu1  ;;  %v1641_v60 = vadd.f32 %v1640_v49, %v3966_v3 }
 0x396   : > { %v1846_v24 = vadd.f32 %v1845_v32, %v1636_v36 }
 0x39a   : > { %v1994_v28 = vpop.f32.mrf.mxu2 }
 0x39b   : > { %v2137_v4 = vpop.f32.mrf.mxu3  ;;  %v1995_v40 = vadd.f32 %v1994_v28, %v1840_v14 }
 0x39c   : > { %v4138_v5 = vadd.f32 %v2137_v4, %v1991_v30 }
 0x39d   : > { %v1851_v38 = vpop.f32.mrf.mxu1 }
 0x39e   : > { %v1852_v15 = vadd.f32 %v1851_v38, %v1641_v60 }
 0x3a2   : > { %v1998_v29 = vpop.f32.mrf.mxu2 }
 0x3a3   : > { %v2141_v6 = vpop.f32.mrf.mxu3  ;;  %v1999_v37 = vadd.f32 %v1998_v29, %v1846_v24 }
 0x3a4   : > { %v4141_v1 = vadd.f32 %v2141_v6, %v1995_v40 }
 0x3aa   : > { %v2002_v53 = vpop.f32.mrf.mxu2 }
 0x3ab   : > { %v2145_v0 = vpop.f32.mrf.mxu3  ;;  %v2003_v48 = vadd.f32 %v2002_v53, %v1852_v15 }
 0x3ac   : > { %v4144_v41 = vadd.f32 %v2145_v0, %v1999_v37 }
 0x3b0   : > { %2155 = sbr.rel (%p3077_p10) target bundleno = 1149 (0x47d), region = 44 }
 0x3b3   : > { %v2149_v62 = vpop.f32.mrf.mxu3 }
 0x3b4   : > { %v4147_v35 = vadd.f32 %v2149_v62, %v2003_v48 }
 0x3b5   : > { %v2160_v10 = vld [vmem:[%s4842_s4 + $0x20] sm:$0xff]  ;;  %v2158_v51 = vld [vmem:[%s4842_s4 + $0x10] sm:$0xff]  ;;  %v3187_v59 = vmov 0   ;;  %v2161_v44 = vld [vmem:[%s4842_s4 + $0x28] sm:$0xff] }
 0x3b6   : > { %v2156_v3 = vld [vmem:[%s4842_s4] sm:$0xff]  ;;  %3146 = vset.pattern.permute.xlu2 %v3187_v59  ;;  %3145 = vset.pattern.permute.xlu1 %v3187_v59  ;;  %v2159_v16 = vld [vmem:[%s4842_s4 + $0x18] sm:$0xff]  ;;  %v2157_v56 = vld [vmem:[%s4842_s4 + $0x8] sm:$0xff] }
 0x3b7   : > { %3144 = vset.pattern.permute.xlu0 %v3187_v59  ;;  %2210 = vperm.xlu2 %3146, %v2160_v10   ;;  %v2164_v57 = vld [vmem:[%s4842_s4 + $0x40] sm:$0xff]  ;;  %v2163_v50 = vld [vmem:[%s4842_s4 + $0x38] sm:$0xff]  ;;  %v2162_v30 = vld [vmem:[%s4842_s4 + $0x30] sm:$0xff] }
 0x3b8   : > { %2200 = vperm.xlu1 %3145, %v2158_v51   ;;  %2190 = vperm.xlu0 %3144, %v2156_v3   ;;  %v2167_v28 = vld [vmem:[%s4842_s4 + $0x58] sm:$0xff]  ;;  %v2166_v4 = vld [vmem:[%s4842_s4 + $0x50] sm:$0xff]  ;;  %v2165_v13 = vld [vmem:[%s4842_s4 + $0x48] sm:$0xff] }
 0x3b9   : > { %v2170_v7 = vld [vmem:[%s4842_s4 + $0x70] sm:$0xff]  ;;  %v2169_v14 = vld [vmem:[%s4842_s4 + $0x68] sm:$0xff]  ;;  %v2168_v46 = vld [vmem:[%s4842_s4 + $0x60] sm:$0xff] }
 0x3ba   : > { %v2173_v40 = vld [vmem:[%s4842_s4 + $0x88] sm:$0xff]  ;;  %v2172_v32 = vld [vmem:[%s4842_s4 + $0x80] sm:$0xff]  ;;  %v2171_v6 = vld [vmem:[%s4842_s4 + $0x78] sm:$0xff] }
 0x3bb   : > { %v2176_v29 = vld [vmem:[%s4842_s4 + $0xa0] sm:$0xff]  ;;  %v2175_v34 = vld [vmem:[%s4842_s4 + $0x98] sm:$0xff]  ;;  %v2174_v36 = vld [vmem:[%s4842_s4 + $0x90] sm:$0xff] }
 0x3bc   : > { %v2179_v24 = vld [vmem:[%s4842_s4 + $0xb8] sm:$0xff]  ;;  %v2178_v37 = vld [vmem:[%s4842_s4 + $0xb0] sm:$0xff]  ;;  %v2177_v49 = vld [vmem:[%s4842_s4 + $0xa8] sm:$0xff] }
 0x3bd   : > { %v2182_v0 = vld [vmem:[%s4842_s4 + $0xd0] sm:$0xff]  ;;  %v2181_v38 = vld [vmem:[%s4842_s4 + $0xc8] sm:$0xff]  ;;  %v2180_v60 = vld [vmem:[%s4842_s4 + $0xc0] sm:$0xff] }
 0x3be   : > { %v2185_v53 = vld [vmem:[%s4842_s4 + $0xe8] sm:$0xff]  ;;  %v2184_v15 = vld [vmem:[%s4842_s4 + $0xe0] sm:$0xff]  ;;  %v2183_v48 = vld [vmem:[%s4842_s4 + $0xd8] sm:$0xff] }
 0x3bf   : > { %2215 = vperm.xlu2 %3146, %v2161_v44   ;;  %v2187_v62 = vld [vmem:[%s4842_s4 + $0xf8] sm:$0xff]  ;;  %v2186_v10 = vld [vmem:[%s4842_s4 + $0xf0] sm:$0xff] }
 0x3c0   : > { %2205 = vperm.xlu1 %3145, %v2159_v16   ;;  %2195 = vperm.xlu0 %3144, %v2157_v56  }
 0x3c7   : > { %2230 = vperm.xlu2 %3146, %v2164_v57  }
 0x3c8   : > { %2225 = vperm.xlu1 %3145, %v2163_v50   ;;  %2220 = vperm.xlu0 %3144, %v2162_v30  }
 0x3cf   : > { %2245 = vperm.xlu2 %3146, %v2167_v28  }
 0x3d0   : > { %2240 = vperm.xlu1 %3145, %v2166_v4   ;;  %2235 = vperm.xlu0 %3144, %v2165_v13  }
 0x3d7   : > { %2260 = vperm.xlu2 %3146, %v2170_v7  }
 0x3d8   : > { %2255 = vperm.xlu1 %3145, %v2169_v14   ;;  %2250 = vperm.xlu0 %3144, %v2168_v46  }
 0x3df   : > { %2275 = vperm.xlu2 %3146, %v2173_v40  }
 0x3e0   : > { %2270 = vperm.xlu1 %3145, %v2172_v32   ;;  %2265 = vperm.xlu0 %3144, %v2171_v6  }
 0x3e7   : > { %2290 = vperm.xlu2 %3146, %v2176_v29  }
 0x3e8   : > { %2285 = vperm.xlu1 %3145, %v2175_v34   ;;  %2280 = vperm.xlu0 %3144, %v2174_v36  }
 0x3ef   : > { %2305 = vperm.xlu2 %3146, %v2179_v24  }
 0x3f0   : > { %2300 = vperm.xlu1 %3145, %v2178_v37   ;;  %2295 = vperm.xlu0 %3144, %v2177_v49  }
 0x3f7   : > { %2320 = vperm.xlu2 %3146, %v2182_v0  }
 0x3f8   : > { %2315 = vperm.xlu1 %3145, %v2181_v38   ;;  %2310 = vperm.xlu0 %3144, %v2180_v60  }
 0x3ff   : > { %2335 = vperm.xlu2 %3146, %v2185_v53  }
 0x400   : > { %2330 = vperm.xlu1 %3145, %v2184_v15   ;;  %2325 = vperm.xlu0 %3144, %v2183_v48  }
 0x408   : > { %2345 = vperm.xlu1 %3145, %v2187_v62   ;;  %2340 = vperm.xlu0 %3144, %v2186_v10  }
 0x411   : > { %v2211_v51 = vpop.permute.xlu2 %2210 }
 0x412   : > { %2352 = vst.msk [vmem:[%s3273_s19 + $0x20] sm:$0xff] %vm859_vm1, %v2211_v51 }
 0x419   : > { %v2216_v3 = vpop.permute.xlu2 %2215 }
 0x41a   : > { %2353 = vst.msk [vmem:[%s3273_s19 + $0x28] sm:$0xff] %vm859_vm1, %v2216_v3 }
 0x421   : > { %v2231_v59 = vpop.permute.xlu2 %2230 }
 0x422   : > { %2356 = vst.msk [vmem:[%s3273_s19 + $0x40] sm:$0xff] %vm859_vm1, %v2231_v59 }
 0x429   : > { %v2246_v44 = vpop.permute.xlu2 %2245 }
 0x42a   : > { %2359 = vst.msk [vmem:[%s3273_s19 + $0x58] sm:$0xff] %vm859_vm1, %v2246_v44  ;;  %v2201_v16 = vpop.permute.xlu1 %2200  ;;  %v2191_v56 = vpop.permute.xlu0 %2190 }
 0x42b   : > { %2350 = vst.msk [vmem:[%s3273_s19 + $0x10] sm:$0xff] %vm859_vm1, %v2201_v16 }
 0x42c   : > { %2348 = vst.msk [vmem:[%s3273_s19] sm:$0xff] %vm859_vm1, %v2191_v56 }
 0x431   : > { %v2261_v57 = vpop.permute.xlu2 %2260 }
 0x432   : > { %2362 = vst.msk [vmem:[%s3273_s19 + $0x70] sm:$0xff] %vm859_vm1, %v2261_v57  ;;  %v2206_v50 = vpop.permute.xlu1 %2205  ;;  %v2196_v30 = vpop.permute.xlu0 %2195 }
 0x433   : > { %2351 = vst.msk [vmem:[%s3273_s19 + $0x18] sm:$0xff] %vm859_vm1, %v2206_v50 }
 0x434   : > { %2349 = vst.msk [vmem:[%s3273_s19 + $0x8] sm:$0xff] %vm859_vm1, %v2196_v30 }
 0x439   : > { %v2276_v28 = vpop.permute.xlu2 %2275 }
 0x43a   : > { %2365 = vst.msk [vmem:[%s3273_s19 + $0x88] sm:$0xff] %vm859_vm1, %v2276_v28  ;;  %v2226_v4 = vpop.permute.xlu1 %2225  ;;  %v2221_v13 = vpop.permute.xlu0 %2220 }
 0x43b   : > { %2355 = vst.msk [vmem:[%s3273_s19 + $0x38] sm:$0xff] %vm859_vm1, %v2226_v4 }
 0x43c   : > { %2354 = vst.msk [vmem:[%s3273_s19 + $0x30] sm:$0xff] %vm859_vm1, %v2221_v13 }
 0x441   : > { %v2291_v7 = vpop.permute.xlu2 %2290 }
 0x442   : > { %2368 = vst.msk [vmem:[%s3273_s19 + $0xa0] sm:$0xff] %vm859_vm1, %v2291_v7  ;;  %v2241_v14 = vpop.permute.xlu1 %2240  ;;  %v2236_v46 = vpop.permute.xlu0 %2235 }
 0x443   : > { %2358 = vst.msk [vmem:[%s3273_s19 + $0x50] sm:$0xff] %vm859_vm1, %v2241_v14 }
 0x444   : > { %2357 = vst.msk [vmem:[%s3273_s19 + $0x48] sm:$0xff] %vm859_vm1, %v2236_v46 }
 0x449   : > { %v2306_v40 = vpop.permute.xlu2 %2305 }
 0x44a   : > { %2371 = vst.msk [vmem:[%s3273_s19 + $0xb8] sm:$0xff] %vm859_vm1, %v2306_v40  ;;  %v2256_v32 = vpop.permute.xlu1 %2255  ;;  %v2251_v6 = vpop.permute.xlu0 %2250 }
 0x44b   : > { %2361 = vst.msk [vmem:[%s3273_s19 + $0x68] sm:$0xff] %vm859_vm1, %v2256_v32 }
 0x44c   : > { %2360 = vst.msk [vmem:[%s3273_s19 + $0x60] sm:$0xff] %vm859_vm1, %v2251_v6 }
 0x451   : > { %v2321_v29 = vpop.permute.xlu2 %2320 }
 0x452   : > { %2374 = vst.msk [vmem:[%s3273_s19 + $0xd0] sm:$0xff] %vm859_vm1, %v2321_v29  ;;  %v2271_v34 = vpop.permute.xlu1 %2270  ;;  %v2266_v36 = vpop.permute.xlu0 %2265 }
 0x453   : > { %2364 = vst.msk [vmem:[%s3273_s19 + $0x80] sm:$0xff] %vm859_vm1, %v2271_v34 }
 0x454   : > { %2363 = vst.msk [vmem:[%s3273_s19 + $0x78] sm:$0xff] %vm859_vm1, %v2266_v36 }
 0x459   : > { %v2336_v24 = vpop.permute.xlu2 %2335 }
 0x45a   : > { %2377 = vst.msk [vmem:[%s3273_s19 + $0xe8] sm:$0xff] %vm859_vm1, %v2336_v24  ;;  %v2286_v37 = vpop.permute.xlu1 %2285  ;;  %v2281_v49 = vpop.permute.xlu0 %2280 }
 0x45b   : > { %2367 = vst.msk [vmem:[%s3273_s19 + $0x98] sm:$0xff] %vm859_vm1, %v2286_v37 }
 0x45c   : > { %2366 = vst.msk [vmem:[%s3273_s19 + $0x90] sm:$0xff] %vm859_vm1, %v2281_v49 }
 0x462   : > { %v2301_v0 = vpop.permute.xlu1 %2300  ;;  %v2296_v38 = vpop.permute.xlu0 %2295 }
 0x463   : > { %2370 = vst.msk [vmem:[%s3273_s19 + $0xb0] sm:$0xff] %vm859_vm1, %v2301_v0 }
 0x464   : > { %2369 = vst.msk [vmem:[%s3273_s19 + $0xa8] sm:$0xff] %vm859_vm1, %v2296_v38 }
 0x46a   : > { %v2316_v60 = vpop.permute.xlu1 %2315  ;;  %v2311_v53 = vpop.permute.xlu0 %2310 }
 0x46b   : > { %2373 = vst.msk [vmem:[%s3273_s19 + $0xc8] sm:$0xff] %vm859_vm1, %v2316_v60 }
 0x46c   : > { %2372 = vst.msk [vmem:[%s3273_s19 + $0xc0] sm:$0xff] %vm859_vm1, %v2311_v53 }
 0x472   : > { %v2331_v15 = vpop.permute.xlu1 %2330  ;;  %v2326_v48 = vpop.permute.xlu0 %2325 }
 0x473   : > { %2376 = vst.msk [vmem:[%s3273_s19 + $0xe0] sm:$0xff] %vm859_vm1, %v2331_v15 }
 0x474   : > { %2375 = vst.msk [vmem:[%s3273_s19 + $0xd8] sm:$0xff] %vm859_vm1, %v2326_v48 }
 0x47a   : > { %v2346_v62 = vpop.permute.xlu1 %2345  ;;  %v2341_v10 = vpop.permute.xlu0 %2340 }
 0x47b   : > { %2379 = vst.msk [vmem:[%s3273_s19 + $0xf8] sm:$0xff] %vm859_vm1, %v2346_v62 }
 0x47c   : > { %2378 = vst.msk [vmem:[%s3273_s19 + $0xf0] sm:$0xff] %vm859_vm1, %v2341_v10 }
 0x47d PF: > { %v2380_v51 = vld [vmem:[%s3273_s19] sm:$0xff]  ;;  %v2381_v3 = vld [vmem:[%s3273_s19 + $0x8] sm:$0xff]  ;;  %v2382_v59 = vld [vmem:[%s3273_s19 + $0x10] sm:$0xff]  ;;  %p3078_p11 = scmp.ne.s32.totalorder %s3169_s24, 2 }
 0x47e   : > { %v2412_v44 = vadd.f32 %v2380_v51, %v3975_v23  ;;  %v2413_v16 = vadd.f32 %v2381_v3, %v3984_v26  ;;  %v2414_v56 = vadd.f32 %v2382_v59, %v3993_v47  ;;  %v2383_v57 = vld [vmem:[%s3273_s19 + $0x18] sm:$0xff]  ;;  %v2384_v50 = vld [vmem:[%s3273_s19 + $0x20] sm:$0xff]  ;;  %v2385_v30 = vld [vmem:[%s3273_s19 + $0x28] sm:$0xff] }
 0x47f   : > { %v2415_v28 = vadd.f32 %v2383_v57, %v4002_v9  ;;  %v2386_v4 = vld [vmem:[%s3273_s19 + $0x30] sm:$0xff]  ;;  %v2416_v23 = vadd.f32 %v2384_v50, %v4013_v25  ;;  %v2387_v13 = vld [vmem:[%s3273_s19 + $0x38] sm:$0xff]  ;;  %v2417_v26 = vadd.f32 %v2385_v30, %v4024_v58  ;;  %v2388_v47 = vld [vmem:[%s3273_s19 + $0x40] sm:$0xff] }
 0x480   : > { %2444 = vst.msk [vmem:[%s3273_s19] sm:$0xff] %vm859_vm1, %v2412_v44  ;;  %v2418_v9 = vadd.f32 %v2386_v4, %v4035_v21  ;;  %v2389_v7 = vld [vmem:[%s3273_s19 + $0x48] sm:$0xff]  ;;  %v2419_v25 = vadd.f32 %v2387_v13, %v4044_v17  ;;  %v2390_v14 = vld [vmem:[%s3273_s19 + $0x50] sm:$0xff]  ;;  %v2420_v58 = vadd.f32 %v2388_v47, %v4053_v39  ;;  %v2391_v46 = vld [vmem:[%s3273_s19 + $0x58] sm:$0xff] }
 0x481   : > { %2445 = vst.msk [vmem:[%s3273_s19 + $0x8] sm:$0xff] %vm859_vm1, %v2413_v16  ;;  %v2421_v21 = vadd.f32 %v2389_v7, %v4062_v33  ;;  %v2392_v40 = vld [vmem:[%s3273_s19 + $0x60] sm:$0xff]  ;;  %v2422_v17 = vadd.f32 %v2390_v14, %v4071_v54  ;;  %v2393_v32 = vld [vmem:[%s3273_s19 + $0x68] sm:$0xff]  ;;  %v2423_v39 = vadd.f32 %v2391_v46, %v4078_v27  ;;  %v2394_v6 = vld [vmem:[%s3273_s19 + $0x70] sm:$0xff] }
 0x482   : > { %2446 = vst.msk [vmem:[%s3273_s19 + $0x10] sm:$0xff] %vm859_vm1, %v2414_v56  ;;  %v2424_v33 = vadd.f32 %v2392_v40, %v4086_v31  ;;  %v2395_v29 = vld [vmem:[%s3273_s19 + $0x78] sm:$0xff]  ;;  %v2425_v54 = vadd.f32 %v2393_v32, %v4093_v18  ;;  %v2396_v34 = vld [vmem:[%s3273_s19 + $0x80] sm:$0xff]  ;;  %v2426_v27 = vadd.f32 %v2394_v6, %v4098_v63  ;;  %v2397_v36 = vld [vmem:[%s3273_s19 + $0x88] sm:$0xff] }
 0x483   : > { %2447 = vst.msk [vmem:[%s3273_s19 + $0x18] sm:$0xff] %vm859_vm1, %v2415_v28  ;;  %v2427_v31 = vadd.f32 %v2395_v29, %v4102_v12  ;;  %v2398_v24 = vld [vmem:[%s3273_s19 + $0x90] sm:$0xff]  ;;  %v2428_v18 = vadd.f32 %v2396_v34, %v4105_v55  ;;  %v2399_v37 = vld [vmem:[%s3273_s19 + $0x98] sm:$0xff]  ;;  %v2429_v63 = vadd.f32 %v2397_v36, %v4108_v8  ;;  %v2400_v49 = vld [vmem:[%s3273_s19 + $0xa0] sm:$0xff] }
 0x484   : > { %2448 = vst.msk [vmem:[%s3273_s19 + $0x20] sm:$0xff] %vm859_vm1, %v2416_v23  ;;  %v2430_v12 = vadd.f32 %v2398_v24, %v4111_v52  ;;  %v2401_v0 = vld [vmem:[%s3273_s19 + $0xa8] sm:$0xff]  ;;  %v2431_v55 = vadd.f32 %v2399_v37, %v4114_v20  ;;  %v2402_v38 = vld [vmem:[%s3273_s19 + $0xb0] sm:$0xff]  ;;  %v2432_v8 = vadd.f32 %v2400_v49, %v4117_v61  ;;  %v2403_v60 = vld [vmem:[%s3273_s19 + $0xb8] sm:$0xff] }
 0x485   : > { %2449 = vst.msk [vmem:[%s3273_s19 + $0x28] sm:$0xff] %vm859_vm1, %v2417_v26  ;;  %v2433_v52 = vadd.f32 %v2401_v0, %v4119_v43  ;;  %v2404_v53 = vld [vmem:[%s3273_s19 + $0xc0] sm:$0xff]  ;;  %v2434_v20 = vadd.f32 %v2402_v38, %v4121_v45  ;;  %v2405_v15 = vld [vmem:[%s3273_s19 + $0xc8] sm:$0xff]  ;;  %v2435_v61 = vadd.f32 %v2403_v60, %v4123_v11  ;;  %v2406_v48 = vld [vmem:[%s3273_s19 + $0xd0] sm:$0xff] }
 0x486   : > { %2450 = vst.msk [vmem:[%s3273_s19 + $0x30] sm:$0xff] %vm859_vm1, %v2418_v9  ;;  %v2436_v43 = vadd.f32 %v2404_v53, %v4126_v22  ;;  %v2407_v62 = vld [vmem:[%s3273_s19 + $0xd8] sm:$0xff]  ;;  %v2437_v45 = vadd.f32 %v2405_v15, %v4129_v42  ;;  %v2408_v10 = vld [vmem:[%s3273_s19 + $0xe0] sm:$0xff]  ;;  %v2438_v11 = vadd.f32 %v2406_v48, %v4132_v19  ;;  %v2409_v51 = vld [vmem:[%s3273_s19 + $0xe8] sm:$0xff] }
 0x487   : > { %2451 = vst.msk [vmem:[%s3273_s19 + $0x38] sm:$0xff] %vm859_vm1, %v2419_v25  ;;  %v2439_v22 = vadd.f32 %v2407_v62, %v4135_v2  ;;  %v2410_v3 = vld [vmem:[%s3273_s19 + $0xf0] sm:$0xff]  ;;  %v2440_v59 = vadd.f32 %v2408_v10, %v4138_v5  ;;  %v2411_v42 = vld [vmem:[%s3273_s19 + $0xf8] sm:$0xff]  ;;  %v2441_v44 = vadd.f32 %v2409_v51, %v4141_v1 }
 0x488   : > { %2452 = vst.msk [vmem:[%s3273_s19 + $0x40] sm:$0xff] %vm859_vm1, %v2420_v58  ;;  %v2442_v19 = vadd.f32 %v2410_v3, %v4144_v41  ;;  %v2443_v16 = vadd.f32 %v2411_v42, %v4147_v35 }
 0x489   : > { %2453 = vst.msk [vmem:[%s3273_s19 + $0x48] sm:$0xff] %vm859_vm1, %v2421_v21 }
 0x48a   : > { %2454 = vst.msk [vmem:[%s3273_s19 + $0x50] sm:$0xff] %vm859_vm1, %v2422_v17 }
 0x48b   : > { %2455 = vst.msk [vmem:[%s3273_s19 + $0x58] sm:$0xff] %vm859_vm1, %v2423_v39 }
 0x48c   : > { %2456 = vst.msk [vmem:[%s3273_s19 + $0x60] sm:$0xff] %vm859_vm1, %v2424_v33 }
 0x48d   : > { %2457 = vst.msk [vmem:[%s3273_s19 + $0x68] sm:$0xff] %vm859_vm1, %v2425_v54 }
 0x48e   : > { %2458 = vst.msk [vmem:[%s3273_s19 + $0x70] sm:$0xff] %vm859_vm1, %v2426_v27 }
 0x48f   : > { %2459 = vst.msk [vmem:[%s3273_s19 + $0x78] sm:$0xff] %vm859_vm1, %v2427_v31 }
 0x490   : > { %2460 = vst.msk [vmem:[%s3273_s19 + $0x80] sm:$0xff] %vm859_vm1, %v2428_v18 }
 0x491   : > { %2461 = vst.msk [vmem:[%s3273_s19 + $0x88] sm:$0xff] %vm859_vm1, %v2429_v63 }
 0x492   : > { %2462 = vst.msk [vmem:[%s3273_s19 + $0x90] sm:$0xff] %vm859_vm1, %v2430_v12 }
 0x493   : > { %2463 = vst.msk [vmem:[%s3273_s19 + $0x98] sm:$0xff] %vm859_vm1, %v2431_v55 }
 0x494   : > { %2464 = vst.msk [vmem:[%s3273_s19 + $0xa0] sm:$0xff] %vm859_vm1, %v2432_v8 }
 0x495   : > { %2465 = vst.msk [vmem:[%s3273_s19 + $0xa8] sm:$0xff] %vm859_vm1, %v2433_v52 }
 0x496   : > { %2466 = vst.msk [vmem:[%s3273_s19 + $0xb0] sm:$0xff] %vm859_vm1, %v2434_v20 }
 0x497   : > { %2467 = vst.msk [vmem:[%s3273_s19 + $0xb8] sm:$0xff] %vm859_vm1, %v2435_v61 }
 0x498   : > { %2468 = vst.msk [vmem:[%s3273_s19 + $0xc0] sm:$0xff] %vm859_vm1, %v2436_v43 }
 0x499   : > { %2469 = vst.msk [vmem:[%s3273_s19 + $0xc8] sm:$0xff] %vm859_vm1, %v2437_v45 }
 0x49a   : > { %2470 = vst.msk [vmem:[%s3273_s19 + $0xd0] sm:$0xff] %vm859_vm1, %v2438_v11 }
 0x49b   : > { %2471 = vst.msk [vmem:[%s3273_s19 + $0xd8] sm:$0xff] %vm859_vm1, %v2439_v22  ;;  %2479 = sbr.rel (%p3078_p11) target bundleno = 1471 (0x5bf), region = 48 }
 0x49c   : > { %2472 = vst.msk [vmem:[%s3273_s19 + $0xe0] sm:$0xff] %vm859_vm1, %v2440_v59 }
 0x49d   : > { %2473 = vst.msk [vmem:[%s3273_s19 + $0xe8] sm:$0xff] %vm859_vm1, %v2441_v44 }
 0x49e   : > { %2474 = vst.msk [vmem:[%s3273_s19 + $0xf0] sm:$0xff] %vm859_vm1, %v2442_v19 }
 0x49f   : > { %2475 = vst.msk [vmem:[%s3273_s19 + $0xf8] sm:$0xff] %vm859_vm1, %v2443_v16 }
 0x4a0   : > { %v4440_v2 = vld [vmem:[%s3273_s19] sm:$0xff]  ;;  %v4446_v1 = vld [vmem:[%s3273_s19 + $0x10] sm:$0xff]  ;;  %v4455_v57 = vld [vmem:[%s3273_s19 + $0x8] sm:$0xff]  ;;  %vm2608_vm6 = vcmask 7168  }
 0x4a1   : > { %v4443_v5 = vld [vmem:[%s3273_s19 + $0x20] sm:$0xff]  ;;  %v2512_v41 = vsel %vm859_vm1, %v4440_v2, 0.0  ;;  %v2518_v56 = vsel %vm859_vm1, %v4446_v1, 0.0  ;;  %v4458_v50 = vld [vmem:[%s3273_s19 + $0x28] sm:$0xff]  ;;  %v4461_v30 = vld [vmem:[%s3273_s19 + $0x18] sm:$0xff]  ;;  %v2515_v28 = vsel %vm859_vm1, %v4455_v57, 0.0  ;;  %v2641_v42 = vmul.f32 %v4440_v2, %v4440_v2 }
 0x4a2   : > { %v2524_v35 = vsel %vm859_vm1, %v4443_v5, 0.0  ;;  %2513 = vadd.xlane.f32.xlu0 %v2512_v41  ;;  %2519 = vadd.xlane.f32.xlu1 %v2518_v56  ;;  %v2527_v4 = vsel %vm859_vm1, %v4458_v50, 0.0  ;;  %v2521_v23 = vsel %vm859_vm1, %v4461_v30, 0.0  ;;  %v4470_v13 = vld [vmem:[%s3273_s19 + $0x30] sm:$0xff]  ;;  %v4473_v26 = vld [vmem:[%s3273_s19 + $0x40] sm:$0xff]  ;;  %v4476_v47 = vld [vmem:[%s3273_s19 + $0x38] sm:$0xff]  ;;  %v2642_v56 = vmul.f32 %v4455_v57, %v4455_v57 }
 0x4a3   : > { %2525 = vadd.xlane.f32.xlu2 %v2524_v35  ;;  %v2530_v9 = vsel %vm859_vm1, %v4470_v13, 0.0  ;;  %v2536_v7 = vsel %vm859_vm1, %v4473_v26, 0.0  ;;  %v2533_v25 = vsel %vm859_vm1, %v4476_v47, 0.0  ;;  %v4485_v14 = vld [vmem:[%s3273_s19 + $0x48] sm:$0xff]  ;;  %v4488_v58 = vld [vmem:[%s3273_s19 + $0x58] sm:$0xff]  ;;  %v4491_v46 = vld [vmem:[%s3273_s19 + $0x50] sm:$0xff]  ;;  %v2644_v2 = vmul.f32 %v4461_v30, %v4461_v30 }
 0x4a4   : > { %v2539_v21 = vsel %vm859_vm1, %v4485_v14, 0.0  ;;  %v2545_v40 = vsel %vm859_vm1, %v4488_v58, 0.0  ;;  %v2542_v17 = vsel %vm859_vm1, %v4491_v46, 0.0  ;;  %v4500_v32 = vld [vmem:[%s3273_s19 + $0x60] sm:$0xff]  ;;  %v4503_v39 = vld [vmem:[%s3273_s19 + $0x70] sm:$0xff]  ;;  %v4506_v6 = vld [vmem:[%s3273_s19 + $0x68] sm:$0xff]  ;;  %v2647_v57 = vmul.f32 %v4470_v13, %v4470_v13 }
 0x4a5   : > { %v2548_v33 = vsel %vm859_vm1, %v4500_v32, 0.0  ;;  %v2554_v29 = vsel %vm859_vm1, %v4503_v39, 0.0  ;;  %v2551_v54 = vsel %vm859_vm1, %v4506_v6, 0.0  ;;  %v4515_v34 = vld [vmem:[%s3273_s19 + $0x78] sm:$0xff]  ;;  %v4518_v27 = vld [vmem:[%s3273_s19 + $0x88] sm:$0xff]  ;;  %v4521_v36 = vld [vmem:[%s3273_s19 + $0x80] sm:$0xff]  ;;  %v2646_v30 = vmul.f32 %v4458_v50, %v4458_v50 }
 0x4a6   : > { %v2557_v31 = vsel %vm859_vm1, %v4515_v34, 0.0  ;;  %v2563_v24 = vsel %vm859_vm1, %v4518_v27, 0.0  ;;  %v2560_v18 = vsel %vm859_vm1, %v4521_v36, 0.0  ;;  %v4530_v37 = vld [vmem:[%s3273_s19 + $0x90] sm:$0xff]  ;;  %v4533_v63 = vld [vmem:[%s3273_s19 + $0xa0] sm:$0xff]  ;;  %v4536_v49 = vld [vmem:[%s3273_s19 + $0x98] sm:$0xff]  ;;  %v2649_v13 = vmul.f32 %v4473_v26, %v4473_v26 }
 0x4a7   : > { %v2566_v12 = vsel %vm859_vm1, %v4530_v37, 0.0  ;;  %v2572_v0 = vsel %vm859_vm1, %v4533_v63, 0.0  ;;  %v2569_v55 = vsel %vm859_vm1, %v4536_v49, 0.0  ;;  %v4545_v38 = vld [vmem:[%s3273_s19 + $0xa8] sm:$0xff]  ;;  %v4548_v8 = vld [vmem:[%s3273_s19 + $0xb8] sm:$0xff]  ;;  %v4551_v60 = vld [vmem:[%s3273_s19 + $0xb0] sm:$0xff] }
 0x4a8   : > { %v2575_v52 = vsel %vm859_vm1, %v4545_v38, 0.0  ;;  %v2581_v53 = vsel %vm859_vm1, %v4548_v8, 0.0  ;;  %v2578_v20 = vsel %vm859_vm1, %v4551_v60, 0.0  ;;  %v4560_v15 = vld [vmem:[%s3273_s19 + $0xc0] sm:$0xff]  ;;  %v4563_v61 = vld [vmem:[%s3273_s19 + $0xd0] sm:$0xff]  ;;  %v4566_v48 = vld [vmem:[%s3273_s19 + $0xc8] sm:$0xff] }
 0x4a9   : > { %v2584_v43 = vsel %vm859_vm1, %v4560_v15, 0.0  ;;  %v2590_v62 = vsel %vm859_vm1, %v4563_v61, 0.0  ;;  %v2587_v45 = vsel %vm859_vm1, %v4566_v48, 0.0  ;;  %v4575_v10 = vld [vmem:[%s3273_s19 + $0xd8] sm:$0xff]  ;;  %v4578_v11 = vld [vmem:[%s3273_s19 + $0xe8] sm:$0xff]  ;;  %v4581_v51 = vld [vmem:[%s3273_s19 + $0xe0] sm:$0xff] }
 0x4aa   : > { %2516 = vadd.xlane.f32.xlu0 %v2515_v28  ;;  %2522 = vadd.xlane.f32.xlu1 %v2521_v23  ;;  %v2593_v22 = vsel %vm859_vm1, %v4575_v10, 0.0  ;;  %v2599_v3 = vsel %vm859_vm1, %v4578_v11, 0.0  ;;  %v2596_v59 = vsel %vm859_vm1, %v4581_v51, 0.0  ;;  %v4592_v44 = vld [vmem:[%s3273_s19 + $0xf0] sm:$0xff]  ;;  %v4595_v19 = vld [vmem:[%s3273_s19 + $0xf8] sm:$0xff]  ;;  %v2673_v41 = vsel %vm859_vm1, %v2641_v42, 0.0 }
 0x4ab   : > { %2528 = vadd.xlane.f32.xlu2 %v2527_v4  ;;  %v2602_v16 = vsel %vm859_vm1, %v4592_v44, 0.0  ;;  %v2605_v35 = vsel %vm859_vm1, %v4595_v19, 0.0  ;;  %v2643_v28 = vmul.f32 %v4446_v1, %v4446_v1  ;;  %v2676_v4 = vsel %vm859_vm1, %v2642_v56, 0.0 }
 0x4ac   : > { %v2682_v23 = vsel %vm859_vm1, %v2644_v2, 0.0 }
 0x4b2   : > { %2531 = vadd.xlane.f32.xlu0 %v2530_v9  ;;  %2534 = vadd.xlane.f32.xlu1 %v2533_v25  ;;  %v2679_v9 = vsel %vm859_vm1, %v2643_v28, 0.0  ;;  %v2691_v25 = vsel %vm859_vm1, %v2647_v57, 0.0 }
 0x4b3   : > { %2537 = vadd.xlane.f32.xlu2 %v2536_v7  ;;  %v2645_v7 = vmul.f32 %v4443_v5, %v4443_v5  ;;  %v2650_v5 = vmul.f32 %v4485_v14, %v4485_v14  ;;  %v2652_v14 = vmul.f32 %v4488_v58, %v4488_v58  ;;  %v2655_v58 = vmul.f32 %v4503_v39, %v4503_v39 }
 0x4b4   : > { %v2657_v39 = vmul.f32 %v4521_v36, %v4521_v36 }
 0x4b5   : > { %v2685_v1 = vsel %vm859_vm1, %v2645_v7, 0.0 }
 0x4ba   : > { %2540 = vadd.xlane.f32.xlu0 %v2539_v21  ;;  %2543 = vadd.xlane.f32.xlu1 %v2542_v17  ;;  %v2688_v21 = vsel %vm859_vm1, %v2646_v30, 0.0  ;;  %v2700_v17 = vsel %vm859_vm1, %v2650_v5, 0.0 }
 0x4bb   : > { %2546 = vadd.xlane.f32.xlu2 %v2545_v40  ;;  %v2648_v40 = vmul.f32 %v4476_v47, %v4476_v47  ;;  %v2653_v47 = vmul.f32 %v4500_v32, %v4500_v32  ;;  %v2656_v32 = vmul.f32 %v4515_v34, %v4515_v34  ;;  %v2659_v34 = vmul.f32 %v4530_v37, %v4530_v37 }
 0x4bc   : > { %v2662_v37 = vmul.f32 %v4545_v38, %v4545_v38  ;;  %v2665_v38 = vmul.f32 %v4560_v15, %v4560_v15  ;;  %v2668_v15 = vmul.f32 %v4575_v10, %v4575_v10  ;;  %v2671_v10 = vmul.f32 %v4592_v44, %v4592_v44 }
 0x4bd   : > { %v2694_v50 = vsel %vm859_vm1, %v2648_v40, 0.0 }
 0x4c2   : > { %2549 = vadd.xlane.f32.xlu0 %v2548_v33  ;;  %2552 = vadd.xlane.f32.xlu1 %v2551_v54  ;;  %v2697_v33 = vsel %vm859_vm1, %v2649_v13, 0.0  ;;  %v2709_v54 = vsel %vm859_vm1, %v2653_v47, 0.0 }
 0x4c3   : > { %2555 = vadd.xlane.f32.xlu2 %v2554_v29  ;;  %v2651_v29 = vmul.f32 %v4491_v46, %v4491_v46  ;;  %v2654_v46 = vmul.f32 %v4506_v6, %v4506_v6  ;;  %v2715_v6 = vsel %vm859_vm1, %v2655_v58, 0.0 }
 0x4c5   : > { %v2703_v26 = vsel %vm859_vm1, %v2651_v29, 0.0 }
 0x4ca   : > { %2558 = vadd.xlane.f32.xlu0 %v2557_v31  ;;  %2561 = vadd.xlane.f32.xlu1 %v2560_v18  ;;  %v2706_v31 = vsel %vm859_vm1, %v2652_v14, 0.0 }
 0x4cb   : > { %2564 = vadd.xlane.f32.xlu2 %v2563_v24 }
 0x4d2   : > { %2567 = vadd.xlane.f32.xlu0 %v2566_v12  ;;  %2570 = vadd.xlane.f32.xlu1 %v2569_v55  ;;  %v2718_v55 = vsel %vm859_vm1, %v2656_v32, 0.0 }
 0x4d3   : > { %2573 = vadd.xlane.f32.xlu2 %v2572_v0  ;;  %v2712_v0 = vsel %vm859_vm1, %v2654_v46, 0.0 }
 0x4da   : > { %2576 = vadd.xlane.f32.xlu0 %v2575_v52  ;;  %2579 = vadd.xlane.f32.xlu1 %v2578_v20  ;;  %v2658_v52 = vmul.f32 %v4518_v27, %v4518_v27  ;;  %v2660_v27 = vmul.f32 %v4536_v49, %v4536_v49 }
 0x4db   : > { %2582 = vadd.xlane.f32.xlu2 %v2581_v53 }
 0x4dc   : > { %v2724_v36 = vsel %vm859_vm1, %v2658_v52, 0.0 }
 0x4e2   : > { %2585 = vadd.xlane.f32.xlu0 %v2584_v43  ;;  %2588 = vadd.xlane.f32.xlu1 %v2587_v45  ;;  %v2727_v45 = vsel %vm859_vm1, %v2659_v34, 0.0 }
 0x4e3   : > { %2591 = vadd.xlane.f32.xlu2 %v2590_v62  ;;  %v2721_v62 = vsel %vm859_vm1, %v2657_v39, 0.0 }
 0x4ea   : > { %2594 = vadd.xlane.f32.xlu0 %v2593_v22  ;;  %2597 = vadd.xlane.f32.xlu1 %v2596_v59  ;;  %v2661_v22 = vmul.f32 %v4533_v63, %v4533_v63  ;;  %v2663_v63 = vmul.f32 %v4551_v60, %v4551_v60 }
 0x4eb   : > { %2600 = vadd.xlane.f32.xlu2 %v2599_v3 }
 0x4ec   : > { %v2733_v49 = vsel %vm859_vm1, %v2661_v22, 0.0 }
 0x4f2   : > { %2603 = vadd.xlane.f32.xlu0 %v2602_v16  ;;  %2606 = vadd.xlane.f32.xlu1 %v2605_v35  ;;  %v2730_v16 = vsel %vm859_vm1, %v2660_v27, 0.0  ;;  %v2664_v35 = vmul.f32 %v4548_v8, %v4548_v8  ;;  %v2666_v8 = vmul.f32 %v4566_v48, %v4566_v48 }
 0x4f3   : > { %2674 = vadd.xlane.f32.xlu2 %v2673_v41  ;;  %v2736_v41 = vsel %vm859_vm1, %v2662_v37, 0.0 }
 0x4f4   : > { %v2742_v60 = vsel %vm859_vm1, %v2664_v35, 0.0 }
 0x4fa   : > { %2677 = vadd.xlane.f32.xlu0 %v2676_v4  ;;  %2680 = vadd.xlane.f32.xlu1 %v2679_v9  ;;  %v2739_v4 = vsel %vm859_vm1, %v2663_v63, 0.0  ;;  %v2667_v9 = vmul.f32 %v4563_v61, %v4563_v61  ;;  %v2669_v61 = vmul.f32 %v4581_v51, %v4581_v51  ;;  %v2763_v51 = vsel %vm859_vm1, %v2671_v10, 0.0 }
 0x4fb   : > { %2683 = vadd.xlane.f32.xlu2 %v2682_v23  ;;  %v2745_v23 = vsel %vm859_vm1, %v2665_v38, 0.0 }
 0x4fc   : > { %v2751_v48 = vsel %vm859_vm1, %v2667_v9, 0.0 }
 0x502   : > { %2686 = vadd.xlane.f32.xlu0 %v2685_v1  ;;  %2689 = vadd.xlane.f32.xlu1 %v2688_v21  ;;  %v2748_v1 = vsel %vm859_vm1, %v2666_v8, 0.0  ;;  %v2670_v21 = vmul.f32 %v4578_v11, %v4578_v11  ;;  %v2672_v11 = vmul.f32 %v4595_v19, %v4595_v19 }
 0x503   : > { %2692 = vadd.xlane.f32.xlu2 %v2691_v25  ;;  %v2754_v25 = vsel %vm859_vm1, %v2668_v15, 0.0 }
 0x504   : > { %v2760_v44 = vsel %vm859_vm1, %v2670_v21, 0.0  ;;  %v2766_v47 = vsel %vm859_vm1, %v2672_v11, 0.0 }
 0x50a   : > { %2695 = vadd.xlane.f32.xlu0 %v2694_v50  ;;  %2698 = vadd.xlane.f32.xlu1 %v2697_v33  ;;  %v2757_v50 = vsel %vm859_vm1, %v2669_v61, 0.0 }
 0x50b   : > { %2701 = vadd.xlane.f32.xlu2 %v2700_v17 }
 0x512   : > { %2704 = vadd.xlane.f32.xlu0 %v2703_v26  ;;  %2707 = vadd.xlane.f32.xlu1 %v2706_v31 }
 0x513   : > { %2710 = vadd.xlane.f32.xlu2 %v2709_v54 }
 0x515   : > { %v2514_v24 = vpop.xlane.xlu0 %2513  ;;  %v2520_v12 = vpop.xlane.xlu1 %2519 }
 0x516   : > { %v2526_v18 = vpop.xlane.xlu2 %2525  ;;  %2609 = vst.msk [vmem:[%s3278_s22] sm:$0xff] %vm2608_vm6, %v2514_v24 }
 0x517   : > { %2613 = vst.msk [vmem:[%s3278_s22 + $0x20] sm:$0xff] %vm2608_vm6, %v2526_v18 }
 0x518   : > { %2611 = vst.msk [vmem:[%s3278_s22 + $0x10] sm:$0xff] %vm2608_vm6, %v2520_v12 }
 0x51a   : > { %2713 = vadd.xlane.f32.xlu0 %v2712_v0  ;;  %2716 = vadd.xlane.f32.xlu1 %v2715_v6 }
 0x51b   : > { %2719 = vadd.xlane.f32.xlu2 %v2718_v55 }
 0x51d   : > { %v2517_v53 = vpop.xlane.xlu0 %2516  ;;  %v2523_v43 = vpop.xlane.xlu1 %2522 }
 0x51e   : > { %v2529_v20 = vpop.xlane.xlu2 %2528  ;;  %2610 = vst.msk [vmem:[%s3278_s22 + $0x8] sm:$0xff] %vm2608_vm6, %v2517_v53 }
 0x51f   : > { %2614 = vst.msk [vmem:[%s3278_s22 + $0x28] sm:$0xff] %vm2608_vm6, %v2529_v20 }
 0x520   : > { %2612 = vst.msk [vmem:[%s3278_s22 + $0x18] sm:$0xff] %vm2608_vm6, %v2523_v43 }
 0x522   : > { %2722 = vadd.xlane.f32.xlu0 %v2721_v62  ;;  %2725 = vadd.xlane.f32.xlu1 %v2724_v36 }
 0x523   : > { %2728 = vadd.xlane.f32.xlu2 %v2727_v45 }
 0x525   : > { %v2532_v3 = vpop.xlane.xlu0 %2531  ;;  %v2535_v42 = vpop.xlane.xlu1 %2534 }
 0x526   : > { %v2538_v59 = vpop.xlane.xlu2 %2537  ;;  %2615 = vst.msk [vmem:[%s3278_s22 + $0x30] sm:$0xff] %vm2608_vm6, %v2532_v3 }
 0x527   : > { %2617 = vst.msk [vmem:[%s3278_s22 + $0x40] sm:$0xff] %vm2608_vm6, %v2538_v59 }
 0x528   : > { %2616 = vst.msk [vmem:[%s3278_s22 + $0x38] sm:$0xff] %vm2608_vm6, %v2535_v42 }
 0x52a   : > { %2731 = vadd.xlane.f32.xlu0 %v2730_v16  ;;  %2734 = vadd.xlane.f32.xlu1 %v2733_v49 }
 0x52b   : > { %2737 = vadd.xlane.f32.xlu2 %v2736_v41 }
 0x52d   : > { %v2541_v56 = vpop.xlane.xlu0 %2540  ;;  %v2544_v28 = vpop.xlane.xlu1 %2543 }
 0x52e   : > { %v2547_v2 = vpop.xlane.xlu2 %2546  ;;  %2618 = vst.msk [vmem:[%s3278_s22 + $0x48] sm:$0xff] %vm2608_vm6, %v2541_v56 }
 0x52f   : > { %2620 = vst.msk [vmem:[%s3278_s22 + $0x58] sm:$0xff] %vm2608_vm6, %v2547_v2 }
 0x530   : > { %2619 = vst.msk [vmem:[%s3278_s22 + $0x50] sm:$0xff] %vm2608_vm6, %v2544_v28 }
 0x532   : > { %2740 = vadd.xlane.f32.xlu0 %v2739_v4  ;;  %2743 = vadd.xlane.f32.xlu1 %v2742_v60 }
 0x533   : > { %2746 = vadd.xlane.f32.xlu2 %v2745_v23 }
 0x535   : > { %v2550_v7 = vpop.xlane.xlu0 %2549  ;;  %v2553_v30 = vpop.xlane.xlu1 %2552 }
 0x536   : > { %v2556_v57 = vpop.xlane.xlu2 %2555  ;;  %2621 = vst.msk [vmem:[%s3278_s22 + $0x60] sm:$0xff] %vm2608_vm6, %v2550_v7 }
 0x537   : > { %2623 = vst.msk [vmem:[%s3278_s22 + $0x70] sm:$0xff] %vm2608_vm6, %v2556_v57 }
 0x538   : > { %2622 = vst.msk [vmem:[%s3278_s22 + $0x68] sm:$0xff] %vm2608_vm6, %v2553_v30 }
 0x53a   : > { %2749 = vadd.xlane.f32.xlu0 %v2748_v1  ;;  %2752 = vadd.xlane.f32.xlu1 %v2751_v48 }
 0x53b   : > { %2755 = vadd.xlane.f32.xlu2 %v2754_v25 }
 0x53d   : > { %v2559_v40 = vpop.xlane.xlu0 %2558  ;;  %v2562_v13 = vpop.xlane.xlu1 %2561 }
 0x53e   : > { %v2565_v5 = vpop.xlane.xlu2 %2564  ;;  %2624 = vst.msk [vmem:[%s3278_s22 + $0x78] sm:$0xff] %vm2608_vm6, %v2559_v40 }
 0x53f   : > { %2626 = vst.msk [vmem:[%s3278_s22 + $0x88] sm:$0xff] %vm2608_vm6, %v2565_v5 }
 0x540   : > { %2625 = vst.msk [vmem:[%s3278_s22 + $0x80] sm:$0xff] %vm2608_vm6, %v2562_v13 }
 0x542   : > { %2758 = vadd.xlane.f32.xlu0 %v2757_v50  ;;  %2761 = vadd.xlane.f32.xlu1 %v2760_v44 }
 0x543   : > { %2764 = vadd.xlane.f32.xlu2 %v2763_v51 }
 0x545   : > { %v2568_v17 = vpop.xlane.xlu0 %2567  ;;  %v2571_v29 = vpop.xlane.xlu1 %2570 }
 0x546   : > { %v2574_v33 = vpop.xlane.xlu2 %2573  ;;  %2627 = vst.msk [vmem:[%s3278_s22 + $0x90] sm:$0xff] %vm2608_vm6, %v2568_v17 }
 0x547   : > { %2629 = vst.msk [vmem:[%s3278_s22 + $0xa0] sm:$0xff] %vm2608_vm6, %v2574_v33 }
 0x548   : > { %2628 = vst.msk [vmem:[%s3278_s22 + $0x98] sm:$0xff] %vm2608_vm6, %v2571_v29 }
 0x54a   : > { %2767 = vadd.xlane.f32.xlu0 %v2766_v47 }
 0x54d   : > { %v2577_v14 = vpop.xlane.xlu0 %2576  ;;  %v2580_v19 = vpop.xlane.xlu1 %2579 }
 0x54e   : > { %v2583_v26 = vpop.xlane.xlu2 %2582  ;;  %2630 = vst.msk [vmem:[%s3278_s22 + $0xa8] sm:$0xff] %vm2608_vm6, %v2577_v14 }
 0x54f   : > { %2632 = vst.msk [vmem:[%s3278_s22 + $0xb8] sm:$0xff] %vm2608_vm6, %v2583_v26 }
 0x550   : > { %2631 = vst.msk [vmem:[%s3278_s22 + $0xb0] sm:$0xff] %vm2608_vm6, %v2580_v19 }
 0x555   : > { %v2586_v54 = vpop.xlane.xlu0 %2585  ;;  %v2589_v46 = vpop.xlane.xlu1 %2588 }
 0x556   : > { %v2592_v31 = vpop.xlane.xlu2 %2591  ;;  %2633 = vst.msk [vmem:[%s3278_s22 + $0xc0] sm:$0xff] %vm2608_vm6, %v2586_v54 }
 0x557   : > { %2635 = vst.msk [vmem:[%s3278_s22 + $0xd0] sm:$0xff] %vm2608_vm6, %v2592_v31 }
 0x558   : > { %2634 = vst.msk [vmem:[%s3278_s22 + $0xc8] sm:$0xff] %vm2608_vm6, %v2589_v46 }
 0x55d   : > { %v2595_v32 = vpop.xlane.xlu0 %2594  ;;  %v2598_v24 = vpop.xlane.xlu1 %2597 }
 0x55e   : > { %v2601_v58 = vpop.xlane.xlu2 %2600  ;;  %2636 = vst.msk [vmem:[%s3278_s22 + $0xd8] sm:$0xff] %vm2608_vm6, %v2595_v32 }
 0x55f   : > { %2638 = vst.msk [vmem:[%s3278_s22 + $0xe8] sm:$0xff] %vm2608_vm6, %v2601_v58 }
 0x560   : > { %2637 = vst.msk [vmem:[%s3278_s22 + $0xe0] sm:$0xff] %vm2608_vm6, %v2598_v24 }
 0x565   : > { %v2604_v18 = vpop.xlane.xlu0 %2603  ;;  %v2607_v0 = vpop.xlane.xlu1 %2606 }
 0x566   : > { %v2675_v12 = vpop.xlane.xlu2 %2674  ;;  %2639 = vst.msk [vmem:[%s3278_s22 + $0xf0] sm:$0xff] %vm2608_vm6, %v2604_v18 }
 0x567   : > { %2640 = vst.msk [vmem:[%s3278_s22 + $0xf8] sm:$0xff] %vm2608_vm6, %v2607_v0 }
 0x568   : > { %2769 = vst.msk [vmem:[%s3283_s11] sm:$0xff] %vm2608_vm6, %v2675_v12 }
 0x56d   : > { %v2678_v55 = vpop.xlane.xlu0 %2677  ;;  %v2681_v39 = vpop.xlane.xlu1 %2680 }
 0x56e   : > { %v2684_v6 = vpop.xlane.xlu2 %2683  ;;  %2770 = vst.msk [vmem:[%s3283_s11 + $0x8] sm:$0xff] %vm2608_vm6, %v2678_v55 }
 0x56f   : > { %2771 = vst.msk [vmem:[%s3283_s11 + $0x10] sm:$0xff] %vm2608_vm6, %v2681_v39 }
 0x570   : > { %2772 = vst.msk [vmem:[%s3283_s11 + $0x18] sm:$0xff] %vm2608_vm6, %v2684_v6 }
 0x575   : > { %v2687_v34 = vpop.xlane.xlu0 %2686  ;;  %v2690_v53 = vpop.xlane.xlu1 %2689 }
 0x576   : > { %v2693_v52 = vpop.xlane.xlu2 %2692  ;;  %2773 = vst.msk [vmem:[%s3283_s11 + $0x20] sm:$0xff] %vm2608_vm6, %v2687_v34 }
 0x577   : > { %2774 = vst.msk [vmem:[%s3283_s11 + $0x28] sm:$0xff] %vm2608_vm6, %v2690_v53 }
 0x578   : > { %2775 = vst.msk [vmem:[%s3283_s11 + $0x30] sm:$0xff] %vm2608_vm6, %v2693_v52 }
 0x57d   : > { %v2696_v20 = vpop.xlane.xlu0 %2695  ;;  %v2699_v62 = vpop.xlane.xlu1 %2698 }
 0x57e   : > { %v2702_v43 = vpop.xlane.xlu2 %2701  ;;  %2776 = vst.msk [vmem:[%s3283_s11 + $0x38] sm:$0xff] %vm2608_vm6, %v2696_v20 }
 0x57f   : > { %2777 = vst.msk [vmem:[%s3283_s11 + $0x40] sm:$0xff] %vm2608_vm6, %v2699_v62 }
 0x580   : > { %2778 = vst.msk [vmem:[%s3283_s11 + $0x48] sm:$0xff] %vm2608_vm6, %v2702_v43 }
 0x585   : > { %v2705_v45 = vpop.xlane.xlu0 %2704  ;;  %v2708_v27 = vpop.xlane.xlu1 %2707 }
 0x586   : > { %v2711_v36 = vpop.xlane.xlu2 %2710  ;;  %2779 = vst.msk [vmem:[%s3283_s11 + $0x50] sm:$0xff] %vm2608_vm6, %v2705_v45 }
 0x587   : > { %2780 = vst.msk [vmem:[%s3283_s11 + $0x58] sm:$0xff] %vm2608_vm6, %v2708_v27 }
 0x588   : > { %2781 = vst.msk [vmem:[%s3283_s11 + $0x60] sm:$0xff] %vm2608_vm6, %v2711_v36 }
 0x58d   : > { %v2714_v37 = vpop.xlane.xlu0 %2713  ;;  %v2717_v3 = vpop.xlane.xlu1 %2716 }
 0x58e   : > { %v2720_v22 = vpop.xlane.xlu2 %2719  ;;  %2782 = vst.msk [vmem:[%s3283_s11 + $0x68] sm:$0xff] %vm2608_vm6, %v2714_v37 }
 0x58f   : > { %2783 = vst.msk [vmem:[%s3283_s11 + $0x70] sm:$0xff] %vm2608_vm6, %v2717_v3 }
 0x590   : > { %2784 = vst.msk [vmem:[%s3283_s11 + $0x78] sm:$0xff] %vm2608_vm6, %v2720_v22 }
 0x595   : > { %v2723_v59 = vpop.xlane.xlu0 %2722  ;;  %v2726_v16 = vpop.xlane.xlu1 %2725 }
 0x596   : > { %v2729_v42 = vpop.xlane.xlu2 %2728  ;;  %2785 = vst.msk [vmem:[%s3283_s11 + $0x80] sm:$0xff] %vm2608_vm6, %v2723_v59 }
 0x597   : > { %2786 = vst.msk [vmem:[%s3283_s11 + $0x88] sm:$0xff] %vm2608_vm6, %v2726_v16 }
 0x598   : > { %2787 = vst.msk [vmem:[%s3283_s11 + $0x90] sm:$0xff] %vm2608_vm6, %v2729_v42 }
 0x59d   : > { %v2732_v41 = vpop.xlane.xlu0 %2731  ;;  %v2735_v63 = vpop.xlane.xlu1 %2734 }
 0x59e   : > { %v2738_v49 = vpop.xlane.xlu2 %2737  ;;  %2788 = vst.msk [vmem:[%s3283_s11 + $0x98] sm:$0xff] %vm2608_vm6, %v2732_v41 }
 0x59f   : > { %2789 = vst.msk [vmem:[%s3283_s11 + $0xa0] sm:$0xff] %vm2608_vm6, %v2735_v63 }
 0x5a0   : > { %2790 = vst.msk [vmem:[%s3283_s11 + $0xa8] sm:$0xff] %vm2608_vm6, %v2738_v49 }
 0x5a5   : > { %v2741_v38 = vpop.xlane.xlu0 %2740  ;;  %v2744_v56 = vpop.xlane.xlu1 %2743 }
 0x5a6   : > { %v2747_v35 = vpop.xlane.xlu2 %2746  ;;  %2791 = vst.msk [vmem:[%s3283_s11 + $0xb0] sm:$0xff] %vm2608_vm6, %v2741_v38 }
 0x5a7   : > { %2792 = vst.msk [vmem:[%s3283_s11 + $0xb8] sm:$0xff] %vm2608_vm6, %v2744_v56 }
 0x5a8   : > { %2793 = vst.msk [vmem:[%s3283_s11 + $0xc0] sm:$0xff] %vm2608_vm6, %v2747_v35 }
 0x5ad   : > { %v2750_v2 = vpop.xlane.xlu0 %2749  ;;  %v2753_v4 = vpop.xlane.xlu1 %2752 }
 0x5ae   : > { %v2756_v28 = vpop.xlane.xlu2 %2755  ;;  %2794 = vst.msk [vmem:[%s3283_s11 + $0xc8] sm:$0xff] %vm2608_vm6, %v2750_v2 }
 0x5af   : > { %2795 = vst.msk [vmem:[%s3283_s11 + $0xd0] sm:$0xff] %vm2608_vm6, %v2753_v4 }
 0x5b0   : > { %2796 = vst.msk [vmem:[%s3283_s11 + $0xd8] sm:$0xff] %vm2608_vm6, %v2756_v28 }
 0x5b5   : > { %v2759_v23 = vpop.xlane.xlu0 %2758  ;;  %v2762_v8 = vpop.xlane.xlu1 %2761 }
 0x5b6   : > { %v2765_v60 = vpop.xlane.xlu2 %2764  ;;  %2797 = vst.msk [vmem:[%s3283_s11 + $0xe0] sm:$0xff] %vm2608_vm6, %v2759_v23 }
 0x5b7   : > { %2798 = vst.msk [vmem:[%s3283_s11 + $0xe8] sm:$0xff] %vm2608_vm6, %v2762_v8 }
 0x5b8   : > { %2799 = vst.msk [vmem:[%s3283_s11 + $0xf0] sm:$0xff] %vm2608_vm6, %v2765_v60 }
 0x5bd   : > { %v2768_v15 = vpop.xlane.xlu0 %2767 }
 0x5be   : > { %2800 = vst.msk [vmem:[%s3283_s11 + $0xf8] sm:$0xff] %vm2608_vm6, %v2768_v15 }
 0x5bf PF: > { %s18_s28 = sadd.s32 1, %s3185_s28   ;;  %s4994_s24 = smov %s3177_s26 }
 0x5c0   : > { %p15_p12 = scmp.ge.s32.totalorder %s18_s28, 8   ;;  %s4995_s25 = smov %s3181_s27 }
 0x5c1   : > { %s4996_s26 = smov %s4999_s29  ;;  %s4997_s27 = smov %s5003_s30 }
 0x5c2   :  { %17 = sbr.rel (!%p15_p12) target bundleno = 3 (0x3), region = 114 }

// kernel: unit_gcn_forward.5
= control target key start
LH: loop header
LB: loop body
LE: loop exit
PB: predicated region body
PF: predicated region fallthrough
CT: control target
= control target key end

     0   :  { %s619_s21 = smov 0   ;;  %s621_s22 = smov 0   ;;  %s691_s0 = inlined_call_operand.vmem [shape: f32[2,16,256], index: 0, kind: input, shape index: {}]   ;;  %s692_s1 = inlined_call_operand.vmem [shape: f32[2,88,256], index: 1, kind: input, shape index: {}]   ;;  %s693_s2 = inlined_call_operand.vmem [shape: f32[16,1], index: 2, kind: input, shape index: {}]   ;;  %s694_s3 = inlined_call_operand.vmem [shape: f32[16,1], index: 3, kind: input, shape index: {}]   ;;  %s695_s4 = inlined_call_operand.vmem [shape: f32[16,1], index: 4, kind: input, shape index: {}]   ;;  %s696_s5 = inlined_call_operand.vmem [shape: f32[16,1], index: 5, kind: input, shape index: {}]   ;;  %s697_s6 = inlined_call_operand.vmem [shape: f32[2,16,256], index: 6, kind: output, shape index: {}]  }
   0x1   :  { %s623_s23 = smov 0  }
   0x2 LB: > { %s28_s24 = sadd.s32 1, %s577_s22  ;;  %p520_p0 = scmp.ge.s32.totalorder %s581_s23, 1  ;;  %s581_s23 = sphi %s623_s23, %s16_s23   ;;  %s577_s22 = sphi %s621_s22, %s699_s22   ;;  %s573_s21 = sphi %s619_s21, %s698_s21  }
   0x3   : > { %p30_p1 = scmp.ge.s32.totalorder %s28_s24, 2  ;;  %p250_p2 = scmp.lt.s32.totalorder %s581_s23, 3 }
   0x5   : > { %s701_s24 = smov (%p30_p1, %s28_s24), 0  ;;  %p251_p3 = pnand %p520_p0, %p250_p2 }
   0x6   : > { %p298_p4 = scmp.lt.s32.totalorder (!%p251_p3), %s573_s21, 1 }
   0x7   : > { %254 = sbr.rel (%p251_p3) target bundleno = 153 (0x99), region = 44 }
   0xc   : > { %v347_v0 = vld [vmem:[%s694_s3] sm:$0xff]  ;;  %v583_v2 = vmov 0   ;;  %v348_v4 = vld [vmem:[%s694_s3 + $0x8] sm:$0xff]  ;;  %s703_s21 = smov (!%p298_p4, %s573_s21), 1 }
   0xd   : > { %v331_v1 = vld [vmem:[%s693_s2] sm:$0xff]  ;;  %557 = vset.pattern.permute.xlu1 %v583_v2  ;;  %556 = vset.pattern.permute.xlu0 %v583_v2  ;;  %v332_v5 = vld [vmem:[%s693_s2 + $0x8] sm:$0xff]  ;;  %s528_s17 = sshll.u32 %s703_s21, 5  ;;  %s530_s18 = smul.u32 176, %s703_s21 }
   0xe   : > { %351 = vperm.xlu1 %557, %v347_v0   ;;  %335 = vperm.xlu0 %556, %v331_v1   ;;  %v367_v3 = vld [vmem:[%s695_s4] sm:$0xff]  ;;  %v368_v6 = vld [vmem:[%s695_s4 + $0x8] sm:$0xff]  ;;  %s305_s25 = scalar_lea.vmem %s691_s0, %s528_s17  ;;  %s325_s7 = scalar_lea.vmem %s697_s6, %s528_s17 }
   0xf   : > { %558 = vset.pattern.permute.xlu2 %v583_v2  ;;  %v388_v7 = vld [vmem:[%s696_s5 + $0x8] sm:$0xff]  ;;  %v387_v8 = vld [vmem:[%s696_s5] sm:$0xff]  ;;  %s315_s28 = scalar_lea.vmem %s692_s1, %s530_s18  ;;  %v329_v14 = vld [vmem:[%s305_s25 + $0x10] sm:$0xff] }
  0x10   : > { %371 = vperm.xlu2 %558, %v367_v3   ;;  %v327_v12 = vld [vmem:[%s305_s25] sm:$0xff]  ;;  %v328_v13 = vld [vmem:[%s305_s25 + $0x8] sm:$0xff]  ;;  %v330_v15 = vld [vmem:[%s305_s25 + $0x18] sm:$0xff] }
  0x11   : > { %v363_v16 = vld [vmem:[%s315_s28] sm:$0xff]  ;;  %v364_v17 = vld [vmem:[%s315_s28 + $0x8] sm:$0xff]  ;;  %v365_v27 = vld [vmem:[%s315_s28 + $0x10] sm:$0xff] }
  0x12   : > { %v366_v28 = vld [vmem:[%s315_s28 + $0x18] sm:$0xff] }
  0x16   : > { %356 = vperm.xlu1 %557, %v348_v4   ;;  %340 = vperm.xlu0 %556, %v332_v5  }
  0x18   : > { %376 = vperm.xlu2 %558, %v368_v6  }
  0x1e   : > { %396 = vperm.xlu1 %557, %v388_v7   ;;  %391 = vperm.xlu0 %556, %v387_v8  }
  0x6a   : > { %v372_v9 = vpop.permute.xlu2 %371 }
  0x6b   : > { %v379_v24 = vmul.f32 %v372_v9, %v363_v16  ;;  %v380_v25 = vmul.f32 %v372_v9, %v364_v17 }
  0x72   : > { %v377_v26 = vpop.permute.xlu2 %376 }
  0x73   : > { %v381_v33 = vmul.f32 %v377_v26, %v365_v27  ;;  %v382_v34 = vmul.f32 %v377_v26, %v366_v28 }
  0x80   : > { %v352_v10 = vpop.permute.xlu1 %351  ;;  %v336_v11 = vpop.permute.xlu0 %335 }
  0x81   : > { %v343_v18 = vmul.f32 %v336_v11, %v327_v12  ;;  %v344_v19 = vmul.f32 %v336_v11, %v328_v13 }
  0x83   : > { %v359_v29 = vadd.f32 %v352_v10, %v343_v18  ;;  %v360_v30 = vadd.f32 %v352_v10, %v344_v19 }
  0x85   : > { %v383_v37 = vadd.f32 %v379_v24, %v359_v29  ;;  %v384_v38 = vadd.f32 %v380_v25, %v360_v30 }
  0x88   : > { %v357_v20 = vpop.permute.xlu1 %356  ;;  %v341_v21 = vpop.permute.xlu0 %340 }
  0x89   : > { %v345_v22 = vmul.f32 %v341_v21, %v329_v14  ;;  %v346_v23 = vmul.f32 %v341_v21, %v330_v15 }
  0x8b   : > { %v361_v31 = vadd.f32 %v357_v20, %v345_v22  ;;  %v362_v32 = vadd.f32 %v357_v20, %v346_v23 }
  0x8d   : > { %v385_v35 = vadd.f32 %v381_v33, %v361_v31  ;;  %v386_v36 = vadd.f32 %v382_v34, %v362_v32 }
  0x90   : > { %v397_v39 = vpop.permute.xlu1 %396  ;;  %v392_v40 = vpop.permute.xlu0 %391 }
  0x91   : > { %v401_v41 = vadd.f32 %v397_v39, %v385_v35  ;;  %v402_v42 = vadd.f32 %v397_v39, %v386_v36  ;;  %v399_v43 = vadd.f32 %v392_v40, %v383_v37  ;;  %v400_v44 = vadd.f32 %v392_v40, %v384_v38 }
  0x93   : > { %v405_v45 = vmax.f32 %v401_v41, 0.0  ;;  %v406_v46 = vmax.f32 %v402_v42, 0.0  ;;  %v403_v47 = vmax.f32 %v399_v43, 0.0  ;;  %v404_v48 = vmax.f32 %v400_v44, 0.0 }
  0x95   : > { %409 = vst [vmem:[%s325_s7 + $0x10] sm:$0xff] %v405_v45 }
  0x96   : > { %410 = vst [vmem:[%s325_s7 + $0x18] sm:$0xff] %v406_v46 }
  0x97   : > { %407 = vst [vmem:[%s325_s7] sm:$0xff] %v403_v47 }
  0x98   : > { %408 = vst [vmem:[%s325_s7 + $0x8] sm:$0xff] %v404_v48 }
  0x99 PF: > { %s16_s23 = sadd.s32 1, %s581_s23   ;;  %s698_s21 = smov %s577_s22 }
  0x9a   : > { %p13_p5 = scmp.ge.s32.totalorder %s16_s23, 4   ;;  %s699_s22 = smov %s701_s24 }
  0x9c   :  { %15 = sbr.rel (!%p13_p5) target bundleno = 2 (0x2), region = 77 }

</bundles_post_ra>
